<compile_context>
chip_gen: v6e
topology: v6e:2x2x1
jax: 0.10.0
libtpu: 0.0.40
codegen_flags: <defaults>
</compile_context>

<pallas_src>
import jax
import jax.numpy as jnp
from jax import lax
from jax.experimental import pallas as pl
from jax.experimental.pallas import tpu as pltpu


# ----------------------------------------------------------------------------
# Small SE(3) math (plain JAX glue -- O(1) scalar work, identical semantics to
# the PyTorch code, with the angle<1e-5 branch expressed via jnp.where).
# ----------------------------------------------------------------------------
def skew_sym_mat(x):
    z = jnp.zeros((), dtype=x.dtype)
    return jnp.stack([
        jnp.stack([z, -x[2], x[1]]),
        jnp.stack([x[2], z, -x[0]]),
        jnp.stack([-x[1], x[0], z]),
    ])


def SO3_exp(theta):
    W = skew_sym_mat(theta)
    W2 = W @ W
    angle = jnp.linalg.norm(theta)
    I = jnp.eye(3, dtype=theta.dtype)
    small = angle < 1e-5
    safe = jnp.where(small, jnp.ones_like(angle), angle)
    A = jnp.where(small, 1.0, jnp.sin(safe) / safe)
    B = jnp.where(small, 0.5, (1.0 - jnp.cos(safe)) / safe**2)
    return I + A * W + B * W2


def V(theta):
    W = skew_sym_mat(theta)
    W2 = W @ W
    angle = jnp.linalg.norm(theta)
    I = jnp.eye(3, dtype=theta.dtype)
    small = angle < 1e-5
    safe = jnp.where(small, jnp.ones_like(angle), angle)
    B = jnp.where(small, 0.5, (1.0 - jnp.cos(safe)) / safe**2)
    C = jnp.where(small, 1.0 / 6.0, (safe - jnp.sin(safe)) / safe**3)
    return I + B * W + C * W2


def SE3_exp(tau):
    rho = tau[:3]
    theta = tau[3:]
    R = SO3_exp(theta)
    t = V(theta) @ rho
    return R, t


def get_transform(scales, Rs, Ts, rot_deltas, trans_deltas):
    """trans = trans_tmp[k-1] @ ... @ trans_tmp[0] (same order as PyTorch)."""
    trans = jnp.eye(4, dtype=jnp.float32)
    for i in range(len(Rs)):
        tau = jnp.concatenate([trans_deltas[i], rot_deltas[i]], axis=0)
        delta_r, delta_t = SE3_exp(tau)
        top = jnp.concatenate(
            [scales[i] * (delta_r @ Rs[i]), (Ts[i] + delta_t)[:, None]], axis=1)
        trans_tmp = jnp.concatenate(
            [top, jnp.array([[0.0, 0.0, 0.0, 1.0]], dtype=jnp.float32)], axis=0)
        trans = trans_tmp @ trans
    return trans


# ----------------------------------------------------------------------------
# Pallas kernel: per-point y = T @ p on a lane-dense interleaved layout,
# done as one MXU matmul against a block-diagonal 128x128 matrix.
# ----------------------------------------------------------------------------
_LANES = 128
_PTS_PER_ROW = _LANES // 4   # 32 interleaved xyzw points per 128-lane row
_MAX_BLOCK_ROWS = 8192       # 4 MiB f32 input block
_MIN_GRID = 4                # keep the pipeline busy; even for v7x's 2 TCs


def _apply_transform_kernel(x_ref, m_ref, o_ref):
    # x: (block_rows, 128) interleaved points, m: (128, 128) = kron(I_32, T^T).
    # Full-width loads/stores, single MXU matmul; no VALU/XLU work.
    o_ref[...] = jnp.dot(
        x_ref[...], m_ref[...],
        preferred_element_type=jnp.float32,
        precision=lax.Precision.HIGHEST,   # avoid bf16 demotion of f32 matmul
    ).astype(o_ref.dtype)


def _round_up(x, m):
    return ((x + m - 1) // m) * m


def _apply_transform_aligned(x_aligned, trans):
    """Pallas path for x_aligned: [N, 4] with N % 32 == 0 (zero-copy reshape)."""
    n = x_aligned.shape[0]
    rows = n // _PTS_PER_ROW

    # Lane-dense packed view: contiguous reshape only (no pad, no transpose).
    x_packed = x_aligned.reshape(rows, _LANES)
    # Block-diagonal 128x128 with 32 copies of T^T on the diagonal:
    # (x_packed @ M)[r, 4i:4i+4] == T @ point_{32r+i}.
    m = jnp.kron(jnp.eye(_PTS_PER_ROW, dtype=x_aligned.dtype),
                 trans.T.astype(x_aligned.dtype))

    # Block sizing: 2-4 MiB blocks, >= 4 grid steps (even for v7x TC split).
    target_grid = max(_MIN_GRID, pl.cdiv(rows, _MAX_BLOCK_ROWS))
    if target_grid % 2:
        target_grid += 1
    block_rows = _round_up(pl.cdiv(rows, target_grid), 8)
    block_rows = min(block_rows, _round_up(rows, 8))
    grid = (pl.cdiv(rows, block_rows),)

    block_bytes = block_rows * _LANES * x_aligned.dtype.itemsize
    vmem_limit = 32 * 1024 * 1024   # safe scoped budget on v5e / v6e / v7x
    assert 4 * block_bytes + (1 << 20) <= vmem_limit  # 2x in + 2x out + M

    y_packed = pl.pallas_call(
        _apply_transform_kernel,
        out_shape=jax.ShapeDtypeStruct((rows, _LANES), x_aligned.dtype),
        grid=grid,
        in_specs=[
            pl.BlockSpec((block_rows, _LANES), lambda i: (i, 0)),  # points
            pl.BlockSpec((_LANES, _LANES), lambda i: (0, 0)),      # resident M
        ],
        out_specs=pl.BlockSpec((block_rows, _LANES), lambda i: (i, 0)),
        compiler_params=pltpu.CompilerParams(
            dimension_semantics=("parallel",),   # v7x: shard stream over 2 TCs
            vmem_limit_bytes=vmem_limit,
        ),
    )(x_packed, m)

    return y_packed.reshape(n, 4)


def apply_transform(x, trans, *, min_points_for_pallas=16384):
    """Compute y = (trans @ x.T).T for x: [N, 4] homogeneous points."""
    N, F = x.shape
    assert F == 4, "points must be homogeneous [N, 4]"
    trans = trans.astype(x.dtype)

    # Tiny point clouds: kernel-launch / pipeline overhead dominates -- let
    # XLA fuse the 4-wide matmul instead.
    if N < min_points_for_pallas:
        return x @ trans.T

    n_main = (N // _PTS_PER_ROW) * _PTS_PER_ROW
    if n_main == N:
        # Fast path: fully zero-copy (pure reshapes around the kernel).
        return _apply_transform_aligned(x, trans)

    # Ragged tail (< 32 points): Pallas on the 32-aligned prefix, XLA fallback
    # for the remainder (cheaper than a pad + full-output slice).
    y_main = _apply_transform_aligned(x[:n_main], trans)
    y_tail = x[n_main:] @ trans.T
    return jnp.concatenate([y_main, y_tail], axis=0)


# ----------------------------------------------------------------------------
# Module forward: pose composition (plain JAX) + point transform (Pallas).
# ----------------------------------------------------------------------------
def srt_global_optimizer_forward(x, scales, Rs, Ts, rot_deltas, trans_deltas):
    trans = get_transform(scales, Rs, Ts, rot_deltas, trans_deltas)
    return apply_transform(x, trans)

# TODO(synk): update_RT / update_trans mutate optimizer state in-place; only
# the forward pass is implemented here.


if __name__ == "__main__":
    key = jax.random.PRNGKey(0)
    n_pose = 2
    N = 70_000  # ragged (N % 32 == 16): exercises the kernel, a partial last
                # grid block (boundary masking), and the XLA tail path.

    keys = jax.random.split(key, 2 + 5 * n_pose)
    # Point cloud in homogeneous coordinates, w = 1.
    pts = jax.random.normal(keys[0], (N, 3), dtype=jnp.float32)
    x = jnp.concatenate([pts, jnp.ones((N, 1), dtype=jnp.float32)], axis=1)

    scales, Rs, Ts, rot_deltas, trans_deltas = [], [], [], [], []
    for i in range(n_pose):
        k = keys[2 + 5 * i: 2 + 5 * (i + 1)]
        scales.append(jax.random.uniform(k[0], (), jnp.float32, 0.5, 1.5))
        # Proper rotation matrix via exp of a random axis-angle vector.
        Rs.append(SO3_exp(jax.random.normal(k[1], (3,), jnp.float32) * 0.3))
        Ts.append(jax.random.normal(k[2], (3,), jnp.float32))
        # Module __init__ sets these to zeros; use small nonzero values so the
        # SE3_exp path is exercised end-to-end.
        rot_deltas.append(jax.random.normal(k[3], (3,), jnp.float32) * 0.05)
        trans_deltas.append(jax.random.normal(k[4], (3,), jnp.float32) * 0.05)

    fwd = jax.jit(srt_global_optimizer_forward)

    # Pure-JAX reference for correctness.
    trans_ref = get_transform(scales, Rs, Ts, rot_deltas, trans_deltas)

    # 1) Ragged-N path.
    y = jax.block_until_ready(fwd(x, scales, Rs, Ts, rot_deltas, trans_deltas))
    y_ref = (trans_ref @ x.T).T
    assert y.shape == (N, 4)
    assert jnp.allclose(y, y_ref, atol=1e-4, rtol=1e-5), (
        float(jnp.max(jnp.abs(y - y_ref))))

    # 2) Zero-copy fast path (N % 32 == 0).
    N2 = 65_536
    x2 = x[:N2]
    y2 = jax.block_until_ready(fwd(x2, scales, Rs, Ts, rot_deltas, trans_deltas))
    y2_ref = (trans_ref @ x2.T).T
    assert y2.shape == (N2, 4)
    assert jnp.allclose(y2, y2_ref, atol=1e-4, rtol=1e-5), (
        float(jnp.max(jnp.abs(y2 - y2_ref))))

    print("KERNEL_OK")
</pallas_src>

<mosaic_0001>
module attributes {stable_mosaic.version = 11 : i64} {
  func.func @_apply_transform_kernel(%arg0: i32, %arg1: memref<552x128xf32, #tpu.memory_space<vmem>>, %arg2: memref<128x128xf32, #tpu.memory_space<vmem>>, %arg3: memref<552x128xf32, #tpu.memory_space<vmem>>) attributes {dimension_semantics = [#tpu.dimension_semantics<parallel>], iteration_bounds = array<i64: 4>, scalar_prefetch = 0 : i64, scratch_operands = 0 : i64, tpu.core_type = #tpu.core_type<tc>, window_params = [{transform_indices = @transform_0, window_bounds = array<i64: 552, 128>}, {pipeline_mode = #tpu.pipeline_mode<synchronous>, transform_indices = @transform_1, window_bounds = array<i64: 128, 128>}, {transform_indices = @transform_2, window_bounds = array<i64: 552, 128>}]} {
    %c0 = arith.constant 0 : index
    %c0_0 = arith.constant 0 : index
    %0 = vector.load %arg1[%c0, %c0_0] : memref<552x128xf32, #tpu.memory_space<vmem>>, vector<552x128xf32>
    %c0_1 = arith.constant 0 : index
    %c0_2 = arith.constant 0 : index
    %1 = vector.load %arg2[%c0_1, %c0_2] : memref<128x128xf32, #tpu.memory_space<vmem>>, vector<128x128xf32>
    %cst = arith.constant dense<0.000000e+00> : vector<552x128xf32>
    %2 = tpu.matmul %0, %1, %cst {dimension_numbers = #tpu.dot_dimension_numbers<[1], [0], [0], [1], [0, 0, 1, 1], [], []>, precision = #tpu.contract_precision<fp32>} : vector<552x128xf32>, vector<128x128xf32>, vector<552x128xf32> -> vector<552x128xf32>
    %c0_3 = arith.constant 0 : index
    %c0_4 = arith.constant 0 : index
    %3 = vector.load %arg3[%c0_3, %c0_4] : memref<552x128xf32, #tpu.memory_space<vmem>>, vector<552x128xf32>
    tpu.vector_store %arg3[%c0_3, %c0_4], %2 {strides = array<i32>} : memref<552x128xf32, #tpu.memory_space<vmem>>, vector<552x128xf32>,
    return
  }
  func.func @transform_0(%arg0: i32) -> (i32, i32) {
    %c0_i32 = arith.constant 0 : i32
    %c0_i32_0 = arith.constant 0 : i32
    return %arg0, %c0_i32 : i32, i32
  }
  func.func @transform_1(%arg0: i32) -> (i32, i32) {
    %c0_i32 = arith.constant 0 : i32
    %c0_i32_0 = arith.constant 0 : i32
    %c0_i32_1 = arith.constant 0 : i32
    return %c0_i32, %c0_i32_0 : i32, i32
  }
  func.func @transform_2(%arg0: i32) -> (i32, i32) {
    %c0_i32 = arith.constant 0 : i32
    %c0_i32_0 = arith.constant 0 : i32
    return %arg0, %c0_i32 : i32, i32
  }
}

</mosaic_0001>

<bundles_post_ra>
// kernel: srt_global_optimizer_forward.1
= control target key start
LH: loop header
LB: loop body
LE: loop exit
PB: predicated region body
PF: predicated region fallthrough
CT: control target
= control target key end

     0   :  { %s6515_s9 = smov 0   ;;  %s6517_s10 = smov 0   ;;  %s9562_s0 = inlined_call_operand.vmem [shape: f32[2187,128], index: 0, kind: input, shape index: {}]   ;;  %s9563_s1 = inlined_call_operand.vmem [shape: f32[128,128], index: 1, kind: input, shape index: {}]   ;;  %s9564_s2 = inlined_call_operand.vmem [shape: f32[2187,128], index: 2, kind: output, shape index: {}]  }
   0x1   :  { %s6519_s11 = smov 0  }
   0x2 LB: > { %s6528_s12 = sadd.s32 4294967295, %s6464_s11   ;;  %s6530_s13 = sadd.s32 1, %s6464_s11   ;;  %s6464_s11 = sphi %s6519_s11, %s10352_s11   ;;  %s6460_s10 = sphi %s6517_s10, %s10351_s10   ;;  %s6456_s9 = sphi %s6515_s9, %s10350_s9  }
   0x3   : > { %s63_s14 = ssub.s32 %s6464_s11, %s6530_s13  ;;  %s66_s15 = sadd.s32 1, %s6460_s10 }
   0x4   : > { %p64_p0 = scmp.eq.s32.totalorder %s63_s14, 0  ;;  %p76_p1 = scmp.ne.s32.totalorder %s6460_s10, %s6456_s9 }
   0x5   : > { %p77_p2 = scmp.eq.s32.totalorder %s6528_s12, 3  ;;  %p4355_p3 = scmp.ge.s32.totalorder %s6464_s11, 1 }
   0x6   : > { %s6538_s16 = scalar_select %p64_p0, %s6460_s10, %s66_s15  }
   0x7   : > { %p6540_p4 = por %p77_p2, %p76_p1  ;;  %p121_p5 = scmp.lt.s32.totalorder %s6464_s11, 5 }
   0x9   : > { %p122_p6 = pnand %p4355_p3, %p121_p5 }
   0xb   : > { %125 = sbr.rel (%p122_p6) target bundleno = 1142 (0x476), region = 28 }
  0x10   : > { %v249_v0 = vld [vmem:[%s9563_s1 + $0x78] sm:$0xff]  ;;  %v248_v1 = vld [vmem:[%s9563_s1 + $0x70] sm:$0xff]  ;;  %v247_v2 = vld [vmem:[%s9563_s1 + $0x68] sm:$0xff]  ;;  %s6554_s24 = smul.u32 69, %s6528_s12  ;;  %v9815_v3 = vmov 0.0   ;;  %vm6499_vm0 = vmmov 0  }
  0x11   : > { %4885 = vmatprep.subr.mxu0 %v9815_v3  ;;  %v6557_v4 = vand.u32 4294901760, %v249_v0  ;;  %v6559_v5 = vand.u32 4294901760, %v248_v1  ;;  %v6561_v6 = vand.u32 4294901760, %v247_v2  ;;  %v246_v7 = vld [vmem:[%s9563_s1 + $0x60] sm:$0xff]  ;;  %5124 = vmatprep.subr.mxu1 %v9815_v3  ;;  %v245_v8 = vld [vmem:[%s9563_s1 + $0x58] sm:$0xff]  ;;  %v244_v9 = vld [vmem:[%s9563_s1 + $0x50] sm:$0xff] }
  0x12   : > { %v6573_v10 = vand.u32 4294901760, %v246_v7  ;;  %v6575_v11 = vand.u32 4294901760, %v245_v8  ;;  %v6577_v12 = vand.u32 4294901760, %v244_v9  ;;  %v243_v13 = vld [vmem:[%s9563_s1 + $0x48] sm:$0xff]  ;;  %v242_v14 = vld [vmem:[%s9563_s1 + $0x40] sm:$0xff]  ;;  %4917 = vmatprep.mubr.msk.f32.mxu0 %vm6499_vm0, %v9815_v3  ;;  %5156 = vmatprep.mubr.msk.f32.mxu1 %vm6499_vm0, %v9815_v3  ;;  %v241_v19 = vld [vmem:[%s9563_s1 + $0x38] sm:$0xff] }
  0x13   : > { %4886 = vmatpush3.msra.mxu0 %v6557_v4  ;;  %v6591_v15 = vsub.f32 %v249_v0, %v6557_v4  ;;  %v6594_v16 = vsub.f32 %v248_v1, %v6559_v5  ;;  %v6596_v17 = vand.u32 4294901760, %v243_v13  ;;  %v6599_v18 = vsub.f32 %v247_v2, %v6561_v6  ;;  %p151_p7 = scmp.lt.s32.totalorder %s6554_s24, 273  ;;  %v240_v29 = vld [vmem:[%s9563_s1 + $0x30] sm:$0xff]  ;;  %v239_v36 = vld [vmem:[%s9563_s1 + $0x28] sm:$0xff]  ;;  %v238_v42 = vld [vmem:[%s9563_s1 + $0x20] sm:$0xff]  ;;  %s143_s7 = sand.u32 1, %s6456_s9  }
  0x14   : > { %4887 = vmatprep.subr.mxu0 %v9815_v3  ;;  %v6607_v20 = vsub.f32 %v246_v7, %v6573_v10  ;;  %v6610_v21 = vsub.f32 %v245_v8, %v6575_v11  ;;  %v6616_v25 = vand.u32 4294901760, %v242_v14  ;;  %v6621_v27 = vand.u32 4294901760, %v241_v19  ;;  %v237_v50 = vld [vmem:[%s9563_s1 + $0x18] sm:$0xff]  ;;  %v236_v54 = vld [vmem:[%s9563_s1 + $0x10] sm:$0xff]  ;;  %v235_v61 = vld [vmem:[%s9563_s1 + $0x8] sm:$0xff]  ;;  %s6319_s8 = smul.u32 552, %s143_s7 }
  0x15   : > { %4888 = vmatpush3.msra.mxu0 %v6559_v5  ;;  %v9588_v22 = vand.u32 4294901760, %v6591_v15  ;;  %v9587_v23 = vand.u32 4294901760, %v6594_v16  ;;  %v9584_v24 = vand.u32 4294901760, %v6599_v18  ;;  %s152_s11 = scalar_select %p151_p7, %s6554_s24, 273  ;;  %v6628_v30 = vsub.f32 %v244_v9, %v6577_v12  ;;  %v234_v8 = vld [vmem:[%s9563_s1] sm:$0xff] }
  0x16   : > { %4889 = vmatprep.subr.mxu0 %v9815_v3  ;;  %v9576_v26 = vand.u32 4294901760, %v6607_v20  ;;  %v9574_v28 = vand.u32 4294901760, %v6610_v21  ;;  %v6641_v34 = vsub.f32 %v243_v13, %v6596_v17  ;;  %v6657_v40 = vand.u32 4294901760, %v240_v29  ;;  %s9108_s9 = scalar_lea.vmem [#allocation2], %s6319_s8   ;;  %s4372_s14 = smul.u32 (%p6540_p4), 552, %s6528_s12 }
  0x17   : > { %4890 = vmatpush3.msra.mxu0 %v6561_v6  ;;  %v1025_v31 = vsub.f32 %v6591_v15, %v9588_v22  ;;  %v1032_v32 = vsub.f32 %v6594_v16, %v9587_v23  ;;  %v1039_v33 = vsub.f32 %v6599_v18, %v9584_v24  ;;  %s4356_s18 = sshll.u32 %s152_s11, 3  ;;  %v9573_v35 = vand.u32 4294901760, %v6628_v30  ;;  %s3892_s11 = ssub.s32 (%p6540_p4), 274, %s6554_s24 }
  0x18   : > { %4891 = vmatprep.subr.mxu0 %v9815_v3  ;;  %s6651_s23 = scalar_lea.vmem %s9562_s0, %s4356_s18  ;;  %v1046_v39 = vsub.f32 %v6607_v20, %v9576_v26  ;;  %v1053_v41 = vsub.f32 %v6610_v21, %v9574_v28  ;;  %v6667_v43 = vsub.f32 %v242_v14, %v6616_v25  ;;  %v6670_v45 = vand.u32 4294901760, %v239_v36  ;;  %p3893_p8 = scmp.lt.s32.totalorder (%p6540_p4), %s3892_s11, 69 }
  0x19   : > { %4892 = vmatpush3.msra.mxu0 %v6573_v10  ;;  %v1026_v37 = vand.u32 4294901760, %v1025_v31  ;;  %v1033_v38 = vand.u32 4294901760, %v1032_v32  ;;  %v1040_v44 = vand.u32 4294901760, %v1039_v33  ;;  %v9572_v46 = vand.u32 4294901760, %v6641_v34  ;;  %v165_v48 = vld [vmem:[%s6651_s23] sm:$0xff]  ;;  %v166_v63 = vld [vmem:[%s6651_s23 + $0x8] sm:$0xff]  ;;  %s9363_s19 = scalar_lea.vmem (%p6540_p4), %s9564_s2, %s4372_s14  }
  0x1a   : > { %4893 = vmatprep.subr.mxu0 %v9815_v3  ;;  %v6674_v47 = vsub.f32 %v241_v19, %v6621_v27  ;;  %v1060_v49 = vsub.f32 %v6628_v30, %v9573_v35  ;;  %v1047_v51 = vand.u32 4294901760, %v1046_v39  ;;  %v6686_v52 = vand.u32 4294901760, %v238_v42 }
  0x1b   : > { %4894 = vmatpush3.msra.mxu0 %v6575_v11  ;;  %5125 = vmatpush3.msra.mxu1 %v1026_v37  ;;  %v9570_v53 = vand.u32 4294901760, %v6667_v43  ;;  %v6693_v55 = vsub.f32 %v240_v29, %v6657_v40  ;;  %v1054_v56 = vand.u32 4294901760, %v1053_v41  ;;  %v6697_v57 = vand.u32 4294901760, %v165_v48 }
  0x1c   : > { %4895 = vmatprep.subr.mxu0 %v9815_v3  ;;  %5126 = vmatprep.subr.mxu1 %v9815_v3  ;;  %v1067_v58 = vsub.f32 %v6641_v34, %v9572_v46  ;;  %v6703_v59 = vand.u32 4294901760, %v237_v50  ;;  %v9568_v60 = vand.u32 4294901760, %v6674_v47  ;;  %v6710_v62 = vsub.f32 %v239_v36, %v6670_v45  ;;  %v167_v36 = vld [vmem:[%s6651_s23 + $0x10] sm:$0xff] }
  0x1d   : > { %4896 = vmatpush3.msra.mxu0 %v6577_v12  ;;  %5127 = vmatpush3.msra.mxu1 %v1033_v38  ;;  %9894 = vst [vmem:[#allocation3_spill] sm:$0xff] %v6697_v57  ;;  %v1061_v0 = vand.u32 4294901760, %v1060_v49  ;;  %v6715_v1 = vand.u32 4294901760, %v236_v54  ;;  %v1074_v2 = vsub.f32 %v6667_v43, %v9570_v53  ;;  %v9567_v7 = vand.u32 4294901760, %v6693_v55 }
  0x1e   : > { %4897 = vmatprep.subr.mxu0 %v9815_v3  ;;  %5128 = vmatprep.subr.mxu1 %v9815_v3  ;;  %v6726_v9 = vsub.f32 %v238_v42, %v6686_v52  ;;  %v6729_v13 = vsub.f32 %v165_v48, %v6697_v57  ;;  %v6733_v14 = vand.u32 4294901760, %v235_v61  ;;  %v6735_v19 = vand.u32 4294901760, %v166_v63 }
  0x1f   : > { %4898 = vmatpush3.msra.mxu0 %v6596_v17  ;;  %5129 = vmatpush3.msra.mxu1 %v1040_v44  ;;  %9895 = vst [vmem:[#allocation4_spill] sm:$0xff] %v6715_v1  ;;  %v1068_v29 = vand.u32 4294901760, %v1067_v58  ;;  %v1081_v31 = vsub.f32 %v6674_v47, %v9568_v60  ;;  %v9566_v32 = vand.u32 4294901760, %v6710_v62  ;;  %v6743_v33 = vsub.f32 %v237_v50, %v6703_v59  ;;  %v168_v58 = vld [vmem:[%s6651_s23 + $0x18] sm:$0xff] }
  0x20   : > { %4899 = vmatprep.subr.mxu0 %v9815_v3  ;;  %5130 = vmatprep.subr.mxu1 %v9815_v3  ;;  %9896 = vst [vmem:[#allocation5_spill] sm:$0xff] %v6733_v14  ;;  %9897 = vst [vmem:[#allocation6_spill] sm:$0xff] %v6735_v19  ;;  %v6748_v37 = vand.u32 4294901760, %v234_v8  ;;  %v6751_v38 = vsub.f32 %v236_v54, %v6715_v1  ;;  %v1075_v39 = vand.u32 4294901760, %v1074_v2  ;;  %v9565_v42 = vand.u32 4294901760, %v6726_v9 }
  0x21   : > { %4900 = vmatpush3.msra.mxu0 %v6616_v25  ;;  %5131 = vmatpush3.msra.mxu1 %v1047_v51  ;;  %v1088_v41 = vsub.f32 %v6693_v55, %v9567_v7  ;;  %v9585_v44 = vand.u32 4294901760, %v6729_v13  ;;  %v6762_v48 = vsub.f32 %v166_v63, %v6735_v19  ;;  %v6764_v49 = vand.u32 4294901760, %v167_v36  ;;  %v169_v7 = vld [vmem:[%s6651_s23 + $0x20] sm:$0xff] }
  0x22   : > { %4901 = vmatprep.subr.mxu0 %v9815_v3  ;;  %5132 = vmatprep.subr.mxu1 %v9815_v3  ;;  %9898 = vst [vmem:[#allocation7_spill] sm:$0xff] %v6748_v37  ;;  %9899 = vst [vmem:[#allocation8_spill] sm:$0xff] %v6751_v38  ;;  %v1082_v50 = vand.u32 4294901760, %v1081_v31  ;;  %v1095_v51 = vsub.f32 %v6710_v62, %v9566_v32  ;;  %v9569_v54 = vand.u32 4294901760, %v6743_v33  ;;  %v9571_v63 = vand.u32 4294901760, %v6751_v38 }
  0x23   : > { %4902 = vmatpush3.msra.mxu0 %v6621_v27  ;;  %5133 = vmatpush3.msra.mxu1 %v1054_v56  ;;  %9900 = vst [vmem:[#allocation9_spill] sm:$0xff] %v6764_v49  ;;  %v6772_v56 = vsub.f32 %v235_v61, %v6733_v14  ;;  %v1102_v2 = vsub.f32 %v6726_v9, %v9565_v42  ;;  %v9582_v31 = vand.u32 4294901760, %v6762_v48 }
  0x24   : > { %4903 = vmatprep.subr.mxu0 %v9815_v3  ;;  %5134 = vmatprep.subr.mxu1 %v9815_v3  ;;  %v334_v61 = vsub.f32 %v6729_v13, %v9585_v44  ;;  %v1096_v42 = vand.u32 4294901760, %v1095_v51 }
  0x25   : > { %4904 = vmatpush3.msra.mxu0 %v6657_v40  ;;  %5135 = vmatpush3.msra.mxu1 %v1061_v0  ;;  %9901 = vst [vmem:[#allocation10_spill] sm:$0xff] %v6772_v56  ;;  %v1089_v0 = vand.u32 4294901760, %v1088_v41  ;;  %v6794_v41 = vand.u32 4294901760, %v168_v58  ;;  %v9575_v32 = vand.u32 4294901760, %v6772_v56 }
  0x26   : > { %4905 = vmatprep.subr.mxu0 %v9815_v3  ;;  %5136 = vmatprep.subr.mxu1 %v9815_v3  ;;  %v335_v60 = vand.u32 4294901760, %v334_v61  ;;  %v170_v61 = vld [vmem:[%s6651_s23 + $0x28] sm:$0xff] }
  0x27   : > { %4906 = vmatpush3.msra.mxu0 %v6670_v45  ;;  %5137 = vmatpush3.msra.mxu1 %v1068_v29  ;;  %v6786_v29 = vsub.f32 %v234_v8, %v6748_v37  ;;  %9903 = vst [vmem:[#allocation12_spill] sm:$0xff] %v6794_v41  ;;  %v1109_v8 = vsub.f32 %v6743_v33, %v9569_v54  ;;  %v6831_v28 = vand.u32 4294901760, %v170_v61 }
  0x28   : > { %4907 = vmatprep.subr.mxu0 %v9815_v3  ;;  %5138 = vmatprep.subr.mxu1 %v9815_v3  ;;  %v344_v54 = vsub.f32 %v6762_v48, %v9582_v31  ;;  %v1123_v46 = vsub.f32 %v6772_v56, %v9575_v32 }
  0x29   : > { %4908 = vmatpush3.msra.mxu0 %v6686_v52  ;;  %5139 = vmatpush3.msra.mxu1 %v1075_v39  ;;  %9902 = vst [vmem:[#allocation11_spill] sm:$0xff] %v6786_v29  ;;  %v6792_v39 = vsub.f32 %v167_v36, %v6764_v49  ;;  %v1103_v36 = vand.u32 4294901760, %v1102_v2  ;;  %v9577_v51 = vand.u32 4294901760, %v6786_v29  ;;  %v6818_v2 = vand.u32 4294901760, %v169_v7  ;;  %9905 = vst [vmem:[#allocation14_spill] sm:$0xff] %v6831_v28 }
  0x2a   : > { %4909 = vmatprep.subr.mxu0 %v9815_v3  ;;  %5140 = vmatprep.subr.mxu1 %v9815_v3 }
  0x2b   : > { %4910 = vmatpush3.msra.mxu0 %v6703_v59  ;;  %5141 = vmatpush3.msra.mxu1 %v1082_v50  ;;  %v1116_v50 = vsub.f32 %v6751_v38, %v9571_v63  ;;  %v9580_v53 = vand.u32 4294901760, %v6792_v39  ;;  %9904 = vst [vmem:[#allocation13_spill] sm:$0xff] %v6818_v2  ;;  %v1110_v63 = vand.u32 4294901760, %v1109_v8  ;;  %v1130_v35 = vsub.f32 %v6786_v29, %v9577_v51 }
  0x2c   : > { %4911 = vmatprep.subr.mxu0 %v9815_v3  ;;  %5142 = vmatprep.subr.mxu1 %v9815_v3  ;;  %v6839_v26 = vsub.f32 %v169_v7, %v6818_v2  ;;  %v6855_v51 = vsub.f32 %v170_v61, %v6831_v28 }
  0x2d   : > { %4912 = vmatpush3.msra.mxu0 %v6715_v1  ;;  %5143 = vmatpush3.msra.mxu1 %v1089_v0  ;;  %v6816_v0 = vsub.f32 %v168_v58, %v6794_v41  ;;  %v1117_v58 = vand.u32 4294901760, %v1116_v50  ;;  %v354_v8 = vsub.f32 %v6792_v39, %v9580_v53  ;;  %v1124_v50 = vand.u32 4294901760, %v1123_v46  ;;  %v174_v53 = vld [vmem:[%s6651_s23 + $0x48] sm:$0xff] }
  0x2e   : > { %4913 = vmatprep.subr.mxu0 %v9815_v3  ;;  %5144 = vmatprep.subr.mxu1 %v9815_v3  ;;  %v9578_v46 = vand.u32 4294901760, %v6839_v26 }
  0x2f   : > { %4914 = vmatpush3.msra.mxu0 %v6733_v14  ;;  %5145 = vmatpush3.msra.mxu1 %v1096_v42  ;;  %v345_v42 = vand.u32 4294901760, %v344_v54  ;;  %v9579_v32 = vand.u32 4294901760, %v6816_v0  ;;  %v355_v7 = vand.u32 4294901760, %v354_v8  ;;  %v9581_v8 = vand.u32 4294901760, %v6855_v51 }
  0x30   : > { %4915 = vmatprep.subr.mxu0 %v9815_v3  ;;  %5146 = vmatprep.subr.mxu1 %v9815_v3 }
  0x31   : > { %4916 = vmatpush3.msra.mxu0 %v6748_v37  ;;  %5147 = vmatpush3.msra.mxu1 %v1103_v36  ;;  %v171_v36 = vld [vmem:[%s6651_s23 + $0x30] sm:$0xff] }
  0x32   : > { %4918 = vmatmul.mubr.f32.vlgmr.msra.gmra.mxu0 %v335_v60  ;;  %5148 = vmatprep.subr.mxu1 %v9815_v3  ;;  %v1131_v60 = vand.u32 4294901760, %v1130_v35  ;;  %v6847_v54 = vand.u32 4294901760, %v171_v36  ;;  %v172_v35 = vld [vmem:[%s6651_s23 + $0x38] sm:$0xff] }
  0x33   : > { %5149 = vmatpush3.msra.mxu1 %v1110_v63  ;;  %4920 = vmatprep.mubr.msk.f32.mxu0 %vm6499_vm0, %v9815_v3  ;;  %v364_v63 = vsub.f32 %v6816_v0, %v9579_v32 }
  0x34   : > { %5150 = vmatprep.subr.mxu1 %v9815_v3  ;;  %5363 = vmatprep.subr.mxu0 %v9815_v3  ;;  %9906 = vst [vmem:[#allocation15_spill] sm:$0xff] %v6847_v54 }
  0x35   : > { %5151 = vmatpush3.msra.mxu1 %v1117_v58  ;;  %5364 = vmatpush3.msra.mxu0 %v6591_v15  ;;  %v6863_v58 = vsub.f32 %v171_v36, %v6847_v54  ;;  %v365_v61 = vand.u32 4294901760, %v364_v63  ;;  %v173_v36 = vld [vmem:[%s6651_s23 + $0x40] sm:$0xff]  ;;  %v384_v63 = vsub.f32 %v6855_v51, %v9581_v8 }
  0x36   : > { %4921 = vmatmul.mubr.f32.gmra.mxu0 %v345_v42  ;;  %5152 = vmatprep.subr.mxu1 %v9815_v3  ;;  %v374_v42 = vsub.f32 %v6839_v26, %v9578_v46  ;;  %v6890_v32 = vand.u32 4294901760, %v173_v36 }
  0x37   : > { %5153 = vmatpush3.msra.mxu1 %v1124_v50  ;;  %4923 = vmatprep.mubr.msk.f32.mxu0 %vm6499_vm0, %v9815_v3  ;;  %v6871_v50 = vand.u32 4294901760, %v172_v35 }
  0x38   : > { %5154 = vmatprep.subr.mxu1 %v9815_v3  ;;  %5365 = vmatprep.subr.mxu0 %v9815_v3  ;;  %9908 = vst [vmem:[#allocation17_spill] sm:$0xff] %v6890_v32  ;;  %v6909_v31 = vsub.f32 %v173_v36, %v6890_v32 }
  0x39   : > { %5155 = vmatpush3.msra.mxu1 %v1131_v60  ;;  %5366 = vmatpush3.msra.mxu0 %v6594_v16  ;;  %9907 = vst [vmem:[#allocation16_spill] sm:$0xff] %v6871_v50  ;;  %v9583_v60 = vand.u32 4294901760, %v6863_v58  ;;  %v6888_v46 = vsub.f32 %v172_v35, %v6871_v50  ;;  %v385_v35 = vand.u32 4294901760, %v384_v63 }
  0x3a   : > { %4924 = vmatmul.mubr.f32.gmra.mxu0 %v355_v7  ;;  %5157 = vmatmul.mubr.f32.vlgmr.msra.gmra.mxu1 %v6697_v57  ;;  %v375_v7 = vand.u32 4294901760, %v374_v42  ;;  %v9591_v24 = vand.u32 4294901760, %v6909_v31 }
  0x3b   : > { %5602 = vmatprep.subr.mxu1 %v9815_v3  ;;  %4926 = vmatprep.mubr.msk.f32.mxu0 %vm6499_vm0, %v9815_v3  ;;  %v394_v42 = vsub.f32 %v6863_v58, %v9583_v60  ;;  %v9586_v8 = vand.u32 4294901760, %v6888_v46 }
  0x3c   : > { %5603 = vmatpush3.msra.mxu1 %v6557_v4  ;;  %5159 = vmatprep.mubr.msk.f32.mxu1 %vm6499_vm0, %v9815_v3 }
  0x3d   : > { %5604 = vmatprep.subr.mxu1 %v9815_v3  ;;  %5367 = vmatprep.subr.mxu0 %v9815_v3  ;;  %v395_v36 = vand.u32 4294901760, %v394_v42  ;;  %v404_v60 = vsub.f32 %v6888_v46, %v9586_v8  ;;  %v414_v8 = vsub.f32 %v6909_v31, %v9591_v24 }
  0x3e   : > { %4927 = vmatmul.mubr.f32.gmra.mxu0 %v365_v61  ;;  %5160 = vmatmul.mubr.f32.gmra.mxu1 %v6735_v19  ;;  %v6899_v61 = vand.u32 4294901760, %v174_v53  ;;  %v179_v19 = vld [vmem:[%s6651_s23 + $0x70] sm:$0xff] }
  0x3f   : > { %4929 = vmatprep.mubr.msk.f32.mxu0 %vm6499_vm0, %v9815_v3  ;;  %5162 = vmatprep.mubr.msk.f32.mxu1 %vm6499_vm0, %v9815_v3  ;;  %v405_v42 = vand.u32 4294901760, %v404_v60 }
  0x40   : > { %5605 = vmatpush3.msra.mxu1 %v6559_v5  ;;  %5368 = vmatpush3.msra.mxu0 %v6599_v18  ;;  %9909 = vst [vmem:[#allocation18_spill] sm:$0xff] %v6899_v61  ;;  %v6919_v63 = vsub.f32 %v174_v53, %v6899_v61  ;;  %v176_v53 = vld [vmem:[%s6651_s23 + $0x58] sm:$0xff] }
  0x41   : > { %5606 = vmatprep.subr.mxu1 %v9815_v3  ;;  %5369 = vmatprep.subr.mxu0 %v9815_v3  ;;  %v6947_v22 = vand.u32 4294901760, %v176_v53 }
  0x42   : > { %4930 = vmatmul.mubr.f32.gmra.mxu0 %v375_v7  ;;  %5163 = vmatmul.mubr.f32.gmra.mxu1 %v6764_v49  ;;  %v175_v7 = vld [vmem:[%s6651_s23 + $0x50] sm:$0xff]  ;;  %v178_v49 = vld [vmem:[%s6651_s23 + $0x68] sm:$0xff] }
  0x43   : > { %4932 = vmatprep.mubr.msk.f32.mxu0 %vm6499_vm0, %v9815_v3  ;;  %5165 = vmatprep.mubr.msk.f32.mxu1 %vm6499_vm0, %v9815_v3  ;;  %v6928_v44 = vand.u32 4294901760, %v175_v7  ;;  %9911 = vst [vmem:[#allocation20_spill] sm:$0xff] %v6947_v22 }
  0x44   : > { %5607 = vmatpush3.msra.mxu1 %v6561_v6  ;;  %5370 = vmatpush3.msra.mxu0 %v6607_v20 }
  0x45   : > { %5608 = vmatprep.subr.mxu1 %v9815_v3  ;;  %5371 = vmatprep.subr.mxu0 %v9815_v3  ;;  %9910 = vst [vmem:[#allocation19_spill] sm:$0xff] %v6928_v44  ;;  %v6945_v23 = vsub.f32 %v175_v7, %v6928_v44  ;;  %v415_v7 = vand.u32 4294901760, %v414_v8  ;;  %v6975_v8 = vand.u32 4294901760, %v178_v49 }
  0x46   : > { %4933 = vmatmul.mubr.f32.gmra.mxu0 %v385_v35  ;;  %5166 = vmatmul.mubr.f32.gmra.mxu1 %v6794_v41  ;;  %v9596_v35 = vand.u32 4294901760, %v6919_v63  ;;  %v177_v41 = vld [vmem:[%s6651_s23 + $0x60] sm:$0xff] }
  0x47   : > { %4935 = vmatprep.mubr.msk.f32.mxu0 %vm6499_vm0, %v9815_v3  ;;  %5168 = vmatprep.mubr.msk.f32.mxu1 %vm6499_vm0, %v9815_v3  ;;  %v6956_v60 = vand.u32 4294901760, %v177_v41  ;;  %v9601_v24 = vand.u32 4294901760, %v6945_v23  ;;  %9914 = vst [vmem:[#allocation23_spill] sm:$0xff] %v6975_v8 }
  0x48   : > { %5609 = vmatpush3.msra.mxu1 %v6573_v10  ;;  %5372 = vmatpush3.msra.mxu0 %v6610_v21 }
  0x49   : > { %5610 = vmatprep.subr.mxu1 %v9815_v3  ;;  %5373 = vmatprep.subr.mxu0 %v9815_v3  ;;  %9912 = vst [vmem:[#allocation21_spill] sm:$0xff] %v6956_v60 }
  0x4a   : > { %4936 = vmatmul.mubr.f32.gmra.mxu0 %v395_v36  ;;  %5169 = vmatmul.mubr.f32.gmra.mxu1 %v6818_v2  ;;  %v424_v36 = vsub.f32 %v6919_v63, %v9596_v35  ;;  %v6966_v2 = vsub.f32 %v176_v53, %v6947_v22 }
  0x4b   : > { %4938 = vmatprep.mubr.msk.f32.mxu0 %vm6499_vm0, %v9815_v3  ;;  %5171 = vmatprep.mubr.msk.f32.mxu1 %vm6499_vm0, %v9815_v3 }
  0x4c   : > { %5611 = vmatpush3.msra.mxu1 %v6575_v11  ;;  %5374 = vmatpush3.msra.mxu0 %v6628_v30  ;;  %9913 = vst [vmem:[#allocation22_spill] sm:$0xff] %v6966_v2  ;;  %v425_v53 = vand.u32 4294901760, %v424_v36  ;;  %v9604_v35 = vand.u32 4294901760, %v6966_v2 }
  0x4d   : > { %5612 = vmatprep.subr.mxu1 %v9815_v3  ;;  %5375 = vmatprep.subr.mxu0 %v9815_v3 }
  0x4e   : > { %4939 = vmatmul.mubr.f32.gmra.mxu0 %v405_v42  ;;  %5172 = vmatmul.mubr.f32.gmra.mxu1 %v6831_v28  ;;  %v434_v42 = vsub.f32 %v6945_v23, %v9601_v24  ;;  %v6985_v28 = vsub.f32 %v177_v41, %v6956_v60  ;;  %v444_v36 = vsub.f32 %v6966_v2, %v9604_v35  ;;  %v182_v2 = vld [vmem:[%s6651_s23 + $0x88] sm:$0xff] }
  0x4f   : > { %4941 = vmatprep.mubr.msk.f32.mxu0 %vm6499_vm0, %v9815_v3  ;;  %5174 = vmatprep.mubr.msk.f32.mxu1 %vm6499_vm0, %v9815_v3 }
  0x50   : > { %5613 = vmatpush3.msra.mxu1 %v6577_v12  ;;  %5376 = vmatpush3.msra.mxu0 %v6641_v34  ;;  %9915 = vst [vmem:[#allocation24_spill] sm:$0xff] %v6985_v28  ;;  %v435_v41 = vand.u32 4294901760, %v434_v42  ;;  %v9609_v24 = vand.u32 4294901760, %v6985_v28 }
  0x51   : > { %5614 = vmatprep.subr.mxu1 %v9815_v3  ;;  %5377 = vmatprep.subr.mxu0 %v9815_v3 }
  0x52   : > { %4942 = vmatmul.mubr.f32.gmra.mxu0 %v415_v7  ;;  %5175 = vmatmul.mubr.f32.gmra.mxu1 %v6847_v54  ;;  %v6994_v7 = vand.u32 4294901760, %v179_v19  ;;  %v7004_v54 = vsub.f32 %v178_v49, %v6975_v8  ;;  %v445_v49 = vand.u32 4294901760, %v444_v36  ;;  %v454_v35 = vsub.f32 %v6985_v28, %v9609_v24 }
  0x53   : > { %4944 = vmatprep.mubr.msk.f32.mxu0 %vm6499_vm0, %v9815_v3  ;;  %5177 = vmatprep.mubr.msk.f32.mxu1 %vm6499_vm0, %v9815_v3 }
  0x54   : > { %5615 = vmatpush3.msra.mxu1 %v6596_v17  ;;  %5378 = vmatpush3.msra.mxu0 %v6667_v43  ;;  %9916 = vst [vmem:[#allocation25_spill] sm:$0xff] %v6994_v7  ;;  %9917 = vst [vmem:[#allocation26_spill] sm:$0xff] %v7004_v54  ;;  %v7014_v42 = vsub.f32 %v179_v19, %v6994_v7  ;;  %v181_v19 = vld [vmem:[%s6651_s23 + $0x80] sm:$0xff]  ;;  %v455_v36 = vand.u32 4294901760, %v454_v35  ;;  %v7051_v35 = vand.u32 4294901760, %v182_v2 }
  0x55   : > { %5616 = vmatprep.subr.mxu1 %v9815_v3  ;;  %5379 = vmatprep.subr.mxu0 %v9815_v3  ;;  %v7042_v28 = vand.u32 4294901760, %v181_v19 }
  0x56   : > { %4945 = vmatmul.mubr.f32.gmra.mxu0 %v425_v53  ;;  %5178 = vmatmul.mubr.f32.gmra.mxu1 %v6871_v50  ;;  %v180_v53 = vld [vmem:[%s6651_s23 + $0x78] sm:$0xff]  ;;  %9918 = vst [vmem:[#allocation27_spill] sm:$0xff] %v7014_v42  ;;  %v9616_v50 = vand.u32 4294901760, %v7004_v54  ;;  %9922 = vst [vmem:[#allocation31_spill] sm:$0xff] %v7051_v35 }
  0x57   : > { %4947 = vmatprep.mubr.msk.f32.mxu0 %vm6499_vm0, %v9815_v3  ;;  %5180 = vmatprep.mubr.msk.f32.mxu1 %vm6499_vm0, %v9815_v3  ;;  %v7023_v57 = vand.u32 4294901760, %v180_v53  ;;  %9921 = vst [vmem:[#allocation30_spill] sm:$0xff] %v7042_v28 }
  0x58   : > { %5617 = vmatpush3.msra.mxu1 %v6616_v25  ;;  %5380 = vmatpush3.msra.mxu0 %v6674_v47  ;;  %v464_v24 = vsub.f32 %v7004_v54, %v9616_v50  ;;  %v185_v54 = vld [vmem:[%s6651_s23 + $0xa0] sm:$0xff] }
  0x59   : > { %5618 = vmatprep.subr.mxu1 %v9815_v3  ;;  %5381 = vmatprep.subr.mxu0 %v9815_v3  ;;  %9919 = vst [vmem:[#allocation28_spill] sm:$0xff] %v7023_v57 }
  0x5a   : > { %4948 = vmatmul.mubr.f32.gmra.mxu0 %v435_v41  ;;  %5181 = vmatmul.mubr.f32.gmra.mxu1 %v6890_v32  ;;  %v9619_v41 = vand.u32 4294901760, %v7014_v42  ;;  %v7040_v32 = vsub.f32 %v180_v53, %v7023_v57  ;;  %v465_v53 = vand.u32 4294901760, %v464_v24  ;;  %v7071_v24 = vsub.f32 %v182_v2, %v7051_v35  ;;  %v184_v2 = vld [vmem:[%s6651_s23 + $0x98] sm:$0xff] }
  0x5b   : > { %4950 = vmatprep.mubr.msk.f32.mxu0 %vm6499_vm0, %v9815_v3  ;;  %5183 = vmatprep.mubr.msk.f32.mxu1 %vm6499_vm0, %v9815_v3 }
  0x5c   : > { %5619 = vmatpush3.msra.mxu1 %v6621_v27  ;;  %5382 = vmatpush3.msra.mxu0 %v6693_v55  ;;  %9920 = vst [vmem:[#allocation29_spill] sm:$0xff] %v7040_v32  ;;  %v9624_v50 = vand.u32 4294901760, %v7040_v32  ;;  %9924 = vst [vmem:[#allocation33_spill] sm:$0xff] %v7071_v24 }
  0x5d   : > { %5620 = vmatprep.subr.mxu1 %v9815_v3  ;;  %5383 = vmatprep.subr.mxu0 %v9815_v3 }
  0x5e   : > { %4951 = vmatmul.mubr.f32.gmra.mxu0 %v445_v49  ;;  %5184 = vmatmul.mubr.f32.gmra.mxu1 %v6899_v61  ;;  %v474_v49 = vsub.f32 %v7014_v42, %v9619_v41  ;;  %v7061_v61 = vsub.f32 %v181_v19, %v7042_v28  ;;  %v484_v41 = vsub.f32 %v7040_v32, %v9624_v50  ;;  %v7099_v32 = vand.u32 4294901760, %v184_v2 }
  0x5f   : > { %4953 = vmatprep.mubr.msk.f32.mxu0 %vm6499_vm0, %v9815_v3  ;;  %5186 = vmatprep.mubr.msk.f32.mxu1 %vm6499_vm0, %v9815_v3 }
  0x60   : > { %5621 = vmatpush3.msra.mxu1 %v6657_v40  ;;  %5384 = vmatpush3.msra.mxu0 %v6710_v62  ;;  %9923 = vst [vmem:[#allocation32_spill] sm:$0xff] %v7061_v61  ;;  %v475_v19 = vand.u32 4294901760, %v474_v49  ;;  %v485_v49 = vand.u32 4294901760, %v484_v41  ;;  %9927 = vst [vmem:[#allocation36_spill] sm:$0xff] %v7099_v32  ;;  %v7108_v41 = vand.u32 4294901760, %v185_v54 }
  0x61   : > { %5622 = vmatprep.subr.mxu1 %v9815_v3  ;;  %5385 = vmatprep.subr.mxu0 %v9815_v3 }
  0x62   : > { %4954 = vmatmul.mubr.f32.gmra.mxu0 %v455_v36  ;;  %5187 = vmatmul.mubr.f32.gmra.mxu1 %v6928_v44  ;;  %v183_v36 = vld [vmem:[%s6651_s23 + $0x90] sm:$0xff]  ;;  %v9631_v44 = vand.u32 4294901760, %v7061_v61  ;;  %9928 = vst [vmem:[#allocation37_spill] sm:$0xff] %v7108_v41 }
  0x63   : > { %4956 = vmatprep.mubr.msk.f32.mxu0 %vm6499_vm0, %v9815_v3  ;;  %5189 = vmatprep.mubr.msk.f32.mxu1 %vm6499_vm0, %v9815_v3  ;;  %v7080_v42 = vand.u32 4294901760, %v183_v36 }
  0x64   : > { %5623 = vmatpush3.msra.mxu1 %v6670_v45  ;;  %5386 = vmatpush3.msra.mxu0 %v6726_v9  ;;  %v494_v50 = vsub.f32 %v7061_v61, %v9631_v44  ;;  %v186_v61 = vld [vmem:[%s6651_s23 + $0xa8] sm:$0xff] }
  0x65   : > { %5624 = vmatprep.subr.mxu1 %v9815_v3  ;;  %5387 = vmatprep.subr.mxu0 %v9815_v3  ;;  %9925 = vst [vmem:[#allocation34_spill] sm:$0xff] %v7080_v42 }
  0x66   : > { %4957 = vmatmul.mubr.f32.gmra.mxu0 %v465_v53  ;;  %5190 = vmatmul.mubr.f32.gmra.mxu1 %v6947_v22  ;;  %v9636_v53 = vand.u32 4294901760, %v7071_v24  ;;  %v7097_v22 = vsub.f32 %v183_v36, %v7080_v42  ;;  %v495_v36 = vand.u32 4294901760, %v494_v50  ;;  %v7127_v50 = vand.u32 4294901760, %v186_v61 }
  0x67   : > { %4959 = vmatprep.mubr.msk.f32.mxu0 %vm6499_vm0, %v9815_v3  ;;  %5192 = vmatprep.mubr.msk.f32.mxu1 %vm6499_vm0, %v9815_v3 }
  0x68   : > { %5625 = vmatpush3.msra.mxu1 %v6686_v52  ;;  %5388 = vmatpush3.msra.mxu0 %v6743_v33  ;;  %9926 = vst [vmem:[#allocation35_spill] sm:$0xff] %v7097_v22  ;;  %v9641_v44 = vand.u32 4294901760, %v7097_v22  ;;  %9930 = vst [vmem:[#allocation39_spill] sm:$0xff] %v7127_v50 }
  0x69   : > { %5626 = vmatprep.subr.mxu1 %v9815_v3  ;;  %5389 = vmatprep.subr.mxu0 %v9815_v3 }
  0x6a   : > { %4960 = vmatmul.mubr.f32.gmra.mxu0 %v475_v19  ;;  %5193 = vmatmul.mubr.f32.gmra.mxu1 %v6956_v60  ;;  %v504_v19 = vsub.f32 %v7071_v24, %v9636_v53  ;;  %v7118_v60 = vsub.f32 %v184_v2, %v7099_v32  ;;  %v187_v24 = vld [vmem:[%s6651_s23 + $0xb0] sm:$0xff] }
  0x6b   : > { %4962 = vmatprep.mubr.msk.f32.mxu0 %vm6499_vm0, %v9815_v3  ;;  %5195 = vmatprep.mubr.msk.f32.mxu1 %vm6499_vm0, %v9815_v3 }
  0x6c   : > { %5627 = vmatpush3.msra.mxu1 %v6703_v59  ;;  %5390 = vmatpush3.msra.mxu0 %v6751_v38  ;;  %9929 = vst [vmem:[#allocation38_spill] sm:$0xff] %v7118_v60  ;;  %v505_v2 = vand.u32 4294901760, %v504_v19  ;;  %v9644_v53 = vand.u32 4294901760, %v7118_v60 }
  0x6d   : > { %5628 = vmatprep.subr.mxu1 %v9815_v3  ;;  %5391 = vmatprep.subr.mxu0 %v9815_v3 }
  0x6e   : > { %4963 = vmatmul.mubr.f32.gmra.mxu0 %v485_v49  ;;  %5196 = vmatmul.mubr.f32.gmra.mxu1 %v6975_v8  ;;  %v514_v49 = vsub.f32 %v7097_v22, %v9641_v44  ;;  %v7137_v8 = vsub.f32 %v185_v54, %v7108_v41  ;;  %v524_v19 = vsub.f32 %v7118_v60, %v9644_v53  ;;  %v190_v22 = vld [vmem:[%s6651_s23 + $0xc8] sm:$0xff] }
  0x6f   : > { %4965 = vmatprep.mubr.msk.f32.mxu0 %vm6499_vm0, %v9815_v3  ;;  %5198 = vmatprep.mubr.msk.f32.mxu1 %vm6499_vm0, %v9815_v3 }
  0x70   : > { %5629 = vmatpush3.msra.mxu1 %v6715_v1  ;;  %5392 = vmatpush3.msra.mxu0 %v6772_v56  ;;  %9931 = vst [vmem:[#allocation40_spill] sm:$0xff] %v7137_v8  ;;  %v515_v54 = vand.u32 4294901760, %v514_v49  ;;  %v9649_v44 = vand.u32 4294901760, %v7137_v8 }
  0x71   : > { %5630 = vmatprep.subr.mxu1 %v9815_v3  ;;  %5393 = vmatprep.subr.mxu0 %v9815_v3 }
  0x72   : > { %4966 = vmatmul.mubr.f32.gmra.mxu0 %v495_v36  ;;  %5199 = vmatmul.mubr.f32.gmra.mxu1 %v6994_v7  ;;  %v7146_v36 = vand.u32 4294901760, %v187_v24  ;;  %v7156_v7 = vsub.f32 %v186_v61, %v7127_v50  ;;  %v525_v61 = vand.u32 4294901760, %v524_v19  ;;  %v534_v53 = vsub.f32 %v7137_v8, %v9649_v44 }
  0x73   : > { %4968 = vmatprep.mubr.msk.f32.mxu0 %vm6499_vm0, %v9815_v3  ;;  %5201 = vmatprep.mubr.msk.f32.mxu1 %vm6499_vm0, %v9815_v3 }
  0x74   : > { %5631 = vmatpush3.msra.mxu1 %v6733_v14  ;;  %5394 = vmatpush3.msra.mxu0 %v6786_v29  ;;  %9932 = vst [vmem:[#allocation41_spill] sm:$0xff] %v7146_v36  ;;  %9933 = vst [vmem:[#allocation42_spill] sm:$0xff] %v7156_v7  ;;  %v7165_v49 = vsub.f32 %v187_v24, %v7146_v36  ;;  %v189_v24 = vld [vmem:[%s6651_s23 + $0xc0] sm:$0xff]  ;;  %v535_v19 = vand.u32 4294901760, %v534_v53 }
  0x75   : > { %5632 = vmatprep.subr.mxu1 %v9815_v3  ;;  %5841 = vmatprep.subr.mxu0 %v9815_v3  ;;  %v7188_v8 = vand.u32 4294901760, %v189_v24 }
  0x76   : > { %4969 = vmatmul.mubr.f32.gmra.mxu0 %v505_v2  ;;  %5202 = vmatmul.mubr.f32.gmra.mxu1 %v7023_v57  ;;  %v188_v2 = vld [vmem:[%s6651_s23 + $0xb8] sm:$0xff]  ;;  %9934 = vst [vmem:[#allocation43_spill] sm:$0xff] %v7165_v49  ;;  %v9656_v57 = vand.u32 4294901760, %v7156_v7 }
  0x77   : > { %4971 = vmatprep.mubr.msk.f32.mxu0 %vm6499_vm0, %v9815_v3  ;;  %5204 = vmatprep.mubr.msk.f32.mxu1 %vm6499_vm0, %v9815_v3  ;;  %v7173_v60 = vand.u32 4294901760, %v188_v2  ;;  %9937 = vst [vmem:[#allocation46_spill] sm:$0xff] %v7188_v8 }
  0x78   : > { %5633 = vmatpush3.msra.mxu1 %v6748_v37  ;;  %v544_v44 = vsub.f32 %v7156_v7, %v9656_v57  ;;  %v193_v7 = vld [vmem:[%s6651_s23 + $0xe0] sm:$0xff]  ;;  %v219_v37 = vld [vmem:[%s6651_s23 + $0x1b0] sm:$0xff] }
  0x79   : > { %6080 = vmatprep.subr.mxu1 %v9815_v3  ;;  %9935 = vst [vmem:[#allocation44_spill] sm:$0xff] %v7173_v60 }
  0x7a   : > { %4972 = vmatmul.mubr.f32.gmra.mxu0 %v515_v54  ;;  %5205 = vmatmul.mubr.f32.gmra.mxu1 %v7042_v28  ;;  %v9661_v54 = vand.u32 4294901760, %v7165_v49  ;;  %v7186_v28 = vsub.f32 %v188_v2, %v7173_v60  ;;  %v545_v53 = vand.u32 4294901760, %v544_v44 }
  0x7b   : > { %4974 = vmatprep.mubr.msk.f32.mxu0 %vm6499_vm0, %v9815_v3  ;;  %5207 = vmatprep.mubr.msk.f32.mxu1 %vm6499_vm0, %v9815_v3 }
  0x7c   : > { %9936 = vst [vmem:[#allocation45_spill] sm:$0xff] %v7186_v28  ;;  %v554_v2 = vsub.f32 %v7165_v49, %v9661_v54  ;;  %v9664_v57 = vand.u32 4294901760, %v7186_v28 }
  0x7e   : > { %4975 = vmatmul.mubr.f32.gmra.mxu0 %v525_v61  ;;  %5208 = vmatmul.mubr.f32.gmra.mxu1 %v7051_v35  ;;  %v7195_v61 = vand.u32 4294901760, %v190_v22  ;;  %v7203_v35 = vsub.f32 %v189_v24, %v7188_v8  ;;  %v555_v44 = vand.u32 4294901760, %v554_v2  ;;  %v564_v24 = vsub.f32 %v7186_v28, %v9664_v57 }
  0x7f   : > { %4977 = vmatprep.mubr.msk.f32.mxu0 %vm6499_vm0, %v9815_v3  ;;  %5210 = vmatprep.mubr.msk.f32.mxu1 %vm6499_vm0, %v9815_v3 }
  0x80   : > { %9938 = vst [vmem:[#allocation47_spill] sm:$0xff] %v7195_v61  ;;  %9939 = vst [vmem:[#allocation48_spill] sm:$0xff] %v7203_v35  ;;  %v9671_v54 = vand.u32 4294901760, %v7203_v35  ;;  %v565_v2 = vand.u32 4294901760, %v564_v24 }
  0x82   : > { %4978 = vmatmul.mubr.f32.gmra.mxu0 %v535_v19  ;;  %5211 = vmatmul.mubr.f32.gmra.mxu1 %v7080_v42  ;;  %v191_v19 = vld [vmem:[%s6651_s23 + $0xd0] sm:$0xff]  ;;  %v7211_v42 = vsub.f32 %v190_v22, %v7195_v61  ;;  %v192_v22 = vld [vmem:[%s6651_s23 + $0xd8] sm:$0xff]  ;;  %v574_v57 = vsub.f32 %v7203_v35, %v9671_v54  ;;  %v194_v35 = vld [vmem:[%s6651_s23 + $0xe8] sm:$0xff] }
  0x83   : > { %4980 = vmatprep.mubr.msk.f32.mxu0 %vm6499_vm0, %v9815_v3  ;;  %5213 = vmatprep.mubr.msk.f32.mxu1 %vm6499_vm0, %v9815_v3  ;;  %v7218_v49 = vand.u32 4294901760, %v191_v19  ;;  %v7233_v28 = vand.u32 4294901760, %v192_v22 }
  0x84   : > { %9940 = vst [vmem:[#allocation49_spill] sm:$0xff] %v7211_v42  ;;  %v575_v24 = vand.u32 4294901760, %v574_v57 }
  0x85   : > { %9941 = vst [vmem:[#allocation50_spill] sm:$0xff] %v7218_v49  ;;  %9943 = vst [vmem:[#allocation52_spill] sm:$0xff] %v7233_v28 }
  0x86   : > { %4981 = vmatmul.mubr.f32.gmra.mxu0 %v545_v53  ;;  %5214 = vmatmul.mubr.f32.gmra.mxu1 %v7099_v32  ;;  %v9676_v53 = vand.u32 4294901760, %v7211_v42  ;;  %v7231_v32 = vsub.f32 %v191_v19, %v7218_v49 }
  0x87   : > { %4983 = vmatprep.mubr.msk.f32.mxu0 %vm6499_vm0, %v9815_v3  ;;  %5216 = vmatprep.mubr.msk.f32.mxu1 %vm6499_vm0, %v9815_v3 }
  0x88   : > { %9942 = vst [vmem:[#allocation51_spill] sm:$0xff] %v7231_v32  ;;  %v584_v19 = vsub.f32 %v7211_v42, %v9676_v53  ;;  %v9681_v54 = vand.u32 4294901760, %v7231_v32  ;;  %v195_v42 = vld [vmem:[%s6651_s23 + $0xf0] sm:$0xff] }
  0x8a   : > { %4984 = vmatmul.mubr.f32.gmra.mxu0 %v555_v44  ;;  %5217 = vmatmul.mubr.f32.gmra.mxu1 %v7108_v41  ;;  %v7240_v44 = vand.u32 4294901760, %v193_v7  ;;  %v7248_v41 = vsub.f32 %v192_v22, %v7233_v28  ;;  %v585_v57 = vand.u32 4294901760, %v584_v19  ;;  %v594_v53 = vsub.f32 %v7231_v32, %v9681_v54  ;;  %v198_v32 = vld [vmem:[%s6651_s23 + $0x108] sm:$0xff] }
  0x8b   : > { %4986 = vmatprep.mubr.msk.f32.mxu0 %vm6499_vm0, %v9815_v3  ;;  %5219 = vmatprep.mubr.msk.f32.mxu1 %vm6499_vm0, %v9815_v3 }
  0x8c   : > { %9944 = vst [vmem:[#allocation53_spill] sm:$0xff] %v7240_v44  ;;  %9945 = vst [vmem:[#allocation54_spill] sm:$0xff] %v7248_v41  ;;  %v9686_v22 = vand.u32 4294901760, %v7248_v41  ;;  %v595_v19 = vand.u32 4294901760, %v594_v53 }
  0x8e   : > { %4987 = vmatmul.mubr.f32.gmra.mxu0 %v565_v2  ;;  %5220 = vmatmul.mubr.f32.gmra.mxu1 %v7127_v50  ;;  %v7255_v2 = vand.u32 4294901760, %v194_v35  ;;  %v7263_v50 = vsub.f32 %v193_v7, %v7240_v44  ;;  %v604_v54 = vsub.f32 %v7248_v41, %v9686_v22 }
  0x8f   : > { %4989 = vmatprep.mubr.msk.f32.mxu0 %vm6499_vm0, %v9815_v3  ;;  %5222 = vmatprep.mubr.msk.f32.mxu1 %vm6499_vm0, %v9815_v3 }
  0x90   : > { %9946 = vst [vmem:[#allocation55_spill] sm:$0xff] %v7255_v2  ;;  %9947 = vst [vmem:[#allocation56_spill] sm:$0xff] %v7263_v50  ;;  %v9689_v7 = vand.u32 4294901760, %v7263_v50  ;;  %v605_v53 = vand.u32 4294901760, %v604_v54 }
  0x92   : > { %4990 = vmatmul.mubr.f32.gmra.mxu0 %v575_v24  ;;  %5223 = vmatmul.mubr.f32.gmra.mxu1 %v7146_v36  ;;  %v7270_v24 = vand.u32 4294901760, %v195_v42  ;;  %v7278_v36 = vsub.f32 %v194_v35, %v7255_v2  ;;  %v614_v35 = vsub.f32 %v7263_v50, %v9689_v7 }
  0x93   : > { %4992 = vmatprep.mubr.msk.f32.mxu0 %vm6499_vm0, %v9815_v3  ;;  %5225 = vmatprep.mubr.msk.f32.mxu1 %vm6499_vm0, %v9815_v3 }
  0x94   : > { %9948 = vst [vmem:[#allocation57_spill] sm:$0xff] %v7270_v24  ;;  %9949 = vst [vmem:[#allocation58_spill] sm:$0xff] %v7278_v36  ;;  %v9696_v22 = vand.u32 4294901760, %v7278_v36  ;;  %v615_v54 = vand.u32 4294901760, %v614_v35 }
  0x96   : > { %4993 = vmatmul.mubr.f32.gmra.mxu0 %v585_v57  ;;  %5226 = vmatmul.mubr.f32.gmra.mxu1 %v7173_v60  ;;  %v196_v57 = vld [vmem:[%s6651_s23 + $0xf8] sm:$0xff]  ;;  %v7286_v60 = vsub.f32 %v195_v42, %v7270_v24  ;;  %v197_v42 = vld [vmem:[%s6651_s23 + $0x100] sm:$0xff]  ;;  %v624_v7 = vsub.f32 %v7278_v36, %v9696_v22 }
  0x97   : > { %4995 = vmatprep.mubr.msk.f32.mxu0 %vm6499_vm0, %v9815_v3  ;;  %5228 = vmatprep.mubr.msk.f32.mxu1 %vm6499_vm0, %v9815_v3  ;;  %v7293_v41 = vand.u32 4294901760, %v196_v57  ;;  %v7308_v50 = vand.u32 4294901760, %v197_v42  ;;  %v201_v36 = vld [vmem:[%s6651_s23 + $0x120] sm:$0xff] }
  0x98   : > { %9950 = vst [vmem:[#allocation59_spill] sm:$0xff] %v7286_v60  ;;  %v625_v35 = vand.u32 4294901760, %v624_v7 }
  0x99   : > { %9951 = vst [vmem:[#allocation60_spill] sm:$0xff] %v7293_v41  ;;  %9953 = vst [vmem:[#allocation62_spill] sm:$0xff] %v7308_v50 }
  0x9a   : > { %4996 = vmatmul.mubr.f32.gmra.mxu0 %v595_v19  ;;  %5229 = vmatmul.mubr.f32.gmra.mxu1 %v7188_v8  ;;  %v9701_v19 = vand.u32 4294901760, %v7286_v60  ;;  %v7306_v8 = vsub.f32 %v196_v57, %v7293_v41 }
  0x9b   : > { %4998 = vmatprep.mubr.msk.f32.mxu0 %vm6499_vm0, %v9815_v3  ;;  %5231 = vmatprep.mubr.msk.f32.mxu1 %vm6499_vm0, %v9815_v3 }
  0x9c   : > { %9952 = vst [vmem:[#allocation61_spill] sm:$0xff] %v7306_v8  ;;  %v634_v57 = vsub.f32 %v7286_v60, %v9701_v19  ;;  %v9704_v22 = vand.u32 4294901760, %v7306_v8 }
  0x9e   : > { %4999 = vmatmul.mubr.f32.gmra.mxu0 %v605_v53  ;;  %5232 = vmatmul.mubr.f32.gmra.mxu1 %v7195_v61  ;;  %v7315_v53 = vand.u32 4294901760, %v198_v32  ;;  %v7323_v61 = vsub.f32 %v197_v42, %v7308_v50  ;;  %v635_v7 = vand.u32 4294901760, %v634_v57  ;;  %v644_v42 = vsub.f32 %v7306_v8, %v9704_v22 }
  0x9f   : > { %5001 = vmatprep.mubr.msk.f32.mxu0 %vm6499_vm0, %v9815_v3  ;;  %5234 = vmatprep.mubr.msk.f32.mxu1 %vm6499_vm0, %v9815_v3 }
  0xa0   : > { %9954 = vst [vmem:[#allocation63_spill] sm:$0xff] %v7315_v53  ;;  %9955 = vst [vmem:[#allocation64_spill] sm:$0xff] %v7323_v61  ;;  %v9711_v19 = vand.u32 4294901760, %v7323_v61  ;;  %v645_v57 = vand.u32 4294901760, %v644_v42 }
  0xa2   : > { %5002 = vmatmul.mubr.f32.gmra.mxu0 %v615_v54  ;;  %5235 = vmatmul.mubr.f32.gmra.mxu1 %v7218_v49  ;;  %v199_v54 = vld [vmem:[%s6651_s23 + $0x110] sm:$0xff]  ;;  %v7331_v49 = vsub.f32 %v198_v32, %v7315_v53  ;;  %v200_v32 = vld [vmem:[%s6651_s23 + $0x118] sm:$0xff]  ;;  %v654_v22 = vsub.f32 %v7323_v61, %v9711_v19  ;;  %v202_v61 = vld [vmem:[%s6651_s23 + $0x128] sm:$0xff] }
  0xa3   : > { %5004 = vmatprep.mubr.msk.f32.mxu0 %vm6499_vm0, %v9815_v3  ;;  %5237 = vmatprep.mubr.msk.f32.mxu1 %vm6499_vm0, %v9815_v3  ;;  %v7338_v60 = vand.u32 4294901760, %v199_v54  ;;  %v7353_v8 = vand.u32 4294901760, %v200_v32 }
  0xa4   : > { %9956 = vst [vmem:[#allocation65_spill] sm:$0xff] %v7331_v49  ;;  %v655_v42 = vand.u32 4294901760, %v654_v22 }
  0xa5   : > { %9957 = vst [vmem:[#allocation66_spill] sm:$0xff] %v7338_v60  ;;  %9959 = vst [vmem:[#allocation68_spill] sm:$0xff] %v7353_v8 }
  0xa6   : > { %5005 = vmatmul.mubr.f32.gmra.mxu0 %v625_v35  ;;  %5238 = vmatmul.mubr.f32.gmra.mxu1 %v7233_v28  ;;  %v9716_v35 = vand.u32 4294901760, %v7331_v49  ;;  %v7351_v28 = vsub.f32 %v199_v54, %v7338_v60 }
  0xa7   : > { %5007 = vmatprep.mubr.msk.f32.mxu0 %vm6499_vm0, %v9815_v3  ;;  %5240 = vmatprep.mubr.msk.f32.mxu1 %vm6499_vm0, %v9815_v3 }
  0xa8   : > { %9958 = vst [vmem:[#allocation67_spill] sm:$0xff] %v7351_v28  ;;  %v664_v54 = vsub.f32 %v7331_v49, %v9716_v35  ;;  %v9721_v19 = vand.u32 4294901760, %v7351_v28  ;;  %v203_v49 = vld [vmem:[%s6651_s23 + $0x130] sm:$0xff] }
  0xaa   : > { %5008 = vmatmul.mubr.f32.gmra.mxu0 %v635_v7  ;;  %5241 = vmatmul.mubr.f32.gmra.mxu1 %v7240_v44  ;;  %v7360_v7 = vand.u32 4294901760, %v201_v36  ;;  %v7368_v44 = vsub.f32 %v200_v32, %v7353_v8  ;;  %v665_v22 = vand.u32 4294901760, %v664_v54  ;;  %v674_v35 = vsub.f32 %v7351_v28, %v9721_v19  ;;  %v206_v28 = vld [vmem:[%s6651_s23 + $0x148] sm:$0xff] }
  0xab   : > { %5010 = vmatprep.mubr.msk.f32.mxu0 %vm6499_vm0, %v9815_v3  ;;  %5243 = vmatprep.mubr.msk.f32.mxu1 %vm6499_vm0, %v9815_v3 }
  0xac   : > { %9960 = vst [vmem:[#allocation69_spill] sm:$0xff] %v7360_v7  ;;  %9961 = vst [vmem:[#allocation70_spill] sm:$0xff] %v7368_v44  ;;  %v9726_v32 = vand.u32 4294901760, %v7368_v44  ;;  %v675_v54 = vand.u32 4294901760, %v674_v35 }
  0xae   : > { %5011 = vmatmul.mubr.f32.gmra.mxu0 %v645_v57  ;;  %5244 = vmatmul.mubr.f32.gmra.mxu1 %v7255_v2  ;;  %v7375_v57 = vand.u32 4294901760, %v202_v61  ;;  %v7383_v2 = vsub.f32 %v201_v36, %v7360_v7  ;;  %v684_v19 = vsub.f32 %v7368_v44, %v9726_v32 }
  0xaf   : > { %5013 = vmatprep.mubr.msk.f32.mxu0 %vm6499_vm0, %v9815_v3  ;;  %5246 = vmatprep.mubr.msk.f32.mxu1 %vm6499_vm0, %v9815_v3 }
  0xb0   : > { %9962 = vst [vmem:[#allocation71_spill] sm:$0xff] %v7375_v57  ;;  %9963 = vst [vmem:[#allocation72_spill] sm:$0xff] %v7383_v2  ;;  %v9729_v36 = vand.u32 4294901760, %v7383_v2  ;;  %v685_v35 = vand.u32 4294901760, %v684_v19 }
  0xb2   : > { %5014 = vmatmul.mubr.f32.gmra.mxu0 %v655_v42  ;;  %5247 = vmatmul.mubr.f32.gmra.mxu1 %v7270_v24  ;;  %v7390_v42 = vand.u32 4294901760, %v203_v49  ;;  %v7398_v24 = vsub.f32 %v202_v61, %v7375_v57  ;;  %v694_v61 = vsub.f32 %v7383_v2, %v9729_v36 }
  0xb3   : > { %5016 = vmatprep.mubr.msk.f32.mxu0 %vm6499_vm0, %v9815_v3  ;;  %5249 = vmatprep.mubr.msk.f32.mxu1 %vm6499_vm0, %v9815_v3 }
  0xb4   : > { %9964 = vst [vmem:[#allocation73_spill] sm:$0xff] %v7390_v42  ;;  %9965 = vst [vmem:[#allocation74_spill] sm:$0xff] %v7398_v24  ;;  %v9736_v32 = vand.u32 4294901760, %v7398_v24  ;;  %v695_v19 = vand.u32 4294901760, %v694_v61 }
  0xb6   : > { %5017 = vmatmul.mubr.f32.gmra.mxu0 %v665_v22  ;;  %5250 = vmatmul.mubr.f32.gmra.mxu1 %v7293_v41  ;;  %v204_v22 = vld [vmem:[%s6651_s23 + $0x138] sm:$0xff]  ;;  %v7406_v41 = vsub.f32 %v203_v49, %v7390_v42  ;;  %v205_v49 = vld [vmem:[%s6651_s23 + $0x140] sm:$0xff]  ;;  %v704_v36 = vsub.f32 %v7398_v24, %v9736_v32 }
  0xb7   : > { %5019 = vmatprep.mubr.msk.f32.mxu0 %vm6499_vm0, %v9815_v3  ;;  %5252 = vmatprep.mubr.msk.f32.mxu1 %vm6499_vm0, %v9815_v3  ;;  %v7413_v44 = vand.u32 4294901760, %v204_v22  ;;  %v7428_v2 = vand.u32 4294901760, %v205_v49  ;;  %v209_v24 = vld [vmem:[%s6651_s23 + $0x160] sm:$0xff] }
  0xb8   : > { %9966 = vst [vmem:[#allocation75_spill] sm:$0xff] %v7406_v41  ;;  %v705_v61 = vand.u32 4294901760, %v704_v36 }
  0xb9   : > { %9967 = vst [vmem:[#allocation76_spill] sm:$0xff] %v7413_v44  ;;  %9969 = vst [vmem:[#allocation78_spill] sm:$0xff] %v7428_v2 }
  0xba   : > { %5020 = vmatmul.mubr.f32.gmra.mxu0 %v675_v54  ;;  %5253 = vmatmul.mubr.f32.gmra.mxu1 %v7308_v50  ;;  %v9741_v54 = vand.u32 4294901760, %v7406_v41  ;;  %v7426_v50 = vsub.f32 %v204_v22, %v7413_v44 }
  0xbb   : > { %5022 = vmatprep.mubr.msk.f32.mxu0 %vm6499_vm0, %v9815_v3  ;;  %5255 = vmatprep.mubr.msk.f32.mxu1 %vm6499_vm0, %v9815_v3 }
  0xbc   : > { %9968 = vst [vmem:[#allocation77_spill] sm:$0xff] %v7426_v50  ;;  %v714_v22 = vsub.f32 %v7406_v41, %v9741_v54  ;;  %v9744_v32 = vand.u32 4294901760, %v7426_v50 }
  0xbe   : > { %5023 = vmatmul.mubr.f32.gmra.mxu0 %v685_v35  ;;  %5256 = vmatmul.mubr.f32.gmra.mxu1 %v7315_v53  ;;  %v7435_v35 = vand.u32 4294901760, %v206_v28  ;;  %v7443_v53 = vsub.f32 %v205_v49, %v7428_v2  ;;  %v715_v36 = vand.u32 4294901760, %v714_v22  ;;  %v724_v49 = vsub.f32 %v7426_v50, %v9744_v32 }
  0xbf   : > { %5025 = vmatprep.mubr.msk.f32.mxu0 %vm6499_vm0, %v9815_v3  ;;  %5258 = vmatprep.mubr.msk.f32.mxu1 %vm6499_vm0, %v9815_v3 }
  0xc0   : > { %9970 = vst [vmem:[#allocation79_spill] sm:$0xff] %v7435_v35  ;;  %9971 = vst [vmem:[#allocation80_spill] sm:$0xff] %v7443_v53  ;;  %v9751_v54 = vand.u32 4294901760, %v7443_v53  ;;  %v725_v22 = vand.u32 4294901760, %v724_v49 }
  0xc2   : > { %5026 = vmatmul.mubr.f32.gmra.mxu0 %v695_v19  ;;  %5259 = vmatmul.mubr.f32.gmra.mxu1 %v7338_v60  ;;  %v207_v19 = vld [vmem:[%s6651_s23 + $0x150] sm:$0xff]  ;;  %v7451_v60 = vsub.f32 %v206_v28, %v7435_v35  ;;  %v208_v28 = vld [vmem:[%s6651_s23 + $0x158] sm:$0xff]  ;;  %v734_v32 = vsub.f32 %v7443_v53, %v9751_v54  ;;  %v213_v53 = vld [vmem:[%s6651_s23 + $0x180] sm:$0xff] }
  0xc3   : > { %5028 = vmatprep.mubr.msk.f32.mxu0 %vm6499_vm0, %v9815_v3  ;;  %5261 = vmatprep.mubr.msk.f32.mxu1 %vm6499_vm0, %v9815_v3  ;;  %v7458_v41 = vand.u32 4294901760, %v207_v19  ;;  %v7473_v50 = vand.u32 4294901760, %v208_v28 }
  0xc4   : > { %9972 = vst [vmem:[#allocation81_spill] sm:$0xff] %v7451_v60  ;;  %v735_v49 = vand.u32 4294901760, %v734_v32 }
  0xc5   : > { %9973 = vst [vmem:[#allocation82_spill] sm:$0xff] %v7458_v41  ;;  %9975 = vst [vmem:[#allocation84_spill] sm:$0xff] %v7473_v50 }
  0xc6   : > { %5029 = vmatmul.mubr.f32.gmra.mxu0 %v705_v61  ;;  %5262 = vmatmul.mubr.f32.gmra.mxu1 %v7353_v8  ;;  %v9756_v61 = vand.u32 4294901760, %v7451_v60  ;;  %v7471_v8 = vsub.f32 %v207_v19, %v7458_v41 }
  0xc7   : > { %5031 = vmatprep.mubr.msk.f32.mxu0 %vm6499_vm0, %v9815_v3  ;;  %5264 = vmatprep.mubr.msk.f32.mxu1 %vm6499_vm0, %v9815_v3 }
  0xc8   : > { %9974 = vst [vmem:[#allocation83_spill] sm:$0xff] %v7471_v8  ;;  %v744_v19 = vsub.f32 %v7451_v60, %v9756_v61  ;;  %v9759_v54 = vand.u32 4294901760, %v7471_v8 }
  0xca   : > { %5032 = vmatmul.mubr.f32.gmra.mxu0 %v715_v36  ;;  %5265 = vmatmul.mubr.f32.gmra.mxu1 %v7360_v7  ;;  %v7480_v36 = vand.u32 4294901760, %v209_v24  ;;  %v7488_v7 = vsub.f32 %v208_v28, %v7473_v50  ;;  %v745_v32 = vand.u32 4294901760, %v744_v19  ;;  %v754_v28 = vsub.f32 %v7471_v8, %v9759_v54 }
  0xcb   : > { %5034 = vmatprep.mubr.msk.f32.mxu0 %vm6499_vm0, %v9815_v3  ;;  %5267 = vmatprep.mubr.msk.f32.mxu1 %vm6499_vm0, %v9815_v3 }
  0xcc   : > { %9976 = vst [vmem:[#allocation85_spill] sm:$0xff] %v7480_v36  ;;  %9977 = vst [vmem:[#allocation86_spill] sm:$0xff] %v7488_v7  ;;  %v9764_v61 = vand.u32 4294901760, %v7488_v7  ;;  %v755_v19 = vand.u32 4294901760, %v754_v28 }
  0xce   : > { %5035 = vmatmul.mubr.f32.gmra.mxu0 %v725_v22  ;;  %5268 = vmatmul.mubr.f32.gmra.mxu1 %v7375_v57  ;;  %v210_v22 = vld [vmem:[%s6651_s23 + $0x168] sm:$0xff]  ;;  %v7496_v57 = vsub.f32 %v209_v24, %v7480_v36  ;;  %v211_v24 = vld [vmem:[%s6651_s23 + $0x170] sm:$0xff]  ;;  %v764_v54 = vsub.f32 %v7488_v7, %v9764_v61 }
  0xcf   : > { %5037 = vmatprep.mubr.msk.f32.mxu0 %vm6499_vm0, %v9815_v3  ;;  %5270 = vmatprep.mubr.msk.f32.mxu1 %vm6499_vm0, %v9815_v3  ;;  %v7503_v60 = vand.u32 4294901760, %v210_v22  ;;  %v7518_v8 = vand.u32 4294901760, %v211_v24 }
  0xd0   : > { %9978 = vst [vmem:[#allocation87_spill] sm:$0xff] %v7496_v57  ;;  %v765_v61 = vand.u32 4294901760, %v764_v54 }
  0xd1   : > { %9979 = vst [vmem:[#allocation88_spill] sm:$0xff] %v7503_v60  ;;  %9981 = vst [vmem:[#allocation90_spill] sm:$0xff] %v7518_v8 }
  0xd2   : > { %5038 = vmatmul.mubr.f32.gmra.mxu0 %v735_v49  ;;  %5271 = vmatmul.mubr.f32.gmra.mxu1 %v7390_v42  ;;  %v9771_v49 = vand.u32 4294901760, %v7496_v57  ;;  %v7516_v42 = vsub.f32 %v210_v22, %v7503_v60 }
  0xd3   : > { %5040 = vmatprep.mubr.msk.f32.mxu0 %vm6499_vm0, %v9815_v3  ;;  %5273 = vmatprep.mubr.msk.f32.mxu1 %vm6499_vm0, %v9815_v3 }
  0xd4   : > { %9980 = vst [vmem:[#allocation89_spill] sm:$0xff] %v7516_v42  ;;  %v774_v28 = vsub.f32 %v7496_v57, %v9771_v49  ;;  %v9776_v22 = vand.u32 4294901760, %v7516_v42  ;;  %v214_v57 = vld [vmem:[%s6651_s23 + $0x188] sm:$0xff] }
  0xd6   : > { %5041 = vmatmul.mubr.f32.gmra.mxu0 %v745_v32  ;;  %5274 = vmatmul.mubr.f32.gmra.mxu1 %v7413_v44  ;;  %v212_v32 = vld [vmem:[%s6651_s23 + $0x178] sm:$0xff]  ;;  %v7531_v44 = vsub.f32 %v211_v24, %v7518_v8  ;;  %v775_v49 = vand.u32 4294901760, %v774_v28  ;;  %v784_v54 = vsub.f32 %v7516_v42, %v9776_v22  ;;  %v218_v42 = vld [vmem:[%s6651_s23 + $0x1a8] sm:$0xff] }
  0xd7   : > { %5043 = vmatprep.mubr.msk.f32.mxu0 %vm6499_vm0, %v9815_v3  ;;  %5276 = vmatprep.mubr.msk.f32.mxu1 %vm6499_vm0, %v9815_v3  ;;  %v7533_v7 = vand.u32 4294901760, %v212_v32 }
  0xd8   : > { %9982 = vst [vmem:[#allocation91_spill] sm:$0xff] %v7531_v44  ;;  %v9781_v24 = vand.u32 4294901760, %v7531_v44  ;;  %v785_v28 = vand.u32 4294901760, %v784_v54 }
  0xd9   : > { %9983 = vst [vmem:[#allocation92_spill] sm:$0xff] %v7533_v7 }
  0xda   : > { %5044 = vmatmul.mubr.f32.gmra.mxu0 %v755_v19  ;;  %5277 = vmatmul.mubr.f32.gmra.mxu1 %v7428_v2  ;;  %v7546_v19 = vsub.f32 %v212_v32, %v7533_v7  ;;  %v7548_v2 = vand.u32 4294901760, %v213_v53  ;;  %v794_v32 = vsub.f32 %v7531_v44, %v9781_v24 }
  0xdb   : > { %5046 = vmatprep.mubr.msk.f32.mxu0 %vm6499_vm0, %v9815_v3  ;;  %5279 = vmatprep.mubr.msk.f32.mxu1 %vm6499_vm0, %v9815_v3 }
  0xdc   : > { %9984 = vst [vmem:[#allocation93_spill] sm:$0xff] %v7546_v19  ;;  %9985 = vst [vmem:[#allocation94_spill] sm:$0xff] %v7548_v2  ;;  %v9784_v22 = vand.u32 4294901760, %v7546_v19  ;;  %v795_v54 = vand.u32 4294901760, %v794_v32 }
  0xde   : > { %5047 = vmatmul.mubr.f32.gmra.mxu0 %v765_v61  ;;  %5280 = vmatmul.mubr.f32.gmra.mxu1 %v7435_v35  ;;  %v7555_v61 = vand.u32 4294901760, %v214_v57  ;;  %v7563_v35 = vsub.f32 %v213_v53, %v7548_v2  ;;  %v804_v53 = vsub.f32 %v7546_v19, %v9784_v22 }
  0xdf   : > { %5049 = vmatprep.mubr.msk.f32.mxu0 %vm6499_vm0, %v9815_v3  ;;  %5282 = vmatprep.mubr.msk.f32.mxu1 %vm6499_vm0, %v9815_v3 }
  0xe0   : > { %9986 = vst [vmem:[#allocation95_spill] sm:$0xff] %v7555_v61  ;;  %9987 = vst [vmem:[#allocation96_spill] sm:$0xff] %v7563_v35  ;;  %v9789_v24 = vand.u32 4294901760, %v7563_v35  ;;  %v805_v32 = vand.u32 4294901760, %v804_v53 }
  0xe2   : > { %5050 = vmatmul.mubr.f32.gmra.mxu0 %v775_v49  ;;  %5283 = vmatmul.mubr.f32.gmra.mxu1 %v7458_v41  ;;  %v215_v49 = vld [vmem:[%s6651_s23 + $0x190] sm:$0xff]  ;;  %v7571_v41 = vsub.f32 %v214_v57, %v7555_v61  ;;  %v216_v57 = vld [vmem:[%s6651_s23 + $0x198] sm:$0xff]  ;;  %v814_v22 = vsub.f32 %v7563_v35, %v9789_v24 }
  0xe3   : > { %5052 = vmatprep.mubr.msk.f32.mxu0 %vm6499_vm0, %v9815_v3  ;;  %5285 = vmatprep.mubr.msk.f32.mxu1 %vm6499_vm0, %v9815_v3  ;;  %v7578_v44 = vand.u32 4294901760, %v215_v49  ;;  %v7593_v19 = vand.u32 4294901760, %v216_v57 }
  0xe4   : > { %9988 = vst [vmem:[#allocation97_spill] sm:$0xff] %v7571_v41  ;;  %v815_v24 = vand.u32 4294901760, %v814_v22 }
  0xe5   : > { %9989 = vst [vmem:[#allocation98_spill] sm:$0xff] %v7578_v44  ;;  %9991 = vst [vmem:[#allocation100_spill] sm:$0xff] %v7593_v19 }
  0xe6   : > { %5053 = vmatmul.mubr.f32.gmra.mxu0 %v785_v28  ;;  %5286 = vmatmul.mubr.f32.gmra.mxu1 %v7473_v50  ;;  %v9796_v28 = vand.u32 4294901760, %v7571_v41  ;;  %v7591_v50 = vsub.f32 %v215_v49, %v7578_v44 }
  0xe7   : > { %5055 = vmatprep.mubr.msk.f32.mxu0 %vm6499_vm0, %v9815_v3  ;;  %5288 = vmatprep.mubr.msk.f32.mxu1 %vm6499_vm0, %v9815_v3 }
  0xe8   : > { %9990 = vst [vmem:[#allocation99_spill] sm:$0xff] %v7591_v50  ;;  %v824_v53 = vsub.f32 %v7571_v41, %v9796_v28  ;;  %v9804_v49 = vand.u32 4294901760, %v7591_v50  ;;  %v7623_v41 = vand.u32 4294901760, %v218_v42 }
  0xea   : > { %5056 = vmatmul.mubr.f32.gmra.mxu0 %v795_v54  ;;  %5289 = vmatmul.mubr.f32.gmra.mxu1 %v7480_v36  ;;  %v217_v54 = vld [vmem:[%s6651_s23 + $0x1a0] sm:$0xff]  ;;  %v7606_v36 = vsub.f32 %v216_v57, %v7593_v19  ;;  %v825_v28 = vand.u32 4294901760, %v824_v53  ;;  %v834_v22 = vsub.f32 %v7591_v50, %v9804_v49  ;;  %9995 = vst [vmem:[#allocation104_spill] sm:$0xff] %v7623_v41  ;;  %v7630_v53 = vand.u32 4294901760, %v219_v37 }
  0xeb   : > { %5058 = vmatprep.mubr.msk.f32.mxu0 %vm6499_vm0, %v9815_v3  ;;  %5291 = vmatprep.mubr.msk.f32.mxu1 %vm6499_vm0, %v9815_v3  ;;  %v7608_v35 = vand.u32 4294901760, %v217_v54  ;;  %v7638_v29 = vsub.f32 %v218_v42, %v7623_v41 }
  0xec   : > { %9992 = vst [vmem:[#allocation101_spill] sm:$0xff] %v7606_v36  ;;  %v9810_v57 = vand.u32 4294901760, %v7606_v36  ;;  %9996 = vst [vmem:[#allocation105_spill] sm:$0xff] %v7630_v53  ;;  %v835_v49 = vand.u32 4294901760, %v834_v22  ;;  %v7646_v22 = vsub.f32 %v219_v37, %v7630_v53  ;;  %v221_v37 = vld [vmem:[%s6651_s23 + $0x1c0] sm:$0xff] }
  0xed   : > { %9993 = vst [vmem:[#allocation102_spill] sm:$0xff] %v7608_v35  ;;  %9997 = vst [vmem:[#allocation106_spill] sm:$0xff] %v7638_v29 }
  0xee   : > { %5059 = vmatmul.mubr.f32.gmra.mxu0 %v805_v32  ;;  %5292 = vmatmul.mubr.f32.gmra.mxu1 %v7503_v60  ;;  %v7621_v60 = vsub.f32 %v217_v54, %v7608_v35  ;;  %v844_v54 = vsub.f32 %v7606_v36, %v9810_v57  ;;  %9998 = vst [vmem:[#allocation107_spill] sm:$0xff] %v7646_v22 }
  0xef   : > { %5061 = vmatprep.mubr.msk.f32.mxu0 %vm6499_vm0, %v9815_v3  ;;  %5294 = vmatprep.mubr.msk.f32.mxu1 %vm6499_vm0, %v9815_v3 }
  0xf0   : > { %9994 = vst [vmem:[#allocation103_spill] sm:$0xff] %v7621_v60  ;;  %v845_v50 = vand.u32 4294901760, %v844_v54  ;;  %v9999_v42 = vand.u32 4294901760, %v7621_v60 }
  0xf2   : > { %v337_v32 = vpop.f32.mrf.mxu0  ;;  %5062 = vmatmul.mubr.f32.gmra.mxu0 %v815_v24  ;;  %5295 = vmatmul.mubr.f32.gmra.mxu1 %v7518_v8  ;;  %v854_v36 = vsub.f32 %v7621_v60, %v9999_v42 }
  0xf3   : > { %5064 = vmatprep.mubr.msk.f32.mxu0 %vm6499_vm0, %v9815_v3  ;;  %5297 = vmatprep.mubr.msk.f32.mxu1 %vm6499_vm0, %v9815_v3 }
  0xf4   : > { %v4919_v24 = vpop.f32.mrf.mxu0  ;;  %v855_v14 = vand.u32 4294901760, %v854_v36 }
  0xf6   : > { %v347_v8 = vpop.f32.mrf.mxu0  ;;  %5065 = vmatmul.mubr.f32.gmra.mxu0 %v825_v28  ;;  %5298 = vmatmul.mubr.f32.gmra.mxu1 %v7533_v7  ;;  %v220_v28 = vld [vmem:[%s6651_s23 + $0x1b8] sm:$0xff] }
  0xf7   : > { %5067 = vmatprep.mubr.msk.f32.mxu0 %vm6499_vm0, %v9815_v3  ;;  %5300 = vmatprep.mubr.msk.f32.mxu1 %vm6499_vm0, %v9815_v3  ;;  %v7653_v56 = vand.u32 4294901760, %v220_v28 }
  0xf8   : > { %v4922_v24 = vpop.f32.mrf.mxu0 }
  0xf9   : > { %10000 = vst [vmem:[#allocation108_spill] sm:$0xff] %v7653_v56  ;;  %v10002_v24 = vmov 0.0   ;;  %v7668_v60 = vsub.f32 %v220_v28, %v7653_v56 }
  0xfa   : > { %v357_v7 = vpop.f32.mrf.mxu0  ;;  %5068 = vmatmul.mubr.f32.gmra.mxu0 %v835_v49  ;;  %v1168_v57 = vpop.f32.mrf.mxu1  ;;  %5301 = vmatmul.mubr.f32.gmra.mxu1 %v7548_v2  ;;  %v9827_v2 = vand.u32 4294901760, %v7646_v22 }
  0xfb   : > { %v7655_v3 = vadd.f32 %v1168_v57, %v337_v32  ;;  %5070 = vmatprep.mubr.msk.f32.mxu0 %vm6499_vm0, %v10002_v24  ;;  %5303 = vmatprep.mubr.msk.f32.mxu1 %vm6499_vm0, %v10002_v24  ;;  %v10003_v32 = vand.u32 4294901760, %v7638_v29  ;;  %10004 = vst [vmem:[#allocation110_spill] sm:$0xff] %v7668_v60 }
  0xfc   : > { %v4925_v49 = vpop.f32.mrf.mxu0  ;;  %v5158_v54 = vpop.f32.mrf.mxu1 }
  0xfd   : > { %10001 = vst [vmem:[#allocation109_spill] sm:$0xff] %v7655_v3  ;;  %v864_v57 = vsub.f32 %v7638_v29, %v10003_v32  ;;  %v7670_v3 = vand.u32 4294901760, %v221_v37  ;;  %v874_v54 = vsub.f32 %v7646_v22, %v9827_v2 }
  0xfe   : > { %v367_v1 = vpop.f32.mrf.mxu0  ;;  %5071 = vmatmul.mubr.f32.gmra.mxu0 %v845_v50  ;;  %v1174_v42 = vpop.f32.mrf.mxu1  ;;  %5304 = vmatmul.mubr.f32.gmra.mxu1 %v7555_v61  ;;  %v222_v50 = vld [vmem:[%s6651_s23 + $0x1c8] sm:$0xff] }
  0xff   : > { %10005 = vst [vmem:[#allocation111_spill] sm:$0xff] %v7670_v3  ;;  %v7672_v38 = vadd.f32 %v1174_v42, %v347_v8  ;;  %5073 = vmatprep.mubr.msk.f32.mxu0 %vm6499_vm0, %v10002_v24  ;;  %5306 = vmatprep.mubr.msk.f32.mxu1 %vm6499_vm0, %v10002_v24  ;;  %v865_v8 = vand.u32 4294901760, %v864_v57  ;;  %v7685_v61 = vsub.f32 %v221_v37, %v7670_v3  ;;  %v7687_v29 = vand.u32 4294901760, %v222_v50 }
 0x100   : > { %v4928_v36 = vpop.f32.mrf.mxu0  ;;  %v5161_v49 = vpop.f32.mrf.mxu1  ;;  %v875_v57 = vand.u32 4294901760, %v874_v54  ;;  %v10010_v37 = vand.u32 4294901760, %v7668_v60 }
 0x101   : > { %10006 = vst [vmem:[#allocation112_spill] sm:$0xff] %v7672_v38  ;;  %10007 = vst [vmem:[#allocation113_spill] sm:$0xff] %v7685_v61  ;;  %v7702_v22 = vsub.f32 %v222_v50, %v7687_v29  ;;  %v224_v38 = vld [vmem:[%s6651_s23 + $0x1d8] sm:$0xff] }
 0x102   : > { %v377_v28 = vpop.f32.mrf.mxu0  ;;  %5074 = vmatmul.mubr.f32.gmra.mxu0 %v855_v14  ;;  %v1180_v32 = vpop.f32.mrf.mxu1  ;;  %5307 = vmatmul.mubr.f32.gmra.mxu1 %v7578_v44  ;;  %10008 = vst [vmem:[#allocation114_spill] sm:$0xff] %v7687_v29  ;;  %v223_v14 = vld [vmem:[%s6651_s23 + $0x1d0] sm:$0xff] }
 0x103   : > { %v7689_v36 = vadd.f32 %v1180_v32, %v357_v7  ;;  %5076 = vmatprep.mubr.msk.f32.mxu0 %vm6499_vm0, %v10002_v24  ;;  %5309 = vmatprep.mubr.msk.f32.mxu1 %vm6499_vm0, %v10002_v24  ;;  %v884_v7 = vsub.f32 %v7668_v60, %v10010_v37  ;;  %10011 = vst [vmem:[#allocation116_spill] sm:$0xff] %v7702_v22 }
 0x104   : > { %v4931_v49 = vpop.f32.mrf.mxu0  ;;  %v5164_v2 = vpop.f32.mrf.mxu1 }
 0x105   : > { %10009 = vst [vmem:[#allocation115_spill] sm:$0xff] %v7689_v36  ;;  %v7704_v36 = vand.u32 4294901760, %v223_v14  ;;  %v885_v32 = vand.u32 4294901760, %v884_v7 }
 0x106   : > { %v387_v44 = vpop.f32.mrf.mxu0  ;;  %5077 = vmatmul.mubr.f32.gmra.mxu0 %v865_v8  ;;  %v1186_v42 = vpop.f32.mrf.mxu1  ;;  %5310 = vmatmul.mubr.f32.gmra.mxu1 %v7593_v19  ;;  %v7713_v8 = vand.u32 4294901760, %v224_v38 }
 0x107   : > { %10012 = vst [vmem:[#allocation117_spill] sm:$0xff] %v7704_v36  ;;  %v7707_v49 = vadd.f32 %v1186_v42, %v367_v1  ;;  %5079 = vmatprep.mubr.msk.f32.mxu0 %vm6499_vm0, %v10002_v24  ;;  %5312 = vmatprep.mubr.msk.f32.mxu1 %vm6499_vm0, %v10002_v24  ;;  %v10015_v1 = vand.u32 4294901760, %v7685_v61  ;;  %v7721_v60 = vsub.f32 %v223_v14, %v7704_v36  ;;  %v10019_v14 = vand.u32 4294901760, %v7702_v22 }
 0x108   : > { %v4934_v2 = vpop.f32.mrf.mxu0  ;;  %v5167_v54 = vpop.f32.mrf.mxu1  ;;  %10014 = vst [vmem:[#allocation119_spill] sm:$0xff] %v7713_v8 }
 0x109   : > { %10013 = vst [vmem:[#allocation118_spill] sm:$0xff] %v7707_v49  ;;  %v894_v42 = vsub.f32 %v7685_v61, %v10015_v1  ;;  %10016 = vst [vmem:[#allocation120_spill] sm:$0xff] %v7721_v60  ;;  %v7731_v54 = vsub.f32 %v224_v38, %v7713_v8  ;;  %v226_v38 = vld [vmem:[%s6651_s23 + $0x1e8] sm:$0xff] }
 0x10a   : > { %v397_v37 = vpop.f32.mrf.mxu0  ;;  %5080 = vmatmul.mubr.f32.gmra.mxu0 %v875_v57  ;;  %v1192_v50 = vpop.f32.mrf.mxu1  ;;  %5313 = vmatmul.mubr.f32.gmra.mxu1 %v7608_v35  ;;  %v225_v57 = vld [vmem:[%s6651_s23 + $0x1e0] sm:$0xff] }
 0x10b   : > { %v7723_v49 = vadd.f32 %v1192_v50, %v377_v28  ;;  %5082 = vmatprep.mubr.msk.f32.mxu0 %vm6499_vm0, %v10002_v24  ;;  %5315 = vmatprep.mubr.msk.f32.mxu1 %vm6499_vm0, %v10002_v24  ;;  %10018 = vst [vmem:[#allocation122_spill] sm:$0xff] %v7731_v54  ;;  %v895_v28 = vand.u32 4294901760, %v894_v42  ;;  %v904_v50 = vsub.f32 %v7702_v22, %v10019_v14  ;;  %v7738_v61 = vand.u32 4294901760, %v225_v57 }
 0x10c   : > { %v4937_v7 = vpop.f32.mrf.mxu0  ;;  %v5170_v2 = vpop.f32.mrf.mxu1  ;;  %v7755_v22 = vand.u32 4294901760, %v226_v38 }
 0x10d   : > { %10017 = vst [vmem:[#allocation121_spill] sm:$0xff] %v7723_v49  ;;  %10020 = vst [vmem:[#allocation123_spill] sm:$0xff] %v7738_v61  ;;  %v9848_v7 = vand.u32 4294901760, %v7731_v54  ;;  %v905_v35 = vand.u32 4294901760, %v904_v50 }
 0x10e   : > { %v407_v1 = vpop.f32.mrf.mxu0  ;;  %5083 = vmatmul.mubr.f32.gmra.mxu0 %v885_v32  ;;  %v1198_v19 = vpop.f32.mrf.mxu1  ;;  %5316 = vmatmul.mubr.f32.gmra.mxu1 %v7623_v41  ;;  %v7753_v41 = vsub.f32 %v225_v57, %v7738_v61  ;;  %10024 = vst [vmem:[#allocation126_spill] sm:$0xff] %v7755_v22 }
 0x10f   : > { %v7740_v49 = vadd.f32 %v1198_v19, %v387_v44  ;;  %5085 = vmatprep.mubr.msk.f32.mxu0 %vm6499_vm0, %v10002_v24  ;;  %5318 = vmatprep.mubr.msk.f32.mxu1 %vm6499_vm0, %v10002_v24  ;;  %v10022_v44 = vand.u32 4294901760, %v7721_v60 }
 0x110   : > { %v4940_v32 = vpop.f32.mrf.mxu0  ;;  %v5173_v42 = vpop.f32.mrf.mxu1  ;;  %10023 = vst [vmem:[#allocation125_spill] sm:$0xff] %v7753_v41 }
 0x111   : > { %10021 = vst [vmem:[#allocation124_spill] sm:$0xff] %v7740_v49  ;;  %v914_v19 = vsub.f32 %v7721_v60, %v10022_v44  ;;  %v924_v42 = vsub.f32 %v7731_v54, %v9848_v7 }
 0x112   : > { %v417_v2 = vpop.f32.mrf.mxu0  ;;  %5086 = vmatmul.mubr.f32.gmra.mxu0 %v895_v28  ;;  %v1204_v14 = vpop.f32.mrf.mxu1  ;;  %5319 = vmatmul.mubr.f32.gmra.mxu1 %v7630_v53  ;;  %v227_v28 = vld [vmem:[%s6651_s23 + $0x1f0] sm:$0xff]  ;;  %v7770_v53 = vsub.f32 %v226_v38, %v7755_v22  ;;  %v10029_v38 = vand.u32 4294901760, %v7753_v41 }
 0x113   : > { %v7757_v49 = vadd.f32 %v1204_v14, %v397_v37  ;;  %5088 = vmatprep.mubr.msk.f32.mxu0 %vm6499_vm0, %v10002_v24  ;;  %5321 = vmatprep.mubr.msk.f32.mxu1 %vm6499_vm0, %v10002_v24  ;;  %v915_v37 = vand.u32 4294901760, %v914_v19  ;;  %v7772_v60 = vand.u32 4294901760, %v227_v28  ;;  %v925_v19 = vand.u32 4294901760, %v924_v42 }
 0x114   : > { %v4943_v50 = vpop.f32.mrf.mxu0  ;;  %v5176_v32 = vpop.f32.mrf.mxu1  ;;  %10026 = vst [vmem:[#allocation128_spill] sm:$0xff] %v7770_v53 }
 0x115   : > { %10025 = vst [vmem:[#allocation127_spill] sm:$0xff] %v7757_v49  ;;  %10027 = vst [vmem:[#allocation129_spill] sm:$0xff] %v7772_v60  ;;  %v7787_v54 = vsub.f32 %v227_v28, %v7772_v60  ;;  %v229_v49 = vld [vmem:[%s6651_s23 + $0x200] sm:$0xff] }
 0x116   : > { %v427_v57 = vpop.f32.mrf.mxu0  ;;  %5089 = vmatmul.mubr.f32.gmra.mxu0 %v905_v35  ;;  %v1210_v44 = vpop.f32.mrf.mxu1  ;;  %5322 = vmatmul.mubr.f32.gmra.mxu1 %v7653_v56  ;;  %v228_v35 = vld [vmem:[%s6651_s23 + $0x1f8] sm:$0xff] }
 0x117   : > { %v7774_v50 = vadd.f32 %v1210_v44, %v407_v1  ;;  %5091 = vmatprep.mubr.msk.f32.mxu0 %vm6499_vm0, %v10002_v24  ;;  %5324 = vmatprep.mubr.msk.f32.mxu1 %vm6499_vm0, %v10002_v24  ;;  %v934_v1 = vsub.f32 %v7753_v41, %v10029_v38  ;;  %10030 = vst [vmem:[#allocation131_spill] sm:$0xff] %v7787_v54 }
 0x118   : > { %v4946_v32 = vpop.f32.mrf.mxu0  ;;  %v5179_v7 = vpop.f32.mrf.mxu1 }
 0x119   : > { %10028 = vst [vmem:[#allocation130_spill] sm:$0xff] %v7774_v50  ;;  %v7789_v50 = vand.u32 4294901760, %v228_v35  ;;  %v935_v44 = vand.u32 4294901760, %v934_v1 }
 0x11a   : > { %v437_v56 = vpop.f32.mrf.mxu0  ;;  %5092 = vmatmul.mubr.f32.gmra.mxu0 %v915_v37  ;;  %v1216_v14 = vpop.f32.mrf.mxu1  ;;  %5325 = vmatmul.mubr.f32.gmra.mxu1 %v7670_v3  ;;  %v7798_v37 = vand.u32 4294901760, %v229_v49 }
 0x11b   : > { %10031 = vst [vmem:[#allocation132_spill] sm:$0xff] %v7789_v50  ;;  %v7792_v32 = vadd.f32 %v1216_v14, %v417_v2  ;;  %5094 = vmatprep.mubr.msk.f32.mxu0 %vm6499_vm0, %v10002_v24  ;;  %5327 = vmatprep.mubr.msk.f32.mxu1 %vm6499_vm0, %v10002_v24  ;;  %v10034_v2 = vand.u32 4294901760, %v7770_v53  ;;  %v7806_v41 = vsub.f32 %v228_v35, %v7789_v50  ;;  %v10038_v35 = vand.u32 4294901760, %v7787_v54 }
 0x11c   : > { %v4949_v7 = vpop.f32.mrf.mxu0  ;;  %v5182_v42 = vpop.f32.mrf.mxu1  ;;  %10033 = vst [vmem:[#allocation134_spill] sm:$0xff] %v7798_v37 }
 0x11d   : > { %10032 = vst [vmem:[#allocation133_spill] sm:$0xff] %v7792_v32  ;;  %v944_v14 = vsub.f32 %v7770_v53, %v10034_v2  ;;  %10035 = vst [vmem:[#allocation135_spill] sm:$0xff] %v7806_v41  ;;  %v7816_v42 = vsub.f32 %v229_v49, %v7798_v37  ;;  %v231_v49 = vld [vmem:[%s6651_s23 + $0x210] sm:$0xff] }
 0x11e   : > { %v447_v38 = vpop.f32.mrf.mxu0  ;;  %5095 = vmatmul.mubr.f32.gmra.mxu0 %v925_v19  ;;  %v1222_v28 = vpop.f32.mrf.mxu1  ;;  %5328 = vmatmul.mubr.f32.gmra.mxu1 %v7687_v29  ;;  %v230_v19 = vld [vmem:[%s6651_s23 + $0x208] sm:$0xff] }
 0x11f   : > { %v7808_v32 = vadd.f32 %v1222_v28, %v427_v57  ;;  %5097 = vmatprep.mubr.msk.f32.mxu0 %vm6499_vm0, %v10002_v24  ;;  %5330 = vmatprep.mubr.msk.f32.mxu1 %vm6499_vm0, %v10002_v24  ;;  %10037 = vst [vmem:[#allocation137_spill] sm:$0xff] %v7816_v42  ;;  %v945_v57 = vand.u32 4294901760, %v944_v14  ;;  %v954_v28 = vsub.f32 %v7787_v54, %v10038_v35  ;;  %v7823_v53 = vand.u32 4294901760, %v230_v19 }
 0x120   : > { %v4952_v1 = vpop.f32.mrf.mxu0  ;;  %v5185_v7 = vpop.f32.mrf.mxu1  ;;  %v7840_v54 = vand.u32 4294901760, %v231_v49 }
 0x121   : > { %10036 = vst [vmem:[#allocation136_spill] sm:$0xff] %v7808_v32  ;;  %10039 = vst [vmem:[#allocation138_spill] sm:$0xff] %v7823_v53  ;;  %v9869_v1 = vand.u32 4294901760, %v7816_v42  ;;  %v955_v29 = vand.u32 4294901760, %v954_v28 }
 0x122   : > { %v457_v2 = vpop.f32.mrf.mxu0  ;;  %5098 = vmatmul.mubr.f32.gmra.mxu0 %v935_v44  ;;  %v1228_v3 = vpop.f32.mrf.mxu1  ;;  %5331 = vmatmul.mubr.f32.gmra.mxu1 %v7704_v36  ;;  %v7838_v36 = vsub.f32 %v230_v19, %v7823_v53  ;;  %10042 = vst [vmem:[#allocation140_spill] sm:$0xff] %v7840_v54 }
 0x123   : > { %v7825_v32 = vadd.f32 %v1228_v3, %v437_v56  ;;  %5100 = vmatprep.mubr.msk.f32.mxu0 %vm6499_vm0, %v10002_v24  ;;  %5333 = vmatprep.mubr.msk.f32.mxu1 %vm6499_vm0, %v10002_v24  ;;  %v10041_v3 = vand.u32 4294901760, %v7806_v41 }
 0x124   : > { %v4955_v44 = vpop.f32.mrf.mxu0  ;;  %v5188_v14 = vpop.f32.mrf.mxu1 }
 0x125   : > { %10040 = vst [vmem:[#allocation139_spill] sm:$0xff] %v7825_v32  ;;  %v964_v56 = vsub.f32 %v7806_v41, %v10041_v3  ;;  %v974_v14 = vsub.f32 %v7816_v42, %v9869_v1 }
 0x126   : > { %v467_v7 = vpop.f32.mrf.mxu0  ;;  %5101 = vmatmul.mubr.f32.gmra.mxu0 %v945_v57  ;;  %v1234_v35 = vpop.f32.mrf.mxu1  ;;  %5334 = vmatmul.mubr.f32.gmra.mxu1 %v7713_v8  ;;  %v232_v57 = vld [vmem:[%s6651_s23 + $0x218] sm:$0xff]  ;;  %v7855_v8 = vsub.f32 %v231_v49, %v7840_v54  ;;  %v10046_v49 = vand.u32 4294901760, %v7838_v36 }
 0x127   : > { %v7842_v32 = vadd.f32 %v1234_v35, %v447_v38  ;;  %5103 = vmatprep.mubr.msk.f32.mxu0 %vm6499_vm0, %v10002_v24  ;;  %5336 = vmatprep.mubr.msk.f32.mxu1 %vm6499_vm0, %v10002_v24  ;;  %v965_v38 = vand.u32 4294901760, %v964_v56  ;;  %v7857_v41 = vand.u32 4294901760, %v232_v57  ;;  %v975_v1 = vand.u32 4294901760, %v974_v14 }
 0x128   : > { %v4958_v28 = vpop.f32.mrf.mxu0  ;;  %v5191_v44 = vpop.f32.mrf.mxu1 }
 0x129   : > { %10043 = vst [vmem:[#allocation141_spill] sm:$0xff] %v7842_v32  ;;  %10044 = vst [vmem:[#allocation142_spill] sm:$0xff] %v7857_v41 }
 0x12a   : > { %v477_v19 = vpop.f32.mrf.mxu0  ;;  %5104 = vmatmul.mubr.f32.gmra.mxu0 %v955_v29  ;;  %v1240_v3 = vpop.f32.mrf.mxu1  ;;  %5337 = vmatmul.mubr.f32.gmra.mxu1 %v7738_v61  ;;  %v233_v29 = vld [vmem:[%s6651_s23 + $0x220] sm:$0xff]  ;;  %v7872_v61 = vsub.f32 %v232_v57, %v7857_v41 }
 0x12b   : > { %v7859_v32 = vadd.f32 %v1240_v3, %v457_v2  ;;  %5106 = vmatprep.mubr.msk.f32.mxu0 %vm6499_vm0, %v10002_v24  ;;  %5339 = vmatprep.mubr.msk.f32.mxu1 %vm6499_vm0, %v10002_v24  ;;  %v984_v2 = vsub.f32 %v7838_v36, %v10046_v49  ;;  %v9876_v3 = vand.u32 4294901760, %v7855_v8  ;;  %v7874_v42 = vand.u32 4294901760, %v233_v29 }
 0x12c   : > { %v4961_v28 = vpop.f32.mrf.mxu0  ;;  %v5194_v44 = vpop.f32.mrf.mxu1 }
 0x12d   : > { %10045 = vst [vmem:[#allocation143_spill] sm:$0xff] %v7859_v32  ;;  %10047 = vst [vmem:[#allocation144_spill] sm:$0xff] %v7874_v42  ;;  %v985_v49 = vand.u32 4294901760, %v984_v2  ;;  %v994_v57 = vsub.f32 %v7855_v8, %v9876_v3 }
 0x12e   : > { %v487_v56 = vpop.f32.mrf.mxu0  ;;  %5107 = vmatmul.mubr.f32.gmra.mxu0 %v965_v38  ;;  %v1246_v35 = vpop.f32.mrf.mxu1  ;;  %5340 = vmatmul.mubr.f32.gmra.mxu1 %v7755_v22 }
 0x12f   : > { %v7876_v32 = vadd.f32 %v1246_v35, %v467_v7  ;;  %5109 = vmatprep.mubr.msk.f32.mxu0 %vm6499_vm0, %v10002_v24  ;;  %5342 = vmatprep.mubr.msk.f32.mxu1 %vm6499_vm0, %v10002_v24  ;;  %v9879_v7 = vand.u32 4294901760, %v7872_v61  ;;  %v7888_v35 = vsub.f32 %v233_v29, %v7874_v42  ;;  %v995_v3 = vand.u32 4294901760, %v994_v57 }
 0x130   : > { %v4964_v14 = vpop.f32.mrf.mxu0  ;;  %v5197_v38 = vpop.f32.mrf.mxu1 }
 0x131   : > { %v1004_v29 = vsub.f32 %v7872_v61, %v9879_v7 }
 0x132   : > { %v497_v28 = vpop.f32.mrf.mxu0  ;;  %5110 = vmatmul.mubr.f32.gmra.mxu0 %v975_v1  ;;  %v1252_v44 = vpop.f32.mrf.mxu1  ;;  %5343 = vmatmul.mubr.f32.gmra.mxu1 %v7772_v60 }
 0x133   : > { %v7890_v22 = vadd.f32 %v1252_v44, %v477_v19  ;;  %5112 = vmatprep.mubr.msk.f32.mxu0 %vm6499_vm0, %v10002_v24  ;;  %5345 = vmatprep.mubr.msk.f32.mxu1 %vm6499_vm0, %v10002_v24  ;;  %v9882_v19 = vand.u32 4294901760, %v7888_v35  ;;  %v1005_v57 = vand.u32 4294901760, %v1004_v29 }
 0x134   : > { %v4967_v1 = vpop.f32.mrf.mxu0  ;;  %v5200_v14 = vpop.f32.mrf.mxu1 }
 0x135   : > { %v1014_v7 = vsub.f32 %v7888_v35, %v9882_v19 }
 0x136   : > { %v507_v2 = vpop.f32.mrf.mxu0  ;;  %5113 = vmatmul.mubr.f32.gmra.mxu0 %v985_v49  ;;  %v1258_v38 = vpop.f32.mrf.mxu1  ;;  %5346 = vmatmul.mubr.f32.gmra.mxu1 %v7789_v50 }
 0x137   : > { %v7901_v44 = vadd.f32 %v1258_v38, %v487_v56  ;;  %5115 = vmatprep.mubr.msk.f32.mxu0 %vm6499_vm0, %v10002_v24  ;;  %5348 = vmatprep.mubr.msk.f32.mxu1 %vm6499_vm0, %v10002_v24  ;;  %v1015_v29 = vand.u32 4294901760, %v1014_v7 }
 0x138   : > { %v4970_v1 = vpop.f32.mrf.mxu0  ;;  %v5203_v49 = vpop.f32.mrf.mxu1 }
 0x13a   : > { %v517_v14 = vpop.f32.mrf.mxu0  ;;  %5116 = vmatmul.mubr.f32.gmra.mxu0 %v995_v3  ;;  %v1264_v50 = vpop.f32.mrf.mxu1  ;;  %5349 = vmatmul.mubr.f32.gmra.mxu1 %v7798_v37 }
 0x13b   : > { %v7911_v56 = vadd.f32 %v1264_v50, %v497_v28  ;;  %5118 = vmatprep.mubr.msk.f32.mxu0 %vm6499_vm0, %v10002_v24  ;;  %5351 = vmatprep.mubr.msk.f32.mxu1 %vm6499_vm0, %v10002_v24 }
 0x13c   : > { %v4973_v38 = vpop.f32.mrf.mxu0  ;;  %v5206_v1 = vpop.f32.mrf.mxu1 }
 0x13e   : > { %v527_v49 = vpop.f32.mrf.mxu0  ;;  %5119 = vmatmul.mubr.f32.gmra.mxu0 %v1005_v57  ;;  %v1270_v3 = vpop.f32.mrf.mxu1  ;;  %5352 = vmatmul.mubr.f32.gmra.mxu1 %v7823_v53 }
 0x13f   : > { %v7918_v37 = vadd.f32 %v1270_v3, %v507_v2  ;;  %5121 = vmatprep.mubr.msk.f32.mxu0 %vm6499_vm0, %v10002_v24  ;;  %5354 = vmatprep.mubr.msk.f32.mxu1 %vm6499_vm0, %v10002_v24 }
 0x140   : > { %v4976_v50 = vpop.f32.mrf.mxu0  ;;  %v5209_v28 = vpop.f32.mrf.mxu1 }
 0x141   : > { %v10048_v28 = vand.u32 4294901760, %v6591_v15  ;;  %v10049_v15 = vand.u32 4294901760, %v6594_v16  ;;  %v10051_v16 = vand.u32 4294901760, %v6599_v18  ;;  %v10053_v18 = vand.u32 4294901760, %v6607_v20 }
 0x142   : > { %v537_v19 = vpop.f32.mrf.mxu0  ;;  %5122 = vmatmul.mubr.f32.gmra.mxu0 %v1015_v29  ;;  %v1276_v38 = vpop.f32.mrf.mxu1  ;;  %5355 = vmatmul.mubr.f32.gmra.mxu1 %v7840_v54  ;;  %v10055_v20 = vand.u32 4294901760, %v6610_v21  ;;  %v10057_v21 = vand.u32 4294901760, %v6628_v30  ;;  %v10059_v30 = vand.u32 4294901760, %v6641_v34  ;;  %v10061_v34 = vand.u32 4294901760, %v6667_v43 }
 0x143   : > { %v7925_v57 = vadd.f32 %v1276_v38, %v517_v14  ;;  %5357 = vmatprep.mubr.msk.f32.mxu1 %vm6499_vm0, %v10002_v24  ;;  %5395 = vmatprep.mubr.msk.f32.mxu0 %vm6499_vm0, %v10002_v24  ;;  %v10063_v43 = vand.u32 4294901760, %v6674_v47  ;;  %v10065_v47 = vand.u32 4294901760, %v6693_v55  ;;  %v10067_v55 = vand.u32 4294901760, %v6710_v62 }
 0x144   : > { %v4979_v7 = vpop.f32.mrf.mxu0  ;;  %v5212_v2 = vpop.f32.mrf.mxu1  ;;  %v10070_v62 = vand.u32 4294901760, %v6726_v9  ;;  %v10073_v9 = vand.u32 4294901760, %v6743_v33  ;;  %v10076_v33 = vld [vmem:[#allocation8_spill] sm:$0xff] }
 0x146   : > { %v547_v1 = vpop.f32.mrf.mxu0  ;;  %v1282_v3 = vpop.f32.mrf.mxu1  ;;  %5358 = vmatmul.mubr.f32.gmra.mxu1 %v7857_v41  ;;  %5396 = vmatmul.mubr.f32.vlgmr.msra.gmra.mxu0 %v6729_v13 }
 0x147   : > { %v7933_v29 = vadd.f32 %v1282_v3, %v527_v49  ;;  %5360 = vmatprep.mubr.msk.f32.mxu1 %vm6499_vm0, %v10002_v24  ;;  %5398 = vmatprep.mubr.msk.f32.mxu0 %vm6499_vm0, %v10002_v24 }
 0x148   : > { %v4982_v14 = vpop.f32.mrf.mxu0  ;;  %v5215_v50 = vpop.f32.mrf.mxu1  ;;  %5842 = vmatpush3.msra.mxu0 %v10048_v28 }
 0x149   : > { %5843 = vmatprep.subr.mxu0 %v10002_v24 }
 0x14a   : > { %v557_v38 = vpop.f32.mrf.mxu0  ;;  %v1288_v7 = vpop.f32.mrf.mxu1  ;;  %5361 = vmatmul.mubr.f32.gmra.mxu1 %v7874_v42  ;;  %5399 = vmatmul.mubr.f32.gmra.mxu0 %v6762_v48 }
 0x14b   : > { %v7944_v49 = vadd.f32 %v1288_v7, %v537_v19  ;;  %5401 = vmatprep.mubr.msk.f32.mxu0 %vm6499_vm0, %v10002_v24  ;;  %5634 = vmatprep.mubr.msk.f32.mxu1 %vm6499_vm0, %v10002_v24  ;;  %v10050_v19 = vand.u32 4294901760, %v6729_v13 }
 0x14c   : > { %v4985_v2 = vpop.f32.mrf.mxu0  ;;  %v5218_v3 = vpop.f32.mrf.mxu1  ;;  %5844 = vmatpush3.msra.mxu0 %v10049_v15 }
 0x14d   : > { %5845 = vmatprep.subr.mxu0 %v10002_v24 }
 0x14e   : > { %v567_v14 = vpop.f32.mrf.mxu0  ;;  %v1294_v50 = vpop.f32.mrf.mxu1  ;;  %5402 = vmatmul.mubr.f32.gmra.mxu0 %v6792_v39  ;;  %5635 = vmatmul.mubr.f32.vlgmr.msra.gmra.mxu1 %v10050_v19 }
 0x14f   : > { %v7956_v28 = vadd.f32 %v1294_v50, %v547_v1  ;;  %6081 = vmatpush3.msra.mxu1 %v6557_v4  ;;  %5404 = vmatprep.mubr.msk.f32.mxu0 %vm6499_vm0, %v10002_v24  ;;  %v10052_v4 = vand.u32 4294901760, %v6762_v48  ;;  %v10054_v50 = vand.u32 4294901760, %v6792_v39 }
 0x150   : > { %v4988_v7 = vpop.f32.mrf.mxu0  ;;  %v5221_v2 = vpop.f32.mrf.mxu1  ;;  %5637 = vmatprep.mubr.msk.f32.mxu1 %vm6499_vm0, %v10002_v24  ;;  %6082 = vmatprep.subr.mxu1 %v10002_v24 }
 0x151   : > { %6083 = vmatpush3.msra.mxu1 %v6559_v5  ;;  %5846 = vmatpush3.msra.mxu0 %v10051_v16  ;;  %v10056_v2 = vand.u32 4294901760, %v6816_v0 }
 0x152   : > { %v577_v13 = vpop.f32.mrf.mxu0  ;;  %v1300_v1 = vpop.f32.mrf.mxu1  ;;  %5405 = vmatmul.mubr.f32.gmra.mxu0 %v6816_v0  ;;  %5638 = vmatmul.mubr.f32.gmra.mxu1 %v10052_v4  ;;  %v10058_v4 = vand.u32 4294901760, %v6839_v26 }
 0x153   : > { %v7970_v3 = vadd.f32 %v1300_v1, %v557_v38  ;;  %5407 = vmatprep.mubr.msk.f32.mxu0 %vm6499_vm0, %v10002_v24  ;;  %5640 = vmatprep.mubr.msk.f32.mxu1 %vm6499_vm0, %v10002_v24 }
 0x154   : > { %v4991_v15 = vpop.f32.mrf.mxu0  ;;  %v5224_v5 = vpop.f32.mrf.mxu1  ;;  %6084 = vmatprep.subr.mxu1 %v10002_v24  ;;  %5847 = vmatprep.subr.mxu0 %v10002_v24 }
 0x155   : > { %6085 = vmatpush3.msra.mxu1 %v6561_v6  ;;  %5848 = vmatpush3.msra.mxu0 %v10053_v18 }
 0x156   : > { %v587_v48 = vpop.f32.mrf.mxu0  ;;  %v1306_v38 = vpop.f32.mrf.mxu1  ;;  %5408 = vmatmul.mubr.f32.gmra.mxu0 %v6839_v26  ;;  %5641 = vmatmul.mubr.f32.gmra.mxu1 %v10054_v50 }
 0x157   : > { %v7984_v19 = vadd.f32 %v1306_v38, %v567_v14  ;;  %5410 = vmatprep.mubr.msk.f32.mxu0 %vm6499_vm0, %v10002_v24  ;;  %5643 = vmatprep.mubr.msk.f32.mxu1 %vm6499_vm0, %v10002_v24 }
 0x158   : > { %v4994_v7 = vpop.f32.mrf.mxu0  ;;  %v5227_v6 = vpop.f32.mrf.mxu1  ;;  %6086 = vmatprep.subr.mxu1 %v10002_v24  ;;  %5849 = vmatprep.subr.mxu0 %v10002_v24 }
 0x159   : > { %6087 = vmatpush3.msra.mxu1 %v6573_v10  ;;  %5850 = vmatpush3.msra.mxu0 %v10055_v20  ;;  %v10062_v6 = vand.u32 4294901760, %v6863_v58 }
 0x15a   : > { %v597_v39 = vpop.f32.mrf.mxu0  ;;  %v1312_v14 = vpop.f32.mrf.mxu1  ;;  %5411 = vmatmul.mubr.f32.gmra.mxu0 %v6855_v51  ;;  %5644 = vmatmul.mubr.f32.gmra.mxu1 %v10056_v2  ;;  %v10064_v2 = vand.u32 4294901760, %v6888_v46 }
 0x15b   : > { %v7998_v16 = vadd.f32 %v1312_v14, %v577_v13  ;;  %5413 = vmatprep.mubr.msk.f32.mxu0 %vm6499_vm0, %v10002_v24  ;;  %5646 = vmatprep.mubr.msk.f32.mxu1 %vm6499_vm0, %v10002_v24 }
 0x15c   : > { %v4997_v1 = vpop.f32.mrf.mxu0  ;;  %v5230_v10 = vpop.f32.mrf.mxu1  ;;  %6088 = vmatprep.subr.mxu1 %v10002_v24  ;;  %5851 = vmatprep.subr.mxu0 %v10002_v24 }
 0x15d   : > { %6089 = vmatpush3.msra.mxu1 %v6575_v11  ;;  %5852 = vmatpush3.msra.mxu0 %v10057_v21 }
 0x15e   : > { %v607_v0 = vpop.f32.mrf.mxu0  ;;  %v1318_v13 = vpop.f32.mrf.mxu1  ;;  %5414 = vmatmul.mubr.f32.gmra.mxu0 %v6863_v58  ;;  %5647 = vmatmul.mubr.f32.gmra.mxu1 %v10058_v4 }
 0x15f   : > { %v8012_v15 = vadd.f32 %v1318_v13, %v587_v48  ;;  %5416 = vmatprep.mubr.msk.f32.mxu0 %vm6499_vm0, %v10002_v24  ;;  %5649 = vmatprep.mubr.msk.f32.mxu1 %vm6499_vm0, %v10002_v24  ;;  %v10060_v48 = vand.u32 4294901760, %v6855_v51 }
 0x160   : > { %v5000_v5 = vpop.f32.mrf.mxu0  ;;  %v5233_v11 = vpop.f32.mrf.mxu1  ;;  %6090 = vmatprep.subr.mxu1 %v10002_v24  ;;  %5853 = vmatprep.subr.mxu0 %v10002_v24 }
 0x161   : > { %6091 = vmatpush3.msra.mxu1 %v6577_v12  ;;  %5854 = vmatpush3.msra.mxu0 %v10059_v30  ;;  %v10068_v11 = vld [vmem:[#allocation22_spill] sm:$0xff]  ;;  %v10069_v30 = vand.u32 4294901760, %v6919_v63 }
 0x162   : > { %v617_v26 = vpop.f32.mrf.mxu0  ;;  %v1324_v18 = vpop.f32.mrf.mxu1  ;;  %5417 = vmatmul.mubr.f32.gmra.mxu0 %v6888_v46  ;;  %5650 = vmatmul.mubr.f32.gmra.mxu1 %v10060_v48 }
 0x163   : > { %v8026_v38 = vadd.f32 %v1324_v18, %v597_v39  ;;  %5419 = vmatprep.mubr.msk.f32.mxu0 %vm6499_vm0, %v10002_v24  ;;  %5652 = vmatprep.mubr.msk.f32.mxu1 %vm6499_vm0, %v10002_v24 }
 0x164   : > { %v5003_v50 = vpop.f32.mrf.mxu0  ;;  %v5236_v12 = vpop.f32.mrf.mxu1  ;;  %6092 = vmatprep.subr.mxu1 %v10002_v24  ;;  %5855 = vmatprep.subr.mxu0 %v10002_v24 }
 0x165   : > { %6093 = vmatpush3.msra.mxu1 %v6596_v17  ;;  %5856 = vmatpush3.msra.mxu0 %v10061_v34  ;;  %v10071_v50 = vld [vmem:[#allocation24_spill] sm:$0xff]  ;;  %v10072_v12 = vand.u32 4294901760, %v6945_v23 }
 0x166   : > { %v627_v51 = vpop.f32.mrf.mxu0  ;;  %v1330_v7 = vpop.f32.mrf.mxu1  ;;  %5420 = vmatmul.mubr.f32.gmra.mxu0 %v6909_v31  ;;  %5653 = vmatmul.mubr.f32.gmra.mxu1 %v10062_v6  ;;  %v10074_v6 = vld [vmem:[#allocation26_spill] sm:$0xff] }
 0x167   : > { %v8040_v20 = vadd.f32 %v1330_v7, %v607_v0  ;;  %5422 = vmatprep.mubr.msk.f32.mxu0 %vm6499_vm0, %v10002_v24  ;;  %5655 = vmatprep.mubr.msk.f32.mxu1 %vm6499_vm0, %v10002_v24  ;;  %v10066_v0 = vand.u32 4294901760, %v6909_v31 }
 0x168   : > { %v5006_v39 = vpop.f32.mrf.mxu0  ;;  %v5239_v17 = vpop.f32.mrf.mxu1  ;;  %6094 = vmatprep.subr.mxu1 %v10002_v24  ;;  %5857 = vmatprep.subr.mxu0 %v10002_v24 }
 0x169   : > { %6095 = vmatpush3.msra.mxu1 %v6616_v25  ;;  %5858 = vmatpush3.msra.mxu0 %v10063_v43  ;;  %v10075_v39 = vand.u32 4294901760, %v10068_v11 }
 0x16a   : > { %v637_v58 = vpop.f32.mrf.mxu0  ;;  %v1336_v14 = vpop.f32.mrf.mxu1  ;;  %5423 = vmatmul.mubr.f32.gmra.mxu0 %v6919_v63  ;;  %5656 = vmatmul.mubr.f32.gmra.mxu1 %v10064_v2 }
 0x16b   : > { %v8054_v1 = vadd.f32 %v1336_v14, %v617_v26  ;;  %5425 = vmatprep.mubr.msk.f32.mxu0 %vm6499_vm0, %v10002_v24  ;;  %5658 = vmatprep.mubr.msk.f32.mxu1 %vm6499_vm0, %v10002_v24 }
 0x16c   : > { %v5009_v10 = vpop.f32.mrf.mxu0  ;;  %v5242_v25 = vpop.f32.mrf.mxu1  ;;  %6096 = vmatprep.subr.mxu1 %v10002_v24  ;;  %5859 = vmatprep.subr.mxu0 %v10002_v24 }
 0x16d   : > { %6097 = vmatpush3.msra.mxu1 %v6621_v27  ;;  %5860 = vmatpush3.msra.mxu0 %v10065_v47  ;;  %v10078_v10 = vld [vmem:[#allocation27_spill] sm:$0xff]  ;;  %v10079_v25 = vand.u32 4294901760, %v10071_v50 }
 0x16e   : > { %v647_v46 = vpop.f32.mrf.mxu0  ;;  %v1342_v21 = vpop.f32.mrf.mxu1  ;;  %5426 = vmatmul.mubr.f32.gmra.mxu0 %v6945_v23  ;;  %5659 = vmatmul.mubr.f32.gmra.mxu1 %v10066_v0  ;;  %v10081_v0 = vld [vmem:[#allocation10_spill] sm:$0xff] }
 0x16f   : > { %v8068_v13 = vadd.f32 %v1342_v21, %v627_v51  ;;  %5428 = vmatprep.mubr.msk.f32.mxu0 %vm6499_vm0, %v10002_v24  ;;  %5661 = vmatprep.mubr.msk.f32.mxu1 %vm6499_vm0, %v10002_v24  ;;  %v10080_v21 = vld [vmem:[#allocation4_spill] sm:$0xff] }
 0x170   : > { %v5012_v4 = vpop.f32.mrf.mxu0  ;;  %v5245_v27 = vpop.f32.mrf.mxu1  ;;  %6098 = vmatprep.subr.mxu1 %v10002_v24  ;;  %5861 = vmatprep.subr.mxu0 %v10002_v24 }
 0x171   : > { %6099 = vmatpush3.msra.mxu1 %v6657_v40  ;;  %5862 = vmatpush3.msra.mxu0 %v10067_v55  ;;  %v10082_v4 = vand.u32 4294901760, %v10081_v0 }
 0x172   : > { %v657_v31 = vpop.f32.mrf.mxu0  ;;  %v1348_v5 = vpop.f32.mrf.mxu1  ;;  %5429 = vmatmul.mubr.f32.gmra.mxu0 %v10068_v11  ;;  %5662 = vmatmul.mubr.f32.gmra.mxu1 %v10069_v30 }
 0x173   : > { %v8082_v26 = vadd.f32 %v1348_v5, %v637_v58  ;;  %5431 = vmatprep.mubr.msk.f32.mxu0 %vm6499_vm0, %v10002_v24  ;;  %5664 = vmatprep.mubr.msk.f32.mxu1 %vm6499_vm0, %v10002_v24  ;;  %v10077_v58 = vand.u32 4294901760, %v10076_v33  ;;  %v10084_v5 = vand.u32 4294901760, %v10074_v6 }
 0x174   : > { %v5015_v18 = vpop.f32.mrf.mxu0  ;;  %v5248_v40 = vpop.f32.mrf.mxu1  ;;  %6100 = vmatprep.subr.mxu1 %v10002_v24  ;;  %5863 = vmatprep.subr.mxu0 %v10002_v24 }
 0x175   : > { %6101 = vmatpush3.msra.mxu1 %v6670_v45  ;;  %5864 = vmatpush3.msra.mxu0 %v10070_v62  ;;  %v10085_v40 = vld [vmem:[#allocation5_spill] sm:$0xff]  ;;  %v10086_v62 = vld [vmem:[#allocation11_spill] sm:$0xff] }
 0x176   : > { %v667_v63 = vpop.f32.mrf.mxu0  ;;  %v1354_v48 = vpop.f32.mrf.mxu1  ;;  %5432 = vmatmul.mubr.f32.gmra.mxu0 %v10071_v50  ;;  %5665 = vmatmul.mubr.f32.gmra.mxu1 %v10072_v12  ;;  %v10088_v12 = vld [vmem:[#allocation32_spill] sm:$0xff] }
 0x177   : > { %v8096_v34 = vadd.f32 %v1354_v48, %v647_v46  ;;  %5434 = vmatprep.mubr.msk.f32.mxu0 %vm6499_vm0, %v10002_v24  ;;  %5667 = vmatprep.mubr.msk.f32.mxu1 %vm6499_vm0, %v10002_v24 }
 0x178   : > { %v5018_v51 = vpop.f32.mrf.mxu0  ;;  %v5251_v45 = vpop.f32.mrf.mxu1  ;;  %6102 = vmatprep.subr.mxu1 %v10002_v24  ;;  %5865 = vmatprep.subr.mxu0 %v10002_v24 }
 0x179   : > { %6103 = vmatpush3.msra.mxu1 %v6686_v52  ;;  %5866 = vmatpush3.msra.mxu0 %v10073_v9  ;;  %v10089_v51 = vand.u32 4294901760, %v10078_v10 }
 0x17a   : > { %v677_v23 = vpop.f32.mrf.mxu0  ;;  %v1360_v7 = vpop.f32.mrf.mxu1  ;;  %5435 = vmatmul.mubr.f32.gmra.mxu0 %v10074_v6  ;;  %5668 = vmatmul.mubr.f32.gmra.mxu1 %v10075_v39 }
 0x17b   : > { %v8110_v17 = vadd.f32 %v1360_v7, %v657_v31  ;;  %5437 = vmatprep.mubr.msk.f32.mxu0 %vm6499_vm0, %v10002_v24  ;;  %5670 = vmatprep.mubr.msk.f32.mxu1 %vm6499_vm0, %v10002_v24  ;;  %v10083_v31 = vld [vmem:[#allocation29_spill] sm:$0xff]  ;;  %v10090_v7 = vld [vmem:[#allocation7_spill] sm:$0xff] }
 0x17c   : > { %v5021_v43 = vpop.f32.mrf.mxu0  ;;  %v5254_v52 = vpop.f32.mrf.mxu1  ;;  %6104 = vmatprep.subr.mxu1 %v10002_v24  ;;  %5867 = vmatprep.subr.mxu0 %v10002_v24 }
 0x17d   : > { %6105 = vmatpush3.msra.mxu1 %v6703_v59  ;;  %5868 = vmatpush3.msra.mxu0 %v10077_v58  ;;  %v10091_v43 = vld [vmem:[#allocation33_spill] sm:$0xff]  ;;  %v10092_v52 = vand.u32 4294901760, %v10083_v31 }
 0x17e   : > { %v687_v14 = vpop.f32.mrf.mxu0  ;;  %v1366_v2 = vpop.f32.mrf.mxu1  ;;  %5438 = vmatmul.mubr.f32.gmra.mxu0 %v10078_v10  ;;  %5671 = vmatmul.mubr.f32.gmra.mxu1 %v10079_v25  ;;  %v10093_v25 = vld [vmem:[#allocation35_spill] sm:$0xff] }
 0x17f   : > { %v8124_v47 = vadd.f32 %v1366_v2, %v667_v63  ;;  %5440 = vmatprep.mubr.msk.f32.mxu0 %vm6499_vm0, %v10002_v24  ;;  %5673 = vmatprep.mubr.msk.f32.mxu1 %vm6499_vm0, %v10002_v24  ;;  %v10087_v63 = vand.u32 4294901760, %v10086_v62 }
 0x180   : > { %v5024_v46 = vpop.f32.mrf.mxu0  ;;  %v5257_v59 = vpop.f32.mrf.mxu1  ;;  %6106 = vmatprep.subr.mxu1 %v10002_v24  ;;  %5869 = vmatprep.subr.mxu0 %v10002_v24 }
 0x181   : > { %6107 = vmatpush3.msra.mxu1 %v10080_v21  ;;  %5870 = vmatpush3.msra.mxu0 %v10082_v4  ;;  %v10094_v46 = vand.u32 4294901760, %v10088_v12 }
 0x182   : > { %v697_v27 = vpop.f32.mrf.mxu0  ;;  %v1372_v55 = vpop.f32.mrf.mxu1  ;;  %5441 = vmatmul.mubr.f32.gmra.mxu0 %v10083_v31  ;;  %5674 = vmatmul.mubr.f32.gmra.mxu1 %v10084_v5  ;;  %v10096_v31 = vand.u32 4294901760, %v10091_v43 }
 0x183   : > { %v8138_v11 = vadd.f32 %v1372_v55, %v677_v23  ;;  %5443 = vmatprep.mubr.msk.f32.mxu0 %vm6499_vm0, %v10002_v24  ;;  %5676 = vmatprep.mubr.msk.f32.mxu1 %vm6499_vm0, %v10002_v24  ;;  %v10095_v55 = vld [vmem:[#allocation38_spill] sm:$0xff] }
 0x184   : > { %v5027_v30 = vpop.f32.mrf.mxu0  ;;  %v5260_v18 = vpop.f32.mrf.mxu1  ;;  %6108 = vmatprep.subr.mxu1 %v10002_v24  ;;  %5871 = vmatprep.subr.mxu0 %v10002_v24 }
 0x185   : > { %6109 = vmatpush3.msra.mxu1 %v10085_v40  ;;  %5872 = vmatpush3.msra.mxu0 %v10087_v63  ;;  %v10097_v63 = vld [vmem:[#allocation40_spill] sm:$0xff] }
 0x186   : > { %v707_v48 = vpop.f32.mrf.mxu0  ;;  %v1378_v50 = vpop.f32.mrf.mxu1  ;;  %5444 = vmatmul.mubr.f32.gmra.mxu0 %v10088_v12  ;;  %5677 = vmatmul.mubr.f32.gmra.mxu1 %v10089_v51 }
 0x187   : > { %v8152_v45 = vadd.f32 %v1378_v50, %v687_v14  ;;  %5446 = vmatprep.mubr.msk.f32.mxu0 %vm6499_vm0, %v10002_v24  ;;  %5679 = vmatprep.mubr.msk.f32.mxu1 %vm6499_vm0, %v10002_v24 }
 0x188   : > { %v5030_v9 = vpop.f32.mrf.mxu0  ;;  %v5263_v23 = vpop.f32.mrf.mxu1  ;;  %6110 = vmatprep.subr.mxu1 %v10002_v24 }
 0x189   : > { %6111 = vmatpush3.msra.mxu1 %v10090_v7  ;;  %v10099_v7 = vld [vmem:[#allocation42_spill] sm:$0xff] }
 0x18a   : > { %v717_v6 = vpop.f32.mrf.mxu0  ;;  %v1384_v39 = vpop.f32.mrf.mxu1  ;;  %5447 = vmatmul.mubr.f32.gmra.mxu0 %v10091_v43  ;;  %5680 = vmatmul.mubr.f32.gmra.mxu1 %v10092_v52 }
 0x18b   : > { %v8163_v33 = vadd.f32 %v1384_v39, %v697_v27  ;;  %5449 = vmatprep.mubr.msk.f32.mxu0 %vm6499_vm0, %v10002_v24  ;;  %5682 = vmatprep.mubr.msk.f32.mxu1 %vm6499_vm0, %v10002_v24 }
 0x18c   : > { %v5033_v58 = vpop.f32.mrf.mxu0  ;;  %v5266_v14 = vpop.f32.mrf.mxu1 }
 0x18e   : > { %v727_v2 = vpop.f32.mrf.mxu0  ;;  %v1390_v10 = vpop.f32.mrf.mxu1  ;;  %5450 = vmatmul.mubr.f32.gmra.mxu0 %v10093_v25  ;;  %5683 = vmatmul.mubr.f32.gmra.mxu1 %v10094_v46 }
 0x18f   : > { %v8172_v59 = vadd.f32 %v1390_v10, %v707_v48  ;;  %5452 = vmatprep.mubr.msk.f32.mxu0 %vm6499_vm0, %v10002_v24  ;;  %5685 = vmatprep.mubr.msk.f32.mxu1 %vm6499_vm0, %v10002_v24  ;;  %v10098_v48 = vand.u32 4294901760, %v10093_v25  ;;  %v10102_v10 = vand.u32 4294901760, %v10097_v63 }
 0x190   : > { %v5036_v21 = vpop.f32.mrf.mxu0  ;;  %v5269_v0 = vpop.f32.mrf.mxu1 }
 0x192   : > { %v737_v4 = vpop.f32.mrf.mxu0  ;;  %v1396_v27 = vpop.f32.mrf.mxu1  ;;  %5453 = vmatmul.mubr.f32.gmra.mxu0 %v10095_v55  ;;  %5686 = vmatmul.mubr.f32.gmra.mxu1 %v10096_v31 }
 0x193   : > { %v8181_v5 = vadd.f32 %v1396_v27, %v717_v6  ;;  %5455 = vmatprep.mubr.msk.f32.mxu0 %vm6499_vm0, %v10002_v24  ;;  %5688 = vmatprep.mubr.msk.f32.mxu1 %vm6499_vm0, %v10002_v24  ;;  %v10100_v6 = vand.u32 4294901760, %v10095_v55  ;;  %v10103_v27 = vld [vmem:[#allocation45_spill] sm:$0xff]  ;;  %v10104_v55 = vand.u32 4294901760, %v10099_v7 }
 0x194   : > { %v5039_v30 = vpop.f32.mrf.mxu0  ;;  %v5272_v18 = vpop.f32.mrf.mxu1 }
 0x196   : > { %v747_v40 = vpop.f32.mrf.mxu0  ;;  %v1402_v62 = vpop.f32.mrf.mxu1  ;;  %5456 = vmatmul.mubr.f32.gmra.mxu0 %v10097_v63  ;;  %5689 = vmatmul.mubr.f32.gmra.mxu1 %v10098_v48  ;;  %v10105_v63 = vld [vmem:[#allocation48_spill] sm:$0xff] }
 0x197   : > { %v8190_v50 = vadd.f32 %v1402_v62, %v727_v2  ;;  %5458 = vmatprep.mubr.msk.f32.mxu0 %vm6499_vm0, %v10002_v24  ;;  %5691 = vmatprep.mubr.msk.f32.mxu1 %vm6499_vm0, %v10002_v24  ;;  %v10101_v2 = vld [vmem:[#allocation43_spill] sm:$0xff] }
 0x198   : > { %v5042_v12 = vpop.f32.mrf.mxu0  ;;  %v5275_v51 = vpop.f32.mrf.mxu1  ;;  %v10106_v48 = vand.u32 4294901760, %v10101_v2 }
 0x19a   : > { %v757_v9 = vpop.f32.mrf.mxu0  ;;  %v1408_v23 = vpop.f32.mrf.mxu1  ;;  %5459 = vmatmul.mubr.f32.gmra.mxu0 %v10099_v7  ;;  %5692 = vmatmul.mubr.f32.gmra.mxu1 %v10100_v6  ;;  %v10107_v6 = vld [vmem:[#allocation49_spill] sm:$0xff] }
 0x19b   : > { %v8199_v39 = vadd.f32 %v1408_v23, %v737_v4  ;;  %5461 = vmatprep.mubr.msk.f32.mxu0 %vm6499_vm0, %v10002_v24  ;;  %5694 = vmatprep.mubr.msk.f32.mxu1 %vm6499_vm0, %v10002_v24 }
 0x19c   : > { %v5045_v43 = vpop.f32.mrf.mxu0  ;;  %v5278_v52 = vpop.f32.mrf.mxu1 }
 0x19d   : > { %v10108_v43 = vand.u32 4294901760, %v10103_v27 }
 0x19e   : > { %v767_v58 = vpop.f32.mrf.mxu0  ;;  %v1414_v14 = vpop.f32.mrf.mxu1  ;;  %5462 = vmatmul.mubr.f32.gmra.mxu0 %v10101_v2  ;;  %5695 = vmatmul.mubr.f32.gmra.mxu1 %v10102_v10 }
 0x19f   : > { %v8208_v25 = vadd.f32 %v1414_v14, %v747_v40  ;;  %5464 = vmatprep.mubr.msk.f32.mxu0 %vm6499_vm0, %v10002_v24  ;;  %5697 = vmatprep.mubr.msk.f32.mxu1 %vm6499_vm0, %v10002_v24 }
 0x1a0   : > { %v5048_v46 = vpop.f32.mrf.mxu0  ;;  %v5281_v21 = vpop.f32.mrf.mxu1 }
 0x1a1   : > { %v10109_v46 = vld [vmem:[#allocation51_spill] sm:$0xff]  ;;  %v10110_v21 = vand.u32 4294901760, %v10105_v63 }
 0x1a2   : > { %v777_v0 = vpop.f32.mrf.mxu0  ;;  %v1420_v4 = vpop.f32.mrf.mxu1  ;;  %5465 = vmatmul.mubr.f32.gmra.mxu0 %v10103_v27  ;;  %5698 = vmatmul.mubr.f32.gmra.mxu1 %v10104_v55 }
 0x1a3   : > { %v8217_v31 = vadd.f32 %v1420_v4, %v757_v9  ;;  %5467 = vmatprep.mubr.msk.f32.mxu0 %vm6499_vm0, %v10002_v24  ;;  %5700 = vmatprep.mubr.msk.f32.mxu1 %vm6499_vm0, %v10002_v24 }
 0x1a4   : > { %v5051_v30 = vpop.f32.mrf.mxu0  ;;  %v5284_v18 = vpop.f32.mrf.mxu1 }
 0x1a5   : > { %v10111_v18 = vld [vmem:[#allocation54_spill] sm:$0xff] }
 0x1a6   : > { %v787_v40 = vpop.f32.mrf.mxu0  ;;  %v1426_v62 = vpop.f32.mrf.mxu1  ;;  %5468 = vmatmul.mubr.f32.gmra.mxu0 %v10105_v63  ;;  %5701 = vmatmul.mubr.f32.gmra.mxu1 %v10106_v48 }
 0x1a7   : > { %v8226_v12 = vadd.f32 %v1426_v62, %v767_v58  ;;  %5470 = vmatprep.mubr.msk.f32.mxu0 %vm6499_vm0, %v10002_v24  ;;  %5703 = vmatprep.mubr.msk.f32.mxu1 %vm6499_vm0, %v10002_v24  ;;  %v10112_v62 = vand.u32 4294901760, %v10107_v6 }
 0x1a8   : > { %v5054_v51 = vpop.f32.mrf.mxu0  ;;  %v5287_v9 = vpop.f32.mrf.mxu1 }
 0x1aa   : > { %v797_v23 = vpop.f32.mrf.mxu0  ;;  %v1432_v7 = vpop.f32.mrf.mxu1  ;;  %5471 = vmatmul.mubr.f32.gmra.mxu0 %v10107_v6  ;;  %5704 = vmatmul.mubr.f32.gmra.mxu1 %v10108_v43  ;;  %v10114_v43 = vand.u32 4294901760, %v10109_v46 }
 0x1ab   : > { %v8235_v52 = vadd.f32 %v1432_v7, %v777_v0  ;;  %5473 = vmatprep.mubr.msk.f32.mxu0 %vm6499_vm0, %v10002_v24  ;;  %5706 = vmatprep.mubr.msk.f32.mxu1 %vm6499_vm0, %v10002_v24  ;;  %v10113_v7 = vld [vmem:[#allocation56_spill] sm:$0xff] }
 0x1ac   : > { %v5057_v58 = vpop.f32.mrf.mxu0  ;;  %v5290_v14 = vpop.f32.mrf.mxu1 }
 0x1ae   : > { %v807_v2 = vpop.f32.mrf.mxu0  ;;  %v1438_v10 = vpop.f32.mrf.mxu1  ;;  %5474 = vmatmul.mubr.f32.gmra.mxu0 %v10109_v46  ;;  %5707 = vmatmul.mubr.f32.gmra.mxu1 %v10110_v21  ;;  %v10115_v21 = vld [vmem:[#allocation58_spill] sm:$0xff] }
 0x1af   : > { %v8244_v4 = vadd.f32 %v1438_v10, %v787_v40  ;;  %5476 = vmatprep.mubr.msk.f32.mxu0 %vm6499_vm0, %v10002_v24  ;;  %5709 = vmatprep.mubr.msk.f32.mxu1 %vm6499_vm0, %v10002_v24 }
 0x1b0   : > { %v5060_v0 = vpop.f32.mrf.mxu0  ;;  %v5293_v27 = vpop.f32.mrf.mxu1 }
 0x1b1   : > { %v10116_v0 = vand.u32 4294901760, %v10111_v18 }
 0x1b2   : > { %v817_v55 = vpop.f32.mrf.mxu0  ;;  %v1444_v30 = vpop.f32.mrf.mxu1  ;;  %5477 = vmatmul.mubr.f32.gmra.mxu0 %v10111_v18  ;;  %5710 = vmatmul.mubr.f32.gmra.mxu1 %v10112_v62 }
 0x1b3   : > { %v8253_v48 = vadd.f32 %v1444_v30, %v797_v23  ;;  %5479 = vmatprep.mubr.msk.f32.mxu0 %vm6499_vm0, %v10002_v24  ;;  %5712 = vmatprep.mubr.msk.f32.mxu1 %vm6499_vm0, %v10002_v24 }
 0x1b4   : > { %v5063_v40 = vpop.f32.mrf.mxu0  ;;  %v5296_v63 = vpop.f32.mrf.mxu1 }
 0x1b5   : > { %v10117_v40 = vld [vmem:[#allocation59_spill] sm:$0xff]  ;;  %v10118_v63 = vand.u32 4294901760, %v10113_v7 }
 0x1b6   : > { %v827_v51 = vpop.f32.mrf.mxu0  ;;  %v1450_v9 = vpop.f32.mrf.mxu1  ;;  %5480 = vmatmul.mubr.f32.gmra.mxu0 %v10113_v7  ;;  %5713 = vmatmul.mubr.f32.gmra.mxu1 %v10114_v43 }
 0x1b7   : > { %v8262_v58 = vadd.f32 %v1450_v9, %v807_v2  ;;  %5482 = vmatprep.mubr.msk.f32.mxu0 %vm6499_vm0, %v10002_v24  ;;  %5715 = vmatprep.mubr.msk.f32.mxu1 %vm6499_vm0, %v10002_v24 }
 0x1b8   : > { %v5066_v23 = vpop.f32.mrf.mxu0  ;;  %v5299_v6 = vpop.f32.mrf.mxu1 }
 0x1b9   : > { %v10119_v6 = vld [vmem:[#allocation61_spill] sm:$0xff] }
 0x1ba   : > { %v837_v14 = vpop.f32.mrf.mxu0  ;;  %v1456_v10 = vpop.f32.mrf.mxu1  ;;  %5483 = vmatmul.mubr.f32.gmra.mxu0 %v10115_v21  ;;  %5716 = vmatmul.mubr.f32.gmra.mxu1 %v10116_v0 }
 0x1bb   : > { %v8271_v27 = vadd.f32 %v1456_v10, %v817_v55  ;;  %5485 = vmatprep.mubr.msk.f32.mxu0 %vm6499_vm0, %v10002_v24  ;;  %5718 = vmatprep.mubr.msk.f32.mxu1 %vm6499_vm0, %v10002_v24  ;;  %v10120_v10 = vand.u32 4294901760, %v10115_v21 }
 0x1bc   : > { %v5069_v2 = vpop.f32.mrf.mxu0  ;;  %v5302_v46 = vpop.f32.mrf.mxu1 }
 0x1be   : > { %v847_v30 = vpop.f32.mrf.mxu0  ;;  %v1462_v62 = vpop.f32.mrf.mxu1  ;;  %5486 = vmatmul.mubr.f32.gmra.mxu0 %v10117_v40  ;;  %5719 = vmatmul.mubr.f32.gmra.mxu1 %v10118_v63  ;;  %v10122_v63 = vand.u32 4294901760, %v10117_v40 }
 0x1bf   : > { %v8280_v9 = vadd.f32 %v1462_v62, %v827_v51  ;;  %5488 = vmatprep.mubr.msk.f32.mxu0 %vm6499_vm0, %v10002_v24  ;;  %5721 = vmatprep.mubr.msk.f32.mxu1 %vm6499_vm0, %v10002_v24  ;;  %v10121_v62 = vld [vmem:[#allocation64_spill] sm:$0xff] }
 0x1c0   : > { %v5072_v55 = vpop.f32.mrf.mxu0  ;;  %v5305_v18 = vpop.f32.mrf.mxu1 }
 0x1c2   : > { %v857_v43 = vpop.f32.mrf.mxu0  ;;  %v1468_v23 = vpop.f32.mrf.mxu1  ;;  %5489 = vmatmul.mubr.f32.gmra.mxu0 %v10119_v6  ;;  %5722 = vmatmul.mubr.f32.gmra.mxu1 %v10120_v10  ;;  %v10123_v10 = vld [vmem:[#allocation65_spill] sm:$0xff] }
 0x1c3   : > { %v8289_v0 = vadd.f32 %v1468_v23, %v837_v14  ;;  %5491 = vmatprep.mubr.msk.f32.mxu0 %vm6499_vm0, %v10002_v24  ;;  %5724 = vmatprep.mubr.msk.f32.mxu1 %vm6499_vm0, %v10002_v24 }
 0x1c4   : > { %v5075_v51 = vpop.f32.mrf.mxu0  ;;  %v5308_v7 = vpop.f32.mrf.mxu1 }
 0x1c5   : > { %v10124_v51 = vand.u32 4294901760, %v10119_v6 }
 0x1c6   : > { %v867_v2 = vpop.f32.mrf.mxu0  ;;  %v1474_v46 = vpop.f32.mrf.mxu1  ;;  %5492 = vmatmul.mubr.f32.gmra.mxu0 %v10121_v62  ;;  %5725 = vmatmul.mubr.f32.gmra.mxu1 %v10122_v63 }
 0x1c7   : > { %v8298_v55 = vadd.f32 %v1474_v46, %v847_v30  ;;  %5494 = vmatprep.mubr.msk.f32.mxu0 %vm6499_vm0, %v10002_v24  ;;  %5727 = vmatprep.mubr.msk.f32.mxu1 %vm6499_vm0, %v10002_v24 }
 0x1c8   : > { %v5078_v14 = vpop.f32.mrf.mxu0  ;;  %v5311_v21 = vpop.f32.mrf.mxu1 }
 0x1c9   : > { %v10125_v14 = vld [vmem:[#allocation67_spill] sm:$0xff]  ;;  %v10126_v21 = vand.u32 4294901760, %v10121_v62 }
 0x1ca   : > { %v877_v18 = vpop.f32.mrf.mxu0  ;;  %v1480_v23 = vpop.f32.mrf.mxu1  ;;  %5495 = vmatmul.mubr.f32.gmra.mxu0 %v10123_v10  ;;  %5728 = vmatmul.mubr.f32.gmra.mxu1 %v10124_v51 }
 0x1cb   : > { %v8307_v7 = vadd.f32 %v1480_v23, %v857_v43  ;;  %5497 = vmatprep.mubr.msk.f32.mxu0 %vm6499_vm0, %v10002_v24  ;;  %5730 = vmatprep.mubr.msk.f32.mxu1 %vm6499_vm0, %v10002_v24 }
 0x1cc   : > { %v5081_v30 = vpop.f32.mrf.mxu0  ;;  %v5314_v40 = vpop.f32.mrf.mxu1 }
 0x1cd   : > { %v10127_v30 = vld [vmem:[#allocation70_spill] sm:$0xff]  ;;  %v10128_v40 = vand.u32 4294901760, %v10123_v10 }
 0x1ce   : > { %v887_v46 = vpop.f32.mrf.mxu0  ;;  %v1486_v63 = vpop.f32.mrf.mxu1  ;;  %5498 = vmatmul.mubr.f32.gmra.mxu0 %v10125_v14  ;;  %5731 = vmatmul.mubr.f32.gmra.mxu1 %v10126_v21 }
 0x1cf   : > { %v8316_v42 = vadd.f32 %v1486_v63, %v867_v2  ;;  %5500 = vmatprep.mubr.msk.f32.mxu0 %vm6499_vm0, %v10002_v24  ;;  %5733 = vmatprep.mubr.msk.f32.mxu1 %vm6499_vm0, %v10002_v24 }
 0x1d0   : > { %v5084_v43 = vpop.f32.mrf.mxu0  ;;  %v5317_v6 = vpop.f32.mrf.mxu1 }
 0x1d1   : > { %v10129_v43 = vld [vmem:[#allocation72_spill] sm:$0xff]  ;;  %v10130_v6 = vand.u32 4294901760, %v10125_v14 }
 0x1d2   : > { %v897_v23 = vpop.f32.mrf.mxu0  ;;  %v1492_v51 = vpop.f32.mrf.mxu1  ;;  %5501 = vmatmul.mubr.f32.gmra.mxu0 %v10127_v30  ;;  %5734 = vmatmul.mubr.f32.gmra.mxu1 %v10128_v40 }
 0x1d3   : > { %v8325_v41 = vadd.f32 %v1492_v51, %v877_v18  ;;  %5503 = vmatprep.mubr.msk.f32.mxu0 %vm6499_vm0, %v10002_v24  ;;  %5736 = vmatprep.mubr.msk.f32.mxu1 %vm6499_vm0, %v10002_v24 }
 0x1d4   : > { %v5087_v2 = vpop.f32.mrf.mxu0  ;;  %v5320_v62 = vpop.f32.mrf.mxu1 }
 0x1d5   : > { %v10132_v2 = vld [vmem:[#allocation74_spill] sm:$0xff]  ;;  %v10133_v62 = vand.u32 4294901760, %v10127_v30 }
 0x1d6   : > { %v907_v63 = vpop.f32.mrf.mxu0  ;;  %v1498_v21 = vpop.f32.mrf.mxu1  ;;  %5504 = vmatmul.mubr.f32.gmra.mxu0 %v10129_v43  ;;  %5737 = vmatmul.mubr.f32.gmra.mxu1 %v10130_v6 }
 0x1d7   : > { %v8334_v54 = vadd.f32 %v1498_v21, %v887_v46  ;;  %5506 = vmatprep.mubr.msk.f32.mxu0 %vm6499_vm0, %v10002_v24  ;;  %5739 = vmatprep.mubr.msk.f32.mxu1 %vm6499_vm0, %v10002_v24 }
 0x1d8   : > { %v5090_v18 = vpop.f32.mrf.mxu0  ;;  %v5323_v10 = vpop.f32.mrf.mxu1 }
 0x1d9   : > { %10131 = vst [vmem:[#allocation22_spill] sm:$0xff] %v8334_v54  ;;  %v10135_v18 = vld [vmem:[#allocation75_spill] sm:$0xff]  ;;  %v10136_v10 = vand.u32 4294901760, %v10129_v43 }
 0x1da   : > { %v917_v51 = vpop.f32.mrf.mxu0  ;;  %v1504_v40 = vpop.f32.mrf.mxu1  ;;  %5507 = vmatmul.mubr.f32.gmra.mxu0 %v10132_v2  ;;  %5740 = vmatmul.mubr.f32.gmra.mxu1 %v10133_v62 }
 0x1db   : > { %v8343_v53 = vadd.f32 %v1504_v40, %v897_v23  ;;  %5509 = vmatprep.mubr.msk.f32.mxu0 %vm6499_vm0, %v10002_v24  ;;  %5742 = vmatprep.mubr.msk.f32.mxu1 %vm6499_vm0, %v10002_v24 }
 0x1dc   : > { %v5093_v46 = vpop.f32.mrf.mxu0  ;;  %v5326_v14 = vpop.f32.mrf.mxu1 }
 0x1dd   : > { %10134 = vst [vmem:[#allocation24_spill] sm:$0xff] %v8343_v53  ;;  %v10138_v46 = vld [vmem:[#allocation77_spill] sm:$0xff]  ;;  %v10139_v14 = vand.u32 4294901760, %v10132_v2 }
 0x1de   : > { %v927_v21 = vpop.f32.mrf.mxu0  ;;  %v1510_v6 = vpop.f32.mrf.mxu1  ;;  %5510 = vmatmul.mubr.f32.gmra.mxu0 %v10135_v18  ;;  %5743 = vmatmul.mubr.f32.gmra.mxu1 %v10136_v10 }
 0x1df   : > { %v8352_v60 = vadd.f32 %v1510_v6, %v907_v63  ;;  %5512 = vmatprep.mubr.msk.f32.mxu0 %vm6499_vm0, %v10002_v24  ;;  %5745 = vmatprep.mubr.msk.f32.mxu1 %vm6499_vm0, %v10002_v24 }
 0x1e0   : > { %v5096_v23 = vpop.f32.mrf.mxu0  ;;  %v5329_v30 = vpop.f32.mrf.mxu1 }
 0x1e1   : > { %10137 = vst [vmem:[#allocation26_spill] sm:$0xff] %v8352_v60  ;;  %v10141_v23 = vld [vmem:[#allocation80_spill] sm:$0xff]  ;;  %v10142_v30 = vand.u32 4294901760, %v10135_v18 }
 0x1e2   : > { %v937_v40 = vpop.f32.mrf.mxu0  ;;  %v1516_v62 = vpop.f32.mrf.mxu1  ;;  %5513 = vmatmul.mubr.f32.gmra.mxu0 %v10138_v46  ;;  %5746 = vmatmul.mubr.f32.gmra.mxu1 %v10139_v14 }
 0x1e3   : > { %v8361_v53 = vadd.f32 %v1516_v62, %v917_v51  ;;  %5515 = vmatprep.mubr.msk.f32.mxu0 %vm6499_vm0, %v10002_v24  ;;  %5748 = vmatprep.mubr.msk.f32.mxu1 %vm6499_vm0, %v10002_v24 }
 0x1e4   : > { %v5099_v63 = vpop.f32.mrf.mxu0  ;;  %v5332_v43 = vpop.f32.mrf.mxu1 }
 0x1e5   : > { %10140 = vst [vmem:[#allocation8_spill] sm:$0xff] %v8361_v53  ;;  %v10144_v63 = vld [vmem:[#allocation81_spill] sm:$0xff]  ;;  %v10145_v43 = vand.u32 4294901760, %v10138_v46 }
 0x1e6   : > { %v947_v6 = vpop.f32.mrf.mxu0  ;;  %v1522_v10 = vpop.f32.mrf.mxu1  ;;  %5516 = vmatmul.mubr.f32.gmra.mxu0 %v10141_v23  ;;  %5749 = vmatmul.mubr.f32.gmra.mxu1 %v10142_v30 }
 0x1e7   : > { %v8370_v60 = vadd.f32 %v1522_v10, %v927_v21  ;;  %5518 = vmatprep.mubr.msk.f32.mxu0 %vm6499_vm0, %v10002_v24  ;;  %5751 = vmatprep.mubr.msk.f32.mxu1 %vm6499_vm0, %v10002_v24 }
 0x1e8   : > { %v5102_v51 = vpop.f32.mrf.mxu0  ;;  %v5335_v2 = vpop.f32.mrf.mxu1 }
 0x1e9   : > { %10143 = vst [vmem:[#allocation27_spill] sm:$0xff] %v8370_v60  ;;  %v10147_v51 = vld [vmem:[#allocation83_spill] sm:$0xff]  ;;  %v10148_v2 = vand.u32 4294901760, %v10141_v23 }
 0x1ea   : > { %v957_v62 = vpop.f32.mrf.mxu0  ;;  %v1528_v14 = vpop.f32.mrf.mxu1  ;;  %5519 = vmatmul.mubr.f32.gmra.mxu0 %v10144_v63  ;;  %5752 = vmatmul.mubr.f32.gmra.mxu1 %v10145_v43 }
 0x1eb   : > { %v8379_v53 = vadd.f32 %v1528_v14, %v937_v40  ;;  %5521 = vmatprep.mubr.msk.f32.mxu0 %vm6499_vm0, %v10002_v24  ;;  %5754 = vmatprep.mubr.msk.f32.mxu1 %vm6499_vm0, %v10002_v24 }
 0x1ec   : > { %v5105_v21 = vpop.f32.mrf.mxu0  ;;  %v5338_v18 = vpop.f32.mrf.mxu1 }
 0x1ed   : > { %10146 = vst [vmem:[#allocation4_spill] sm:$0xff] %v8379_v53  ;;  %v10150_v21 = vld [vmem:[#allocation86_spill] sm:$0xff]  ;;  %v10151_v18 = vand.u32 4294901760, %v10144_v63 }
 0x1ee   : > { %v967_v10 = vpop.f32.mrf.mxu0  ;;  %v1534_v30 = vpop.f32.mrf.mxu1  ;;  %5522 = vmatmul.mubr.f32.gmra.mxu0 %v10147_v51  ;;  %5755 = vmatmul.mubr.f32.gmra.mxu1 %v10148_v2 }
 0x1ef   : > { %v8388_v60 = vadd.f32 %v1534_v30, %v947_v6  ;;  %5524 = vmatprep.mubr.msk.f32.mxu0 %vm6499_vm0, %v10002_v24  ;;  %5757 = vmatprep.mubr.msk.f32.mxu1 %vm6499_vm0, %v10002_v24 }
 0x1f0   : > { %v5108_v40 = vpop.f32.mrf.mxu0  ;;  %v5341_v46 = vpop.f32.mrf.mxu1 }
 0x1f1   : > { %10149 = vst [vmem:[#allocation10_spill] sm:$0xff] %v8388_v60  ;;  %v10153_v40 = vld [vmem:[#allocation87_spill] sm:$0xff]  ;;  %v10154_v46 = vand.u32 4294901760, %v10147_v51 }
 0x1f2   : > { %v977_v14 = vpop.f32.mrf.mxu0  ;;  %v1540_v43 = vpop.f32.mrf.mxu1  ;;  %5525 = vmatmul.mubr.f32.gmra.mxu0 %v10150_v21  ;;  %5758 = vmatmul.mubr.f32.gmra.mxu1 %v10151_v18 }
 0x1f3   : > { %v8397_v53 = vadd.f32 %v1540_v43, %v957_v62  ;;  %5527 = vmatprep.mubr.msk.f32.mxu0 %vm6499_vm0, %v10002_v24  ;;  %5760 = vmatprep.mubr.msk.f32.mxu1 %vm6499_vm0, %v10002_v24 }
 0x1f4   : > { %v5111_v6 = vpop.f32.mrf.mxu0  ;;  %v5344_v23 = vpop.f32.mrf.mxu1 }
 0x1f5   : > { %10152 = vst [vmem:[#allocation29_spill] sm:$0xff] %v8397_v53  ;;  %v10156_v6 = vld [vmem:[#allocation89_spill] sm:$0xff]  ;;  %v10157_v23 = vand.u32 4294901760, %v10150_v21 }
 0x1f6   : > { %v987_v30 = vpop.f32.mrf.mxu0  ;;  %v1546_v2 = vpop.f32.mrf.mxu1  ;;  %5528 = vmatmul.mubr.f32.gmra.mxu0 %v10153_v40  ;;  %5761 = vmatmul.mubr.f32.gmra.mxu1 %v10154_v46 }
 0x1f7   : > { %v8406_v60 = vadd.f32 %v1546_v2, %v967_v10  ;;  %5530 = vmatprep.mubr.msk.f32.mxu0 %vm6499_vm0, %v10002_v24  ;;  %5763 = vmatprep.mubr.msk.f32.mxu1 %vm6499_vm0, %v10002_v24 }
 0x1f8   : > { %v5114_v62 = vpop.f32.mrf.mxu0  ;;  %v5347_v63 = vpop.f32.mrf.mxu1 }
 0x1f9   : > { %10155 = vst [vmem:[#allocation5_spill] sm:$0xff] %v8406_v60  ;;  %v10159_v62 = vld [vmem:[#allocation91_spill] sm:$0xff]  ;;  %v10160_v63 = vand.u32 4294901760, %v10153_v40 }
 0x1fa   : > { %v997_v43 = vpop.f32.mrf.mxu0  ;;  %v1552_v18 = vpop.f32.mrf.mxu1  ;;  %5531 = vmatmul.mubr.f32.gmra.mxu0 %v10156_v6  ;;  %5764 = vmatmul.mubr.f32.gmra.mxu1 %v10157_v23 }
 0x1fb   : > { %v8415_v53 = vadd.f32 %v1552_v18, %v977_v14  ;;  %5533 = vmatprep.mubr.msk.f32.mxu0 %vm6499_vm0, %v10002_v24  ;;  %5766 = vmatprep.mubr.msk.f32.mxu1 %vm6499_vm0, %v10002_v24 }
 0x1fc   : > { %v5117_v10 = vpop.f32.mrf.mxu0  ;;  %v5350_v51 = vpop.f32.mrf.mxu1 }
 0x1fd   : > { %10158 = vst [vmem:[#allocation11_spill] sm:$0xff] %v8415_v53  ;;  %v10162_v10 = vld [vmem:[#allocation93_spill] sm:$0xff]  ;;  %v10163_v51 = vand.u32 4294901760, %v10156_v6 }
 0x1fe   : > { %v1007_v2 = vpop.f32.mrf.mxu0  ;;  %v1558_v46 = vpop.f32.mrf.mxu1  ;;  %5534 = vmatmul.mubr.f32.gmra.mxu0 %v10159_v62  ;;  %5767 = vmatmul.mubr.f32.gmra.mxu1 %v10160_v63  ;;  %v10168_v6 = vld [vmem:[#allocation109_spill] sm:$0xff]  ;;  %v10170_v54 = vand.u32 4294901760, %v10162_v10 }
 0x1ff   : > { %v8424_v60 = vadd.f32 %v1558_v46, %v987_v30  ;;  %5536 = vmatprep.mubr.msk.f32.mxu0 %vm6499_vm0, %v10002_v24  ;;  %5769 = vmatprep.mubr.msk.f32.mxu1 %vm6499_vm0, %v10002_v24 }
 0x200   : > { %v5120_v14 = vpop.f32.mrf.mxu0  ;;  %v5353_v21 = vpop.f32.mrf.mxu1 }
 0x201   : > { %10161 = vst [vmem:[#allocation32_spill] sm:$0xff] %v8424_v60  ;;  %v10165_v14 = vld [vmem:[#allocation96_spill] sm:$0xff]  ;;  %v10166_v21 = vand.u32 4294901760, %v10159_v62 }
 0x202   : > { %v1017_v18 = vpop.f32.mrf.mxu0  ;;  %v1564_v23 = vpop.f32.mrf.mxu1  ;;  %5537 = vmatmul.mubr.f32.gmra.mxu0 %v10162_v10  ;;  %5770 = vmatmul.mubr.f32.gmra.mxu1 %v10163_v51 }
 0x203   : > { %v8433_v53 = vadd.f32 %v1564_v23, %v997_v43  ;;  %5539 = vmatprep.mubr.msk.f32.mxu0 %vm6499_vm0, %v10002_v24  ;;  %5772 = vmatprep.mubr.msk.f32.mxu1 %vm6499_vm0, %v10002_v24 }
 0x204   : > { %v5123_v30 = vpop.f32.mrf.mxu0  ;;  %v5356_v40 = vpop.f32.mrf.mxu1 }
 0x205   : > { %10164 = vst [vmem:[#allocation7_spill] sm:$0xff] %v8433_v53  ;;  %v10169_v53 = vld [vmem:[#allocation97_spill] sm:$0xff] }
 0x206   : > { %v1570_v46 = vpop.f32.mrf.mxu1  ;;  %v1680_v63 = vpop.f32.mrf.mxu0  ;;  %5540 = vmatmul.mubr.f32.gmra.mxu0 %v10165_v14  ;;  %5773 = vmatmul.mubr.f32.gmra.mxu1 %v10166_v21 }
 0x207   : > { %v8442_v60 = vadd.f32 %v1570_v46, %v1007_v2  ;;  %v1681_v43 = vadd.f32 %v1680_v63, %v10168_v6  ;;  %5542 = vmatprep.mubr.msk.f32.mxu0 %vm6499_vm0, %v10002_v24  ;;  %5775 = vmatprep.mubr.msk.f32.mxu1 %vm6499_vm0, %v10002_v24  ;;  %v10172_v2 = vld [vmem:[#allocation112_spill] sm:$0xff] }
 0x208   : > { %v5359_v23 = vpop.f32.mrf.mxu1  ;;  %v5397_v51 = vpop.f32.mrf.mxu0 }
 0x209   : > { %10167 = vst [vmem:[#allocation33_spill] sm:$0xff] %v8442_v60  ;;  %v10173_v23 = vld [vmem:[#allocation99_spill] sm:$0xff]  ;;  %v10174_v60 = vand.u32 4294901760, %v10165_v14 }
 0x20a   : > { %v1576_v30 = vpop.f32.mrf.mxu1  ;;  %v1687_v40 = vpop.f32.mrf.mxu0  ;;  %5543 = vmatmul.mubr.f32.gmra.mxu0 %v10169_v53  ;;  %5776 = vmatmul.mubr.f32.gmra.mxu1 %v10170_v54  ;;  %v10175_v54 = vld [vmem:[#allocation115_spill] sm:$0xff] }
 0x20b   : > { %v8452_v62 = vadd.f32 %v1576_v30, %v1017_v18  ;;  %v1688_v46 = vadd.f32 %v1687_v40, %v10172_v2  ;;  %5545 = vmatprep.mubr.msk.f32.mxu0 %vm6499_vm0, %v10002_v24  ;;  %5778 = vmatprep.mubr.msk.f32.mxu1 %vm6499_vm0, %v10002_v24 }
 0x20c   : > { %v5362_v63 = vpop.f32.mrf.mxu1  ;;  %v5400_v21 = vpop.f32.mrf.mxu0 }
 0x20d   : > { %10171 = vst [vmem:[#allocation35_spill] sm:$0xff] %v8452_v62  ;;  %v10177_v63 = vld [vmem:[#allocation101_spill] sm:$0xff]  ;;  %v10178_v62 = vand.u32 4294901760, %v10169_v53 }
 0x20e   : > { %v1694_v6 = vpop.f32.mrf.mxu0  ;;  %5546 = vmatmul.mubr.f32.gmra.mxu0 %v10173_v23  ;;  %v2245_v51 = vpop.f32.mrf.mxu1  ;;  %5779 = vmatmul.mubr.f32.gmra.mxu1 %v10174_v60  ;;  %v10179_v60 = vld [vmem:[#allocation118_spill] sm:$0xff]  ;;  %v10183_v53 = vld [vmem:[#allocation121_spill] sm:$0xff] }
 0x20f   : > { %v1695_v18 = vadd.f32 %v1694_v6, %v10175_v54  ;;  %v8463_v10 = vadd.f32 %v2245_v51, %v1681_v43  ;;  %5548 = vmatprep.mubr.msk.f32.mxu0 %vm6499_vm0, %v10002_v24  ;;  %5781 = vmatprep.mubr.msk.f32.mxu1 %vm6499_vm0, %v10002_v24 }
 0x210   : > { %v5403_v30 = vpop.f32.mrf.mxu0  ;;  %v5636_v40 = vpop.f32.mrf.mxu1 }
 0x211   : > { %10176 = vst [vmem:[#allocation38_spill] sm:$0xff] %v8463_v10  ;;  %v10181_v30 = vld [vmem:[#allocation103_spill] sm:$0xff]  ;;  %v10182_v10 = vand.u32 4294901760, %v10173_v23  ;;  %v10187_v23 = vld [vmem:[#allocation124_spill] sm:$0xff] }
 0x212   : > { %v1701_v2 = vpop.f32.mrf.mxu0  ;;  %5549 = vmatmul.mubr.f32.gmra.mxu0 %v10177_v63  ;;  %v2253_v21 = vpop.f32.mrf.mxu1  ;;  %5782 = vmatmul.mubr.f32.gmra.mxu1 %v10178_v62 }
 0x213   : > { %v1702_v14 = vadd.f32 %v1701_v2, %v10179_v60  ;;  %v8473_v6 = vadd.f32 %v2253_v21, %v1688_v46  ;;  %5551 = vmatprep.mubr.msk.f32.mxu0 %vm6499_vm0, %v10002_v24  ;;  %5784 = vmatprep.mubr.msk.f32.mxu1 %vm6499_vm0, %v10002_v24 }
 0x214   : > { %v5406_v43 = vpop.f32.mrf.mxu0  ;;  %v5639_v51 = vpop.f32.mrf.mxu1 }
 0x215   : > { %10180 = vst [vmem:[#allocation40_spill] sm:$0xff] %v8473_v6  ;;  %v10185_v43 = vld [vmem:[#allocation106_spill] sm:$0xff]  ;;  %v10186_v6 = vand.u32 4294901760, %v10177_v63  ;;  %v10191_v63 = vld [vmem:[#allocation127_spill] sm:$0xff] }
 0x216   : > { %v1708_v54 = vpop.f32.mrf.mxu0  ;;  %5552 = vmatmul.mubr.f32.gmra.mxu0 %v10181_v30  ;;  %v2261_v40 = vpop.f32.mrf.mxu1  ;;  %5785 = vmatmul.mubr.f32.gmra.mxu1 %v10182_v10 }
 0x217   : > { %v1709_v62 = vadd.f32 %v1708_v54, %v10183_v53  ;;  %v8483_v2 = vadd.f32 %v2261_v40, %v1695_v18  ;;  %5554 = vmatprep.mubr.msk.f32.mxu0 %vm6499_vm0, %v10002_v24  ;;  %5787 = vmatprep.mubr.msk.f32.mxu1 %vm6499_vm0, %v10002_v24 }
 0x218   : > { %v5409_v46 = vpop.f32.mrf.mxu0  ;;  %v5642_v21 = vpop.f32.mrf.mxu1 }
 0x219   : > { %10184 = vst [vmem:[#allocation42_spill] sm:$0xff] %v8483_v2  ;;  %v10189_v46 = vld [vmem:[#allocation107_spill] sm:$0xff]  ;;  %v10190_v2 = vand.u32 4294901760, %v10181_v30  ;;  %v10195_v30 = vld [vmem:[#allocation130_spill] sm:$0xff] }
 0x21a   : > { %v1715_v60 = vpop.f32.mrf.mxu0  ;;  %5555 = vmatmul.mubr.f32.gmra.mxu0 %v10185_v43  ;;  %v2269_v51 = vpop.f32.mrf.mxu1  ;;  %5788 = vmatmul.mubr.f32.gmra.mxu1 %v10186_v6 }
 0x21b   : > { %v1716_v10 = vadd.f32 %v1715_v60, %v10187_v23  ;;  %v8493_v54 = vadd.f32 %v2269_v51, %v1702_v14  ;;  %5557 = vmatprep.mubr.msk.f32.mxu0 %vm6499_vm0, %v10002_v24  ;;  %5790 = vmatprep.mubr.msk.f32.mxu1 %vm6499_vm0, %v10002_v24 }
 0x21c   : > { %v5412_v18 = vpop.f32.mrf.mxu0  ;;  %v5645_v40 = vpop.f32.mrf.mxu1 }
 0x21d   : > { %10188 = vst [vmem:[#allocation43_spill] sm:$0xff] %v8493_v54  ;;  %v10193_v18 = vld [vmem:[#allocation110_spill] sm:$0xff]  ;;  %v10194_v54 = vand.u32 4294901760, %v10185_v43  ;;  %v10199_v43 = vld [vmem:[#allocation133_spill] sm:$0xff] }
 0x21e   : > { %v1722_v53 = vpop.f32.mrf.mxu0  ;;  %5558 = vmatmul.mubr.f32.gmra.mxu0 %v10189_v46  ;;  %v2277_v21 = vpop.f32.mrf.mxu1  ;;  %5791 = vmatmul.mubr.f32.gmra.mxu1 %v10190_v2 }
 0x21f   : > { %v1723_v6 = vadd.f32 %v1722_v53, %v10191_v63  ;;  %v8503_v60 = vadd.f32 %v2277_v21, %v1709_v62  ;;  %5560 = vmatprep.mubr.msk.f32.mxu0 %vm6499_vm0, %v10002_v24  ;;  %5793 = vmatprep.mubr.msk.f32.mxu1 %vm6499_vm0, %v10002_v24 }
 0x220   : > { %v5415_v14 = vpop.f32.mrf.mxu0  ;;  %v5648_v51 = vpop.f32.mrf.mxu1 }
 0x221   : > { %10192 = vst [vmem:[#allocation45_spill] sm:$0xff] %v8503_v60  ;;  %v10197_v14 = vld [vmem:[#allocation113_spill] sm:$0xff]  ;;  %v10198_v60 = vand.u32 4294901760, %v10189_v46  ;;  %v10203_v46 = vld [vmem:[#allocation136_spill] sm:$0xff] }
 0x222   : > { %v1729_v23 = vpop.f32.mrf.mxu0  ;;  %5561 = vmatmul.mubr.f32.gmra.mxu0 %v10193_v18  ;;  %v2285_v40 = vpop.f32.mrf.mxu1  ;;  %5794 = vmatmul.mubr.f32.gmra.mxu1 %v10194_v54 }
 0x223   : > { %v1730_v2 = vadd.f32 %v1729_v23, %v10195_v30  ;;  %v8513_v53 = vadd.f32 %v2285_v40, %v1716_v10  ;;  %5563 = vmatprep.mubr.msk.f32.mxu0 %vm6499_vm0, %v10002_v24  ;;  %5796 = vmatprep.mubr.msk.f32.mxu1 %vm6499_vm0, %v10002_v24 }
 0x224   : > { %v5418_v62 = vpop.f32.mrf.mxu0  ;;  %v5651_v21 = vpop.f32.mrf.mxu1 }
 0x225   : > { %10196 = vst [vmem:[#allocation48_spill] sm:$0xff] %v8513_v53  ;;  %v10201_v62 = vld [vmem:[#allocation116_spill] sm:$0xff]  ;;  %v10202_v53 = vand.u32 4294901760, %v10193_v18  ;;  %v10207_v18 = vld [vmem:[#allocation139_spill] sm:$0xff] }
 0x226   : > { %v1736_v63 = vpop.f32.mrf.mxu0  ;;  %5564 = vmatmul.mubr.f32.gmra.mxu0 %v10197_v14  ;;  %v2293_v51 = vpop.f32.mrf.mxu1  ;;  %5797 = vmatmul.mubr.f32.gmra.mxu1 %v10198_v60 }
 0x227   : > { %v1737_v54 = vadd.f32 %v1736_v63, %v10199_v43  ;;  %v8523_v23 = vadd.f32 %v2293_v51, %v1723_v6  ;;  %5566 = vmatprep.mubr.msk.f32.mxu0 %vm6499_vm0, %v10002_v24  ;;  %5799 = vmatprep.mubr.msk.f32.mxu1 %vm6499_vm0, %v10002_v24 }
 0x228   : > { %v5421_v10 = vpop.f32.mrf.mxu0  ;;  %v5654_v40 = vpop.f32.mrf.mxu1 }
 0x229   : > { %10200 = vst [vmem:[#allocation49_spill] sm:$0xff] %v8523_v23  ;;  %v10205_v10 = vld [vmem:[#allocation120_spill] sm:$0xff]  ;;  %v10206_v23 = vand.u32 4294901760, %v10197_v14  ;;  %v10211_v14 = vld [vmem:[#allocation141_spill] sm:$0xff] }
 0x22a   : > { %v1743_v30 = vpop.f32.mrf.mxu0  ;;  %5567 = vmatmul.mubr.f32.gmra.mxu0 %v10201_v62  ;;  %v2301_v21 = vpop.f32.mrf.mxu1  ;;  %5800 = vmatmul.mubr.f32.gmra.mxu1 %v10202_v53 }
 0x22b   : > { %v1744_v60 = vadd.f32 %v1743_v30, %v10203_v46  ;;  %v8533_v63 = vadd.f32 %v2301_v21, %v1730_v2  ;;  %5569 = vmatprep.mubr.msk.f32.mxu0 %vm6499_vm0, %v10002_v24  ;;  %5802 = vmatprep.mubr.msk.f32.mxu1 %vm6499_vm0, %v10002_v24 }
 0x22c   : > { %v5424_v6 = vpop.f32.mrf.mxu0  ;;  %v5657_v51 = vpop.f32.mrf.mxu1 }
 0x22d   : > { %10204 = vst [vmem:[#allocation51_spill] sm:$0xff] %v8533_v63  ;;  %v10209_v6 = vld [vmem:[#allocation122_spill] sm:$0xff]  ;;  %v10210_v63 = vand.u32 4294901760, %v10201_v62  ;;  %v10215_v62 = vld [vmem:[#allocation143_spill] sm:$0xff] }
 0x22e   : > { %v1750_v43 = vpop.f32.mrf.mxu0  ;;  %5570 = vmatmul.mubr.f32.gmra.mxu0 %v10205_v10  ;;  %v2309_v40 = vpop.f32.mrf.mxu1  ;;  %5803 = vmatmul.mubr.f32.gmra.mxu1 %v10206_v23 }
 0x22f   : > { %v1751_v53 = vadd.f32 %v1750_v43, %v10207_v18  ;;  %v8543_v30 = vadd.f32 %v2309_v40, %v1737_v54  ;;  %5572 = vmatprep.mubr.msk.f32.mxu0 %vm6499_vm0, %v10002_v24  ;;  %5805 = vmatprep.mubr.msk.f32.mxu1 %vm6499_vm0, %v10002_v24 }
 0x230   : > { %v5427_v2 = vpop.f32.mrf.mxu0  ;;  %v5660_v21 = vpop.f32.mrf.mxu1 }
 0x231   : > { %10208 = vst [vmem:[#allocation54_spill] sm:$0xff] %v8543_v30  ;;  %v10213_v2 = vld [vmem:[#allocation125_spill] sm:$0xff]  ;;  %v10214_v30 = vand.u32 4294901760, %v10205_v10 }
 0x232   : > { %v1757_v46 = vpop.f32.mrf.mxu0  ;;  %5573 = vmatmul.mubr.f32.gmra.mxu0 %v10209_v6  ;;  %v2317_v51 = vpop.f32.mrf.mxu1  ;;  %5806 = vmatmul.mubr.f32.gmra.mxu1 %v10210_v63 }
 0x233   : > { %v1758_v23 = vadd.f32 %v1757_v46, %v10211_v14  ;;  %v8553_v43 = vadd.f32 %v2317_v51, %v1744_v60  ;;  %5575 = vmatprep.mubr.msk.f32.mxu0 %vm6499_vm0, %v10002_v24  ;;  %5808 = vmatprep.mubr.msk.f32.mxu1 %vm6499_vm0, %v10002_v24 }
 0x234   : > { %v5430_v54 = vpop.f32.mrf.mxu0  ;;  %v5663_v40 = vpop.f32.mrf.mxu1 }
 0x235   : > { %10212 = vst [vmem:[#allocation56_spill] sm:$0xff] %v8553_v43  ;;  %v10216_v54 = vld [vmem:[#allocation128_spill] sm:$0xff]  ;;  %v10217_v43 = vand.u32 4294901760, %v10209_v6 }
 0x236   : > { %v1764_v18 = vpop.f32.mrf.mxu0  ;;  %5576 = vmatmul.mubr.f32.gmra.mxu0 %v10213_v2  ;;  %v2325_v21 = vpop.f32.mrf.mxu1  ;;  %5809 = vmatmul.mubr.f32.gmra.mxu1 %v10214_v30 }
 0x237   : > { %v1765_v63 = vadd.f32 %v1764_v18, %v10215_v62  ;;  %v8563_v46 = vadd.f32 %v2325_v21, %v1751_v53  ;;  %5578 = vmatprep.mubr.msk.f32.mxu0 %vm6499_vm0, %v10002_v24  ;;  %5811 = vmatprep.mubr.msk.f32.mxu1 %vm6499_vm0, %v10002_v24  ;;  %v10218_v62 = vld [vmem:[#allocation131_spill] sm:$0xff] }
 0x238   : > { %v5433_v60 = vpop.f32.mrf.mxu0  ;;  %v5666_v51 = vpop.f32.mrf.mxu1 }
 0x239   : > { %v10219_v51 = vand.u32 4294901760, %v10213_v2 }
 0x23a   : > { %v1771_v14 = vpop.f32.mrf.mxu0  ;;  %5579 = vmatmul.mubr.f32.gmra.mxu0 %v10216_v54  ;;  %v2333_v40 = vpop.f32.mrf.mxu1  ;;  %5812 = vmatmul.mubr.f32.gmra.mxu1 %v10217_v43 }
 0x23b   : > { %v1772_v10 = vadd.f32 %v1771_v14, %v7876_v32  ;;  %v8573_v30 = vadd.f32 %v2333_v40, %v1758_v23  ;;  %5581 = vmatprep.mubr.msk.f32.mxu0 %vm6499_vm0, %v10002_v24  ;;  %5814 = vmatprep.mubr.msk.f32.mxu1 %vm6499_vm0, %v10002_v24  ;;  %v10220_v40 = vld [vmem:[#allocation135_spill] sm:$0xff] }
 0x23c   : > { %v5436_v53 = vpop.f32.mrf.mxu0  ;;  %v5669_v18 = vpop.f32.mrf.mxu1 }
 0x23d   : > { %v10221_v18 = vand.u32 4294901760, %v10216_v54 }
 0x23e   : > { %v1778_v21 = vpop.f32.mrf.mxu0  ;;  %5582 = vmatmul.mubr.f32.gmra.mxu0 %v10218_v62  ;;  %v2341_v60 = vpop.f32.mrf.mxu1  ;;  %5815 = vmatmul.mubr.f32.gmra.mxu1 %v10219_v51  ;;  %v10222_v51 = vld [vmem:[#allocation137_spill] sm:$0xff] }
 0x23f   : > { %v1779_v6 = vadd.f32 %v1778_v21, %v7890_v22  ;;  %v8583_v32 = vadd.f32 %v2341_v60, %v1765_v63  ;;  %5584 = vmatprep.mubr.msk.f32.mxu0 %vm6499_vm0, %v10002_v24  ;;  %5817 = vmatprep.mubr.msk.f32.mxu1 %vm6499_vm0, %v10002_v24 }
 0x240   : > { %v5439_v23 = vpop.f32.mrf.mxu0  ;;  %v5672_v43 = vpop.f32.mrf.mxu1 }
 0x241   : > { %v10223_v43 = vand.u32 4294901760, %v10218_v62 }
 0x242   : > { %v1785_v14 = vpop.f32.mrf.mxu0  ;;  %5585 = vmatmul.mubr.f32.gmra.mxu0 %v10220_v40  ;;  %v2349_v53 = vpop.f32.mrf.mxu1  ;;  %5818 = vmatmul.mubr.f32.gmra.mxu1 %v10221_v18 }
 0x243   : > { %v1786_v2 = vadd.f32 %v1785_v14, %v7901_v44  ;;  %v8593_v22 = vadd.f32 %v2349_v53, %v1772_v10  ;;  %5587 = vmatprep.mubr.msk.f32.mxu0 %vm6499_vm0, %v10002_v24  ;;  %5820 = vmatprep.mubr.msk.f32.mxu1 %vm6499_vm0, %v10002_v24 }
 0x244   : > { %v5442_v63 = vpop.f32.mrf.mxu0  ;;  %v5675_v21 = vpop.f32.mrf.mxu1 }
 0x245   : > { %v10224_v63 = vand.u32 4294901760, %v10220_v40 }
 0x246   : > { %v1792_v60 = vpop.f32.mrf.mxu0  ;;  %5588 = vmatmul.mubr.f32.gmra.mxu0 %v10222_v51  ;;  %v2357_v23 = vpop.f32.mrf.mxu1  ;;  %5821 = vmatmul.mubr.f32.gmra.mxu1 %v10223_v43  ;;  %v10225_v43 = vand.u32 4294901760, %v10222_v51 }
 0x247   : > { %v1793_v54 = vadd.f32 %v1792_v60, %v7911_v56  ;;  %v8603_v44 = vadd.f32 %v2357_v23, %v1779_v6  ;;  %5590 = vmatprep.mubr.msk.f32.mxu0 %vm6499_vm0, %v10002_v24  ;;  %5823 = vmatprep.mubr.msk.f32.mxu1 %vm6499_vm0, %v10002_v24 }
 0x248   : > { %v5445_v10 = vpop.f32.mrf.mxu0  ;;  %v5678_v14 = vpop.f32.mrf.mxu1 }
 0x24a   : > { %v1799_v53 = vpop.f32.mrf.mxu0  ;;  %5591 = vmatmul.mubr.f32.gmra.mxu0 %v7838_v36  ;;  %v2365_v18 = vpop.f32.mrf.mxu1  ;;  %5824 = vmatmul.mubr.f32.gmra.mxu1 %v10224_v63 }
 0x24b   : > { %v1800_v62 = vadd.f32 %v1799_v53, %v7918_v37  ;;  %v8613_v56 = vadd.f32 %v2365_v18, %v1786_v2  ;;  %5593 = vmatprep.mubr.msk.f32.mxu0 %vm6499_vm0, %v10002_v24  ;;  %5826 = vmatprep.mubr.msk.f32.mxu1 %vm6499_vm0, %v10002_v24  ;;  %v10226_v18 = vand.u32 4294901760, %v7838_v36 }
 0x24c   : > { %v5448_v6 = vpop.f32.mrf.mxu0  ;;  %v5681_v21 = vpop.f32.mrf.mxu1 }
 0x24e   : > { %v1806_v60 = vpop.f32.mrf.mxu0  ;;  %5594 = vmatmul.mubr.f32.gmra.mxu0 %v7855_v8  ;;  %v2373_v23 = vpop.f32.mrf.mxu1  ;;  %5827 = vmatmul.mubr.f32.gmra.mxu1 %v10225_v43 }
 0x24f   : > { %v1807_v40 = vadd.f32 %v1806_v60, %v7925_v57  ;;  %v8623_v37 = vadd.f32 %v2373_v23, %v1793_v54  ;;  %5596 = vmatprep.mubr.msk.f32.mxu0 %vm6499_vm0, %v10002_v24  ;;  %5829 = vmatprep.mubr.msk.f32.mxu1 %vm6499_vm0, %v10002_v24  ;;  %v10227_v60 = vand.u32 4294901760, %v7855_v8 }
 0x250   : > { %v5451_v2 = vpop.f32.mrf.mxu0  ;;  %v5684_v10 = vpop.f32.mrf.mxu1 }
 0x251   : > { %v10228_v10 = vand.u32 4294901760, %v7872_v61 }
 0x252   : > { %v1813_v14 = vpop.f32.mrf.mxu0  ;;  %5597 = vmatmul.mubr.f32.gmra.mxu0 %v7872_v61  ;;  %v2381_v53 = vpop.f32.mrf.mxu1  ;;  %5830 = vmatmul.mubr.f32.gmra.mxu1 %v10226_v18  ;;  %v10231_v61 = vld [vmem:[#allocation6_spill] sm:$0xff] }
 0x253   : > { %v1814_v51 = vadd.f32 %v1813_v14, %v7933_v29  ;;  %v8633_v57 = vadd.f32 %v2381_v53, %v1800_v62  ;;  %5599 = vmatprep.mubr.msk.f32.mxu0 %vm6499_vm0, %v10002_v24  ;;  %5832 = vmatprep.mubr.msk.f32.mxu1 %vm6499_vm0, %v10002_v24  ;;  %v10229_v14 = vld [vmem:[#allocation3_spill] sm:$0xff] }
 0x254   : > { %v5454_v54 = vpop.f32.mrf.mxu0  ;;  %v5687_v63 = vpop.f32.mrf.mxu1 }
 0x255   : > { %v10230_v63 = vand.u32 4294901760, %v7888_v35 }
 0x256   : > { %v1820_v6 = vpop.f32.mrf.mxu0  ;;  %5600 = vmatmul.mubr.f32.gmra.mxu0 %v7888_v35  ;;  %v2389_v21 = vpop.f32.mrf.mxu1  ;;  %5833 = vmatmul.mubr.f32.gmra.mxu1 %v10227_v60 }
 0x257   : > { %v1821_v36 = vadd.f32 %v1820_v6, %v7944_v49  ;;  %v8643_v29 = vadd.f32 %v2389_v21, %v1807_v40  ;;  %5835 = vmatprep.mubr.msk.f32.mxu1 %vm6499_vm0, %v10002_v24  ;;  %5873 = vmatprep.mubr.msk.f32.mxu0 %vm6499_vm0, %v10002_v24 }
 0x258   : > { %v5457_v62 = vpop.f32.mrf.mxu0  ;;  %v5690_v23 = vpop.f32.mrf.mxu1 }
 0x259   : > { %v10232_v23 = vld [vmem:[#allocation9_spill] sm:$0xff] }
 0x25a   : > { %v1827_v43 = vpop.f32.mrf.mxu0  ;;  %v2397_v2 = vpop.f32.mrf.mxu1  ;;  %5836 = vmatmul.mubr.f32.gmra.mxu1 %v10228_v10  ;;  %5874 = vmatmul.mubr.f32.vlgmr.msra.gmra.mxu0 %v10229_v14 }
 0x25b   : > { %v1828_v8 = vadd.f32 %v1827_v43, %v7956_v28  ;;  %v8653_v49 = vadd.f32 %v2397_v2, %v1814_v51  ;;  %5838 = vmatprep.mubr.msk.f32.mxu1 %vm6499_vm0, %v10002_v24  ;;  %5876 = vmatprep.mubr.msk.f32.mxu0 %vm6499_vm0, %v10002_v24 }
 0x25c   : > { %v5460_v40 = vpop.f32.mrf.mxu0  ;;  %v5693_v53 = vpop.f32.mrf.mxu1 }
 0x25d   : > { %v10233_v40 = vld [vmem:[#allocation12_spill] sm:$0xff] }
 0x25e   : > { %v1834_v18 = vpop.f32.mrf.mxu0  ;;  %v2405_v54 = vpop.f32.mrf.mxu1  ;;  %5839 = vmatmul.mubr.f32.gmra.mxu1 %v10230_v63  ;;  %5877 = vmatmul.mubr.f32.gmra.mxu0 %v10231_v61  ;;  %v10234_v63 = vld [vmem:[#allocation13_spill] sm:$0xff] }
 0x25f   : > { %v1835_v6 = vadd.f32 %v1834_v18, %v7970_v3  ;;  %v8663_v28 = vadd.f32 %v2405_v54, %v1821_v36  ;;  %5879 = vmatprep.mubr.msk.f32.mxu0 %vm6499_vm0, %v10002_v24  ;;  %6112 = vmatprep.mubr.msk.f32.mxu1 %vm6499_vm0, %v10002_v24 }
 0x260   : > { %v5463_v51 = vpop.f32.mrf.mxu0  ;;  %v5696_v21 = vpop.f32.mrf.mxu1 }
 0x262   : > { %v1841_v60 = vpop.f32.mrf.mxu0  ;;  %v2413_v62 = vpop.f32.mrf.mxu1  ;;  %5880 = vmatmul.mubr.f32.gmra.mxu0 %v10232_v23  ;;  %6113 = vmatmul.mubr.f32.vlgmr.msra.gmra.mxu1 %v10229_v14 }
 0x263   : > { %v1842_v35 = vadd.f32 %v1841_v60, %v7984_v19  ;;  %v8672_v43 = vadd.f32 %v2413_v62, %v1828_v8  ;;  %5882 = vmatprep.mubr.msk.f32.mxu0 %vm6499_vm0, %v10002_v24  ;;  %6115 = vmatprep.mubr.msk.f32.mxu1 %vm6499_vm0, %v10002_v24  ;;  %v10235_v62 = vld [vmem:[#allocation14_spill] sm:$0xff] }
 0x264   : > { %v5466_v3 = vpop.f32.mrf.mxu0  ;;  %v5699_v36 = vpop.f32.mrf.mxu1 }
 0x266   : > { %v1848_v2 = vpop.f32.mrf.mxu0  ;;  %v2421_v10 = vpop.f32.mrf.mxu1  ;;  %5883 = vmatmul.mubr.f32.gmra.mxu0 %v10233_v40  ;;  %6116 = vmatmul.mubr.f32.gmra.mxu1 %v10231_v61 }
 0x267   : > { %v1849_v14 = vadd.f32 %v1848_v2, %v7998_v16  ;;  %v8681_v53 = vadd.f32 %v2421_v10, %v1835_v6  ;;  %5885 = vmatprep.mubr.msk.f32.mxu0 %vm6499_vm0, %v10002_v24  ;;  %6118 = vmatprep.mubr.msk.f32.mxu1 %vm6499_vm0, %v10002_v24  ;;  %v10236_v10 = vld [vmem:[#allocation15_spill] sm:$0xff] }
 0x268   : > { %v5469_v19 = vpop.f32.mrf.mxu0  ;;  %v5702_v8 = vpop.f32.mrf.mxu1 }
 0x26a   : > { %v1855_v18 = vpop.f32.mrf.mxu0  ;;  %v2429_v54 = vpop.f32.mrf.mxu1  ;;  %5886 = vmatmul.mubr.f32.gmra.mxu0 %v10234_v63  ;;  %6119 = vmatmul.mubr.f32.gmra.mxu1 %v10232_v23 }
 0x26b   : > { %v1856_v61 = vadd.f32 %v1855_v18, %v8012_v15  ;;  %v8690_v51 = vadd.f32 %v2429_v54, %v1842_v35  ;;  %5888 = vmatprep.mubr.msk.f32.mxu0 %vm6499_vm0, %v10002_v24  ;;  %6121 = vmatprep.mubr.msk.f32.mxu1 %vm6499_vm0, %v10002_v24  ;;  %v10237_v54 = vld [vmem:[#allocation16_spill] sm:$0xff] }
 0x26c   : > { %v5472_v16 = vpop.f32.mrf.mxu0  ;;  %v5705_v6 = vpop.f32.mrf.mxu1 }
 0x26e   : > { %v1862_v21 = vpop.f32.mrf.mxu0  ;;  %v2437_v60 = vpop.f32.mrf.mxu1  ;;  %5889 = vmatmul.mubr.f32.gmra.mxu0 %v10235_v62  ;;  %6122 = vmatmul.mubr.f32.gmra.mxu1 %v10233_v40 }
 0x26f   : > { %v1863_v23 = vadd.f32 %v1862_v21, %v8026_v38  ;;  %v8699_v3 = vadd.f32 %v2437_v60, %v1849_v14  ;;  %5891 = vmatprep.mubr.msk.f32.mxu0 %vm6499_vm0, %v10002_v24  ;;  %6124 = vmatprep.mubr.msk.f32.mxu1 %vm6499_vm0, %v10002_v24  ;;  %v10238_v60 = vld [vmem:[#allocation17_spill] sm:$0xff] }
 0x270   : > { %v5475_v15 = vpop.f32.mrf.mxu0  ;;  %v5708_v35 = vpop.f32.mrf.mxu1 }
 0x272   : > { %v1869_v36 = vpop.f32.mrf.mxu0  ;;  %v2445_v2 = vpop.f32.mrf.mxu1  ;;  %5892 = vmatmul.mubr.f32.gmra.mxu0 %v10236_v10  ;;  %6125 = vmatmul.mubr.f32.gmra.mxu1 %v10234_v63 }
 0x273   : > { %v1870_v40 = vadd.f32 %v1869_v36, %v8040_v20  ;;  %v8708_v19 = vadd.f32 %v2445_v2, %v1856_v61  ;;  %5894 = vmatprep.mubr.msk.f32.mxu0 %vm6499_vm0, %v10002_v24  ;;  %6127 = vmatprep.mubr.msk.f32.mxu1 %vm6499_vm0, %v10002_v24  ;;  %v10239_v2 = vld [vmem:[#allocation18_spill] sm:$0xff] }
 0x274   : > { %v5478_v38 = vpop.f32.mrf.mxu0  ;;  %v5711_v14 = vpop.f32.mrf.mxu1 }
 0x276   : > { %v1876_v8 = vpop.f32.mrf.mxu0  ;;  %v2453_v18 = vpop.f32.mrf.mxu1  ;;  %5895 = vmatmul.mubr.f32.gmra.mxu0 %v10237_v54  ;;  %6128 = vmatmul.mubr.f32.gmra.mxu1 %v10235_v62 }
 0x277   : > { %v1877_v63 = vadd.f32 %v1876_v8, %v8054_v1  ;;  %v8717_v16 = vadd.f32 %v2453_v18, %v1863_v23  ;;  %5897 = vmatprep.mubr.msk.f32.mxu0 %vm6499_vm0, %v10002_v24  ;;  %6130 = vmatprep.mubr.msk.f32.mxu1 %vm6499_vm0, %v10002_v24  ;;  %v10240_v18 = vld [vmem:[#allocation19_spill] sm:$0xff] }
 0x278   : > { %v5481_v20 = vpop.f32.mrf.mxu0  ;;  %v5714_v61 = vpop.f32.mrf.mxu1 }
 0x27a   : > { %v1883_v6 = vpop.f32.mrf.mxu0  ;;  %v2461_v21 = vpop.f32.mrf.mxu1  ;;  %5898 = vmatmul.mubr.f32.gmra.mxu0 %v10238_v60  ;;  %6131 = vmatmul.mubr.f32.gmra.mxu1 %v10236_v10 }
 0x27b   : > { %v1884_v62 = vadd.f32 %v1883_v6, %v8068_v13  ;;  %v8726_v15 = vadd.f32 %v2461_v21, %v1870_v40  ;;  %5900 = vmatprep.mubr.msk.f32.mxu0 %vm6499_vm0, %v10002_v24  ;;  %6133 = vmatprep.mubr.msk.f32.mxu1 %vm6499_vm0, %v10002_v24  ;;  %v10241_v21 = vld [vmem:[#allocation20_spill] sm:$0xff] }
 0x27c   : > { %v5484_v1 = vpop.f32.mrf.mxu0  ;;  %v5717_v23 = vpop.f32.mrf.mxu1 }
 0x27e   : > { %v1890_v35 = vpop.f32.mrf.mxu0  ;;  %v2469_v36 = vpop.f32.mrf.mxu1  ;;  %5901 = vmatmul.mubr.f32.gmra.mxu0 %v10239_v2  ;;  %6134 = vmatmul.mubr.f32.gmra.mxu1 %v10237_v54 }
 0x27f   : > { %v1891_v10 = vadd.f32 %v1890_v35, %v8082_v26  ;;  %v8735_v38 = vadd.f32 %v2469_v36, %v1877_v63  ;;  %5903 = vmatprep.mubr.msk.f32.mxu0 %vm6499_vm0, %v10002_v24  ;;  %6136 = vmatprep.mubr.msk.f32.mxu1 %vm6499_vm0, %v10002_v24  ;;  %v10242_v36 = vld [vmem:[#allocation21_spill] sm:$0xff] }
 0x280   : > { %v5487_v13 = vpop.f32.mrf.mxu0  ;;  %v5720_v40 = vpop.f32.mrf.mxu1 }
 0x282   : > { %v1897_v14 = vpop.f32.mrf.mxu0  ;;  %v2477_v8 = vpop.f32.mrf.mxu1  ;;  %5904 = vmatmul.mubr.f32.gmra.mxu0 %v10240_v18  ;;  %6137 = vmatmul.mubr.f32.gmra.mxu1 %v10238_v60 }
 0x283   : > { %v1898_v54 = vadd.f32 %v1897_v14, %v8096_v34  ;;  %v8744_v20 = vadd.f32 %v2477_v8, %v1884_v62  ;;  %5906 = vmatprep.mubr.msk.f32.mxu0 %vm6499_vm0, %v10002_v24  ;;  %6139 = vmatprep.mubr.msk.f32.mxu1 %vm6499_vm0, %v10002_v24  ;;  %v10243_v8 = vld [vmem:[#allocation23_spill] sm:$0xff] }
 0x284   : > { %v5490_v26 = vpop.f32.mrf.mxu0  ;;  %v5723_v63 = vpop.f32.mrf.mxu1 }
 0x286   : > { %v1904_v61 = vpop.f32.mrf.mxu0  ;;  %v2485_v6 = vpop.f32.mrf.mxu1  ;;  %5907 = vmatmul.mubr.f32.gmra.mxu0 %v10241_v21  ;;  %6140 = vmatmul.mubr.f32.gmra.mxu1 %v10239_v2 }
 0x287   : > { %v1905_v60 = vadd.f32 %v1904_v61, %v8110_v17  ;;  %v8753_v1 = vadd.f32 %v2485_v6, %v1891_v10  ;;  %5909 = vmatprep.mubr.msk.f32.mxu0 %vm6499_vm0, %v10002_v24  ;;  %6142 = vmatprep.mubr.msk.f32.mxu1 %vm6499_vm0, %v10002_v24  ;;  %v10244_v6 = vld [vmem:[#allocation25_spill] sm:$0xff] }
 0x288   : > { %v5493_v34 = vpop.f32.mrf.mxu0  ;;  %v5726_v62 = vpop.f32.mrf.mxu1 }
 0x28a   : > { %v1911_v23 = vpop.f32.mrf.mxu0  ;;  %v2493_v35 = vpop.f32.mrf.mxu1  ;;  %5910 = vmatmul.mubr.f32.gmra.mxu0 %v10242_v36  ;;  %6143 = vmatmul.mubr.f32.gmra.mxu1 %v10240_v18 }
 0x28b   : > { %v1912_v2 = vadd.f32 %v1911_v23, %v8124_v47  ;;  %v8762_v13 = vadd.f32 %v2493_v35, %v1898_v54  ;;  %5912 = vmatprep.mubr.msk.f32.mxu0 %vm6499_vm0, %v10002_v24  ;;  %6145 = vmatprep.mubr.msk.f32.mxu1 %vm6499_vm0, %v10002_v24  ;;  %v10245_v35 = vld [vmem:[#allocation28_spill] sm:$0xff] }
 0x28c   : > { %v5496_v17 = vpop.f32.mrf.mxu0  ;;  %v5729_v10 = vpop.f32.mrf.mxu1 }
 0x28e   : > { %v1918_v40 = vpop.f32.mrf.mxu0  ;;  %v2501_v14 = vpop.f32.mrf.mxu1  ;;  %5913 = vmatmul.mubr.f32.gmra.mxu0 %v10243_v8  ;;  %6146 = vmatmul.mubr.f32.gmra.mxu1 %v10241_v21 }
 0x28f   : > { %v1919_v18 = vadd.f32 %v1918_v40, %v8138_v11  ;;  %v8771_v26 = vadd.f32 %v2501_v14, %v1905_v60  ;;  %5915 = vmatprep.mubr.msk.f32.mxu0 %vm6499_vm0, %v10002_v24  ;;  %6148 = vmatprep.mubr.msk.f32.mxu1 %vm6499_vm0, %v10002_v24  ;;  %v10246_v14 = vld [vmem:[#allocation30_spill] sm:$0xff] }
 0x290   : > { %v5499_v47 = vpop.f32.mrf.mxu0  ;;  %v5732_v54 = vpop.f32.mrf.mxu1 }
 0x292   : > { %v1925_v63 = vpop.f32.mrf.mxu0  ;;  %v2509_v61 = vpop.f32.mrf.mxu1  ;;  %5916 = vmatmul.mubr.f32.gmra.mxu0 %v10244_v6  ;;  %6149 = vmatmul.mubr.f32.gmra.mxu1 %v10242_v36 }
 0x293   : > { %v1926_v21 = vadd.f32 %v1925_v63, %v8152_v45  ;;  %v8780_v34 = vadd.f32 %v2509_v61, %v1912_v2  ;;  %5918 = vmatprep.mubr.msk.f32.mxu0 %vm6499_vm0, %v10002_v24  ;;  %6151 = vmatprep.mubr.msk.f32.mxu1 %vm6499_vm0, %v10002_v24  ;;  %v10247_v61 = vld [vmem:[#allocation31_spill] sm:$0xff] }
 0x294   : > { %v5502_v11 = vpop.f32.mrf.mxu0  ;;  %v5735_v60 = vpop.f32.mrf.mxu1 }
 0x296   : > { %v1932_v62 = vpop.f32.mrf.mxu0  ;;  %v2517_v23 = vpop.f32.mrf.mxu1  ;;  %5919 = vmatmul.mubr.f32.gmra.mxu0 %v10245_v35  ;;  %6152 = vmatmul.mubr.f32.gmra.mxu1 %v10243_v8 }
 0x297   : > { %v1933_v36 = vadd.f32 %v1932_v62, %v8163_v33  ;;  %v8789_v17 = vadd.f32 %v2517_v23, %v1919_v18  ;;  %5921 = vmatprep.mubr.msk.f32.mxu0 %vm6499_vm0, %v10002_v24  ;;  %6154 = vmatprep.mubr.msk.f32.mxu1 %vm6499_vm0, %v10002_v24  ;;  %v10248_v23 = vld [vmem:[#allocation34_spill] sm:$0xff] }
 0x298   : > { %v5505_v45 = vpop.f32.mrf.mxu0  ;;  %v5738_v2 = vpop.f32.mrf.mxu1 }
 0x29a   : > { %v1939_v10 = vpop.f32.mrf.mxu0  ;;  %v2525_v40 = vpop.f32.mrf.mxu1  ;;  %5922 = vmatmul.mubr.f32.gmra.mxu0 %v10246_v14  ;;  %6155 = vmatmul.mubr.f32.gmra.mxu1 %v10244_v6 }
 0x29b   : > { %v1940_v8 = vadd.f32 %v1939_v10, %v8172_v59  ;;  %v8798_v47 = vadd.f32 %v2525_v40, %v1926_v21  ;;  %5924 = vmatprep.mubr.msk.f32.mxu0 %vm6499_vm0, %v10002_v24  ;;  %6157 = vmatprep.mubr.msk.f32.mxu1 %vm6499_vm0, %v10002_v24  ;;  %v10249_v40 = vld [vmem:[#allocation36_spill] sm:$0xff] }
 0x29c   : > { %v5508_v33 = vpop.f32.mrf.mxu0  ;;  %v5741_v18 = vpop.f32.mrf.mxu1 }
 0x29e   : > { %v1946_v54 = vpop.f32.mrf.mxu0  ;;  %v2533_v63 = vpop.f32.mrf.mxu1  ;;  %5925 = vmatmul.mubr.f32.gmra.mxu0 %v10247_v61  ;;  %6158 = vmatmul.mubr.f32.gmra.mxu1 %v10245_v35 }
 0x29f   : > { %v1947_v6 = vadd.f32 %v1946_v54, %v8181_v5  ;;  %v8807_v11 = vadd.f32 %v2533_v63, %v1933_v36  ;;  %5927 = vmatprep.mubr.msk.f32.mxu0 %vm6499_vm0, %v10002_v24  ;;  %6160 = vmatprep.mubr.msk.f32.mxu1 %vm6499_vm0, %v10002_v24  ;;  %v10250_v63 = vld [vmem:[#allocation37_spill] sm:$0xff] }
 0x2a0   : > { %v5511_v59 = vpop.f32.mrf.mxu0  ;;  %v5744_v21 = vpop.f32.mrf.mxu1 }
 0x2a2   : > { %v1953_v60 = vpop.f32.mrf.mxu0  ;;  %v2541_v62 = vpop.f32.mrf.mxu1  ;;  %5928 = vmatmul.mubr.f32.gmra.mxu0 %v10248_v23  ;;  %6161 = vmatmul.mubr.f32.gmra.mxu1 %v10246_v14 }
 0x2a3   : > { %v1954_v35 = vadd.f32 %v1953_v60, %v8190_v50  ;;  %v8816_v45 = vadd.f32 %v2541_v62, %v1940_v8  ;;  %5930 = vmatprep.mubr.msk.f32.mxu0 %vm6499_vm0, %v10002_v24  ;;  %6163 = vmatprep.mubr.msk.f32.mxu1 %vm6499_vm0, %v10002_v24  ;;  %v10251_v62 = vld [vmem:[#allocation39_spill] sm:$0xff] }
 0x2a4   : > { %v5514_v5 = vpop.f32.mrf.mxu0  ;;  %v5747_v36 = vpop.f32.mrf.mxu1 }
 0x2a6   : > { %v1960_v2 = vpop.f32.mrf.mxu0  ;;  %v2549_v10 = vpop.f32.mrf.mxu1  ;;  %5931 = vmatmul.mubr.f32.gmra.mxu0 %v10249_v40  ;;  %6164 = vmatmul.mubr.f32.gmra.mxu1 %v10247_v61 }
 0x2a7   : > { %v1961_v14 = vadd.f32 %v1960_v2, %v8199_v39  ;;  %v8825_v33 = vadd.f32 %v2549_v10, %v1947_v6  ;;  %5933 = vmatprep.mubr.msk.f32.mxu0 %vm6499_vm0, %v10002_v24  ;;  %6166 = vmatprep.mubr.msk.f32.mxu1 %vm6499_vm0, %v10002_v24  ;;  %v10252_v10 = vld [vmem:[#allocation41_spill] sm:$0xff] }
 0x2a8   : > { %v5517_v50 = vpop.f32.mrf.mxu0  ;;  %v5750_v8 = vpop.f32.mrf.mxu1 }
 0x2aa   : > { %v1967_v18 = vpop.f32.mrf.mxu0  ;;  %v2557_v54 = vpop.f32.mrf.mxu1  ;;  %5934 = vmatmul.mubr.f32.gmra.mxu0 %v10250_v63  ;;  %6167 = vmatmul.mubr.f32.gmra.mxu1 %v10248_v23 }
 0x2ab   : > { %v1968_v61 = vadd.f32 %v1967_v18, %v8208_v25  ;;  %v8834_v59 = vadd.f32 %v2557_v54, %v1954_v35  ;;  %5936 = vmatprep.mubr.msk.f32.mxu0 %vm6499_vm0, %v10002_v24  ;;  %6169 = vmatprep.mubr.msk.f32.mxu1 %vm6499_vm0, %v10002_v24  ;;  %v10253_v54 = vld [vmem:[#allocation44_spill] sm:$0xff] }
 0x2ac   : > { %v5520_v39 = vpop.f32.mrf.mxu0  ;;  %v5753_v6 = vpop.f32.mrf.mxu1 }
 0x2ae   : > { %v1974_v21 = vpop.f32.mrf.mxu0  ;;  %v2565_v60 = vpop.f32.mrf.mxu1  ;;  %5937 = vmatmul.mubr.f32.gmra.mxu0 %v10251_v62  ;;  %6170 = vmatmul.mubr.f32.gmra.mxu1 %v10249_v40 }
 0x2af   : > { %v1975_v23 = vadd.f32 %v1974_v21, %v8217_v31  ;;  %v8843_v5 = vadd.f32 %v2565_v60, %v1961_v14  ;;  %5939 = vmatprep.mubr.msk.f32.mxu0 %vm6499_vm0, %v10002_v24  ;;  %6172 = vmatprep.mubr.msk.f32.mxu1 %vm6499_vm0, %v10002_v24  ;;  %v10254_v60 = vld [vmem:[#allocation46_spill] sm:$0xff] }
 0x2b0   : > { %v5523_v25 = vpop.f32.mrf.mxu0  ;;  %v5756_v35 = vpop.f32.mrf.mxu1 }
 0x2b2   : > { %v1981_v36 = vpop.f32.mrf.mxu0  ;;  %v2573_v2 = vpop.f32.mrf.mxu1  ;;  %5940 = vmatmul.mubr.f32.gmra.mxu0 %v10252_v10  ;;  %6173 = vmatmul.mubr.f32.gmra.mxu1 %v10250_v63 }
 0x2b3   : > { %v1982_v40 = vadd.f32 %v1981_v36, %v8226_v12  ;;  %v8852_v50 = vadd.f32 %v2573_v2, %v1968_v61  ;;  %5942 = vmatprep.mubr.msk.f32.mxu0 %vm6499_vm0, %v10002_v24  ;;  %6175 = vmatprep.mubr.msk.f32.mxu1 %vm6499_vm0, %v10002_v24  ;;  %v10255_v2 = vld [vmem:[#allocation47_spill] sm:$0xff] }
 0x2b4   : > { %v5526_v31 = vpop.f32.mrf.mxu0  ;;  %v5759_v14 = vpop.f32.mrf.mxu1 }
 0x2b6   : > { %v1988_v8 = vpop.f32.mrf.mxu0  ;;  %v2581_v18 = vpop.f32.mrf.mxu1  ;;  %5943 = vmatmul.mubr.f32.gmra.mxu0 %v10253_v54  ;;  %6176 = vmatmul.mubr.f32.gmra.mxu1 %v10251_v62 }
 0x2b7   : > { %v1989_v63 = vadd.f32 %v1988_v8, %v8235_v52  ;;  %v8861_v39 = vadd.f32 %v2581_v18, %v1975_v23  ;;  %5945 = vmatprep.mubr.msk.f32.mxu0 %vm6499_vm0, %v10002_v24  ;;  %6178 = vmatprep.mubr.msk.f32.mxu1 %vm6499_vm0, %v10002_v24  ;;  %v10256_v18 = vld [vmem:[#allocation50_spill] sm:$0xff] }
 0x2b8   : > { %v5529_v12 = vpop.f32.mrf.mxu0  ;;  %v5762_v61 = vpop.f32.mrf.mxu1 }
 0x2ba   : > { %v1995_v6 = vpop.f32.mrf.mxu0  ;;  %v2589_v21 = vpop.f32.mrf.mxu1  ;;  %5946 = vmatmul.mubr.f32.gmra.mxu0 %v10254_v60  ;;  %6179 = vmatmul.mubr.f32.gmra.mxu1 %v10252_v10 }
 0x2bb   : > { %v1996_v62 = vadd.f32 %v1995_v6, %v8244_v4  ;;  %v8870_v25 = vadd.f32 %v2589_v21, %v1982_v40  ;;  %5948 = vmatprep.mubr.msk.f32.mxu0 %vm6499_vm0, %v10002_v24  ;;  %6181 = vmatprep.mubr.msk.f32.mxu1 %vm6499_vm0, %v10002_v24  ;;  %v10257_v21 = vld [vmem:[#allocation52_spill] sm:$0xff] }
 0x2bc   : > { %v5532_v52 = vpop.f32.mrf.mxu0  ;;  %v5765_v23 = vpop.f32.mrf.mxu1 }
 0x2be   : > { %v2002_v35 = vpop.f32.mrf.mxu0  ;;  %v2597_v36 = vpop.f32.mrf.mxu1  ;;  %5949 = vmatmul.mubr.f32.gmra.mxu0 %v10255_v2  ;;  %6182 = vmatmul.mubr.f32.gmra.mxu1 %v10253_v54 }
 0x2bf   : > { %v2003_v10 = vadd.f32 %v2002_v35, %v8253_v48  ;;  %v8879_v31 = vadd.f32 %v2597_v36, %v1989_v63  ;;  %5951 = vmatprep.mubr.msk.f32.mxu0 %vm6499_vm0, %v10002_v24  ;;  %6184 = vmatprep.mubr.msk.f32.mxu1 %vm6499_vm0, %v10002_v24  ;;  %v10258_v36 = vld [vmem:[#allocation53_spill] sm:$0xff] }
 0x2c0   : > { %v5535_v4 = vpop.f32.mrf.mxu0  ;;  %v5768_v40 = vpop.f32.mrf.mxu1 }
 0x2c2   : > { %v2009_v14 = vpop.f32.mrf.mxu0  ;;  %v2605_v8 = vpop.f32.mrf.mxu1  ;;  %5952 = vmatmul.mubr.f32.gmra.mxu0 %v10256_v18  ;;  %6185 = vmatmul.mubr.f32.gmra.mxu1 %v10254_v60 }
 0x2c3   : > { %v2010_v54 = vadd.f32 %v2009_v14, %v8262_v58  ;;  %v8888_v12 = vadd.f32 %v2605_v8, %v1996_v62  ;;  %5954 = vmatprep.mubr.msk.f32.mxu0 %vm6499_vm0, %v10002_v24  ;;  %6187 = vmatprep.mubr.msk.f32.mxu1 %vm6499_vm0, %v10002_v24  ;;  %v10259_v8 = vld [vmem:[#allocation55_spill] sm:$0xff] }
 0x2c4   : > { %v5538_v48 = vpop.f32.mrf.mxu0  ;;  %v5771_v63 = vpop.f32.mrf.mxu1 }
 0x2c6   : > { %v2016_v61 = vpop.f32.mrf.mxu0  ;;  %v2613_v6 = vpop.f32.mrf.mxu1  ;;  %5955 = vmatmul.mubr.f32.gmra.mxu0 %v10257_v21  ;;  %6188 = vmatmul.mubr.f32.gmra.mxu1 %v10255_v2 }
 0x2c7   : > { %v2017_v60 = vadd.f32 %v2016_v61, %v8271_v27  ;;  %v8897_v52 = vadd.f32 %v2613_v6, %v2003_v10  ;;  %5957 = vmatprep.mubr.msk.f32.mxu0 %vm6499_vm0, %v10002_v24  ;;  %6190 = vmatprep.mubr.msk.f32.mxu1 %vm6499_vm0, %v10002_v24  ;;  %v10260_v6 = vld [vmem:[#allocation57_spill] sm:$0xff] }
 0x2c8   : > { %v5541_v58 = vpop.f32.mrf.mxu0  ;;  %v5774_v62 = vpop.f32.mrf.mxu1 }
 0x2ca   : > { %v2023_v23 = vpop.f32.mrf.mxu0  ;;  %v2621_v35 = vpop.f32.mrf.mxu1  ;;  %5958 = vmatmul.mubr.f32.gmra.mxu0 %v10258_v36  ;;  %6191 = vmatmul.mubr.f32.gmra.mxu1 %v10256_v18 }
 0x2cb   : > { %v2024_v2 = vadd.f32 %v2023_v23, %v8280_v9  ;;  %v8906_v4 = vadd.f32 %v2621_v35, %v2010_v54  ;;  %5960 = vmatprep.mubr.msk.f32.mxu0 %vm6499_vm0, %v10002_v24  ;;  %6193 = vmatprep.mubr.msk.f32.mxu1 %vm6499_vm0, %v10002_v24  ;;  %v10261_v35 = vld [vmem:[#allocation60_spill] sm:$0xff] }
 0x2cc   : > { %v5544_v27 = vpop.f32.mrf.mxu0  ;;  %v5777_v10 = vpop.f32.mrf.mxu1 }
 0x2ce   : > { %v2030_v40 = vpop.f32.mrf.mxu0  ;;  %v2629_v14 = vpop.f32.mrf.mxu1  ;;  %5961 = vmatmul.mubr.f32.gmra.mxu0 %v10259_v8  ;;  %6194 = vmatmul.mubr.f32.gmra.mxu1 %v10257_v21 }
 0x2cf   : > { %v2031_v18 = vadd.f32 %v2030_v40, %v8289_v0  ;;  %v8915_v48 = vadd.f32 %v2629_v14, %v2017_v60  ;;  %5963 = vmatprep.mubr.msk.f32.mxu0 %vm6499_vm0, %v10002_v24  ;;  %6196 = vmatprep.mubr.msk.f32.mxu1 %vm6499_vm0, %v10002_v24  ;;  %v10262_v14 = vld [vmem:[#allocation62_spill] sm:$0xff] }
 0x2d0   : > { %v5547_v9 = vpop.f32.mrf.mxu0  ;;  %v5780_v54 = vpop.f32.mrf.mxu1 }
 0x2d2   : > { %v2037_v63 = vpop.f32.mrf.mxu0  ;;  %v2637_v61 = vpop.f32.mrf.mxu1  ;;  %5964 = vmatmul.mubr.f32.gmra.mxu0 %v10260_v6  ;;  %6197 = vmatmul.mubr.f32.gmra.mxu1 %v10258_v36 }
 0x2d3   : > { %v2038_v21 = vadd.f32 %v2037_v63, %v8298_v55  ;;  %v8924_v58 = vadd.f32 %v2637_v61, %v2024_v2  ;;  %5966 = vmatprep.mubr.msk.f32.mxu0 %vm6499_vm0, %v10002_v24  ;;  %6199 = vmatprep.mubr.msk.f32.mxu1 %vm6499_vm0, %v10002_v24  ;;  %v10263_v61 = vld [vmem:[#allocation63_spill] sm:$0xff] }
 0x2d4   : > { %v5550_v0 = vpop.f32.mrf.mxu0  ;;  %v5783_v60 = vpop.f32.mrf.mxu1 }
 0x2d6   : > { %v2044_v62 = vpop.f32.mrf.mxu0  ;;  %v2645_v23 = vpop.f32.mrf.mxu1  ;;  %5967 = vmatmul.mubr.f32.gmra.mxu0 %v10261_v35  ;;  %6200 = vmatmul.mubr.f32.gmra.mxu1 %v10259_v8 }
 0x2d7   : > { %v2045_v36 = vadd.f32 %v2044_v62, %v8307_v7  ;;  %v8933_v27 = vadd.f32 %v2645_v23, %v2031_v18  ;;  %5969 = vmatprep.mubr.msk.f32.mxu0 %vm6499_vm0, %v10002_v24  ;;  %6202 = vmatprep.mubr.msk.f32.mxu1 %vm6499_vm0, %v10002_v24  ;;  %v10264_v23 = vld [vmem:[#allocation66_spill] sm:$0xff] }
 0x2d8   : > { %v5553_v55 = vpop.f32.mrf.mxu0  ;;  %v5786_v2 = vpop.f32.mrf.mxu1 }
 0x2d9   : > { %v10265_v55 = vld [vmem:[#allocation22_spill] sm:$0xff] }
 0x2da   : > { %v2051_v10 = vpop.f32.mrf.mxu0  ;;  %v2653_v40 = vpop.f32.mrf.mxu1  ;;  %5970 = vmatmul.mubr.f32.gmra.mxu0 %v10262_v14  ;;  %6203 = vmatmul.mubr.f32.gmra.mxu1 %v10260_v6 }
 0x2db   : > { %v2052_v8 = vadd.f32 %v2051_v10, %v8316_v42  ;;  %v8942_v9 = vadd.f32 %v2653_v40, %v2038_v21  ;;  %5972 = vmatprep.mubr.msk.f32.mxu0 %vm6499_vm0, %v10002_v24  ;;  %6205 = vmatprep.mubr.msk.f32.mxu1 %vm6499_vm0, %v10002_v24 }
 0x2dc   : > { %v5556_v7 = vpop.f32.mrf.mxu0  ;;  %v5789_v18 = vpop.f32.mrf.mxu1 }
 0x2dd   : > { %v10266_v7 = vld [vmem:[#allocation68_spill] sm:$0xff] }
 0x2de   : > { %v2058_v54 = vpop.f32.mrf.mxu0  ;;  %v2661_v63 = vpop.f32.mrf.mxu1  ;;  %5973 = vmatmul.mubr.f32.gmra.mxu0 %v10263_v61  ;;  %6206 = vmatmul.mubr.f32.gmra.mxu1 %v10261_v35  ;;  %v10267_v18 = vld [vmem:[#allocation24_spill] sm:$0xff] }
 0x2df   : > { %v2059_v6 = vadd.f32 %v2058_v54, %v8325_v41  ;;  %v8951_v0 = vadd.f32 %v2661_v63, %v2045_v36  ;;  %5975 = vmatprep.mubr.msk.f32.mxu0 %vm6499_vm0, %v10002_v24  ;;  %6208 = vmatprep.mubr.msk.f32.mxu1 %vm6499_vm0, %v10002_v24 }
 0x2e0   : > { %v5559_v42 = vpop.f32.mrf.mxu0  ;;  %v5792_v21 = vpop.f32.mrf.mxu1 }
 0x2e2   : > { %v2065_v60 = vpop.f32.mrf.mxu0  ;;  %v2669_v62 = vpop.f32.mrf.mxu1  ;;  %5976 = vmatmul.mubr.f32.gmra.mxu0 %v10264_v23  ;;  %6209 = vmatmul.mubr.f32.gmra.mxu1 %v10262_v14 }
 0x2e3   : > { %v2066_v35 = vadd.f32 %v2065_v60, %v10265_v55  ;;  %v8960_v2 = vadd.f32 %v2669_v62, %v2052_v8  ;;  %5978 = vmatprep.mubr.msk.f32.mxu0 %vm6499_vm0, %v10002_v24  ;;  %6211 = vmatprep.mubr.msk.f32.mxu1 %vm6499_vm0, %v10002_v24  ;;  %v10268_v60 = vld [vmem:[#allocation69_spill] sm:$0xff]  ;;  %v10269_v62 = vld [vmem:[#allocation26_spill] sm:$0xff] }
 0x2e4   : > { %v5562_v41 = vpop.f32.mrf.mxu0  ;;  %v5795_v36 = vpop.f32.mrf.mxu1 }
 0x2e6   : > { %v2072_v10 = vpop.f32.mrf.mxu0  ;;  %v2677_v40 = vpop.f32.mrf.mxu1  ;;  %5979 = vmatmul.mubr.f32.gmra.mxu0 %v10266_v7  ;;  %6212 = vmatmul.mubr.f32.gmra.mxu1 %v10263_v61 }
 0x2e7   : > { %v2073_v14 = vadd.f32 %v2072_v10, %v10267_v18  ;;  %v8969_v54 = vadd.f32 %v2677_v40, %v2059_v6  ;;  %5981 = vmatprep.mubr.msk.f32.mxu0 %vm6499_vm0, %v10002_v24  ;;  %6214 = vmatprep.mubr.msk.f32.mxu1 %vm6499_vm0, %v10002_v24  ;;  %v10270_v40 = vld [vmem:[#allocation71_spill] sm:$0xff]  ;;  %v10271_v18 = vld [vmem:[#allocation8_spill] sm:$0xff] }
 0x2e8   : > { %v5565_v8 = vpop.f32.mrf.mxu0  ;;  %v5798_v63 = vpop.f32.mrf.mxu1 }
 0x2ea   : > { %v2079_v42 = vpop.f32.mrf.mxu0  ;;  %v2685_v21 = vpop.f32.mrf.mxu1  ;;  %5982 = vmatmul.mubr.f32.gmra.mxu0 %v10268_v60  ;;  %6215 = vmatmul.mubr.f32.gmra.mxu1 %v10264_v23 }
 0x2eb   : > { %v2080_v61 = vadd.f32 %v2079_v42, %v10269_v62  ;;  %v8978_v55 = vadd.f32 %v2685_v21, %v2066_v35  ;;  %5984 = vmatprep.mubr.msk.f32.mxu0 %vm6499_vm0, %v10002_v24  ;;  %6217 = vmatprep.mubr.msk.f32.mxu1 %vm6499_vm0, %v10002_v24  ;;  %v10273_v62 = vld [vmem:[#allocation73_spill] sm:$0xff] }
 0x2ec   : > { %v5568_v6 = vpop.f32.mrf.mxu0  ;;  %v5801_v41 = vpop.f32.mrf.mxu1 }
 0x2ed   : > { %v10274_v6 = vld [vmem:[#allocation27_spill] sm:$0xff] }
 0x2ee   : > { %v2086_v36 = vpop.f32.mrf.mxu0  ;;  %v2693_v10 = vpop.f32.mrf.mxu1  ;;  %5985 = vmatmul.mubr.f32.gmra.mxu0 %v10270_v40  ;;  %6218 = vmatmul.mubr.f32.gmra.mxu1 %v10266_v7 }
 0x2ef   : > { %v2087_v23 = vadd.f32 %v2086_v36, %v10271_v18  ;;  %v8987_v8 = vadd.f32 %v2693_v10, %v2073_v14  ;;  %5987 = vmatprep.mubr.msk.f32.mxu0 %vm6499_vm0, %v10002_v24  ;;  %6220 = vmatprep.mubr.msk.f32.mxu1 %vm6499_vm0, %v10002_v24 }
 0x2f0   : > { %v5571_v35 = vpop.f32.mrf.mxu0  ;;  %v5804_v63 = vpop.f32.mrf.mxu1 }
 0x2f1   : > { %10272 = vst [vmem:[#allocation58_spill] sm:$0xff] %v8987_v8  ;;  %v10276_v35 = vld [vmem:[#allocation76_spill] sm:$0xff] }
 0x2f2   : > { %v2093_v42 = vpop.f32.mrf.mxu0  ;;  %v2701_v21 = vpop.f32.mrf.mxu1  ;;  %5988 = vmatmul.mubr.f32.gmra.mxu0 %v10273_v62  ;;  %6221 = vmatmul.mubr.f32.gmra.mxu1 %v10268_v60  ;;  %v10277_v63 = vld [vmem:[#allocation4_spill] sm:$0xff] }
 0x2f3   : > { %v2094_v7 = vadd.f32 %v2093_v42, %v10274_v6  ;;  %v8996_v41 = vadd.f32 %v2701_v21, %v2080_v61  ;;  %5990 = vmatprep.mubr.msk.f32.mxu0 %vm6499_vm0, %v10002_v24  ;;  %6223 = vmatprep.mubr.msk.f32.mxu1 %vm6499_vm0, %v10002_v24 }
 0x2f4   : > { %v5574_v14 = vpop.f32.mrf.mxu0  ;;  %v5807_v36 = vpop.f32.mrf.mxu1 }
 0x2f5   : > { %10275 = vst [vmem:[#allocation59_spill] sm:$0xff] %v8996_v41  ;;  %v10279_v14 = vld [vmem:[#allocation78_spill] sm:$0xff] }
 0x2f6   : > { %v2100_v10 = vpop.f32.mrf.mxu0  ;;  %v2709_v18 = vpop.f32.mrf.mxu1  ;;  %5991 = vmatmul.mubr.f32.gmra.mxu0 %v10276_v35  ;;  %6224 = vmatmul.mubr.f32.gmra.mxu1 %v10270_v40  ;;  %v10280_v36 = vld [vmem:[#allocation10_spill] sm:$0xff] }
 0x2f7   : > { %v2101_v60 = vadd.f32 %v2100_v10, %v10277_v63  ;;  %v9005_v8 = vadd.f32 %v2709_v18, %v2087_v23  ;;  %5993 = vmatprep.mubr.msk.f32.mxu0 %vm6499_vm0, %v10002_v24  ;;  %6226 = vmatprep.mubr.msk.f32.mxu1 %vm6499_vm0, %v10002_v24 }
 0x2f8   : > { %v5577_v61 = vpop.f32.mrf.mxu0  ;;  %v5810_v42 = vpop.f32.mrf.mxu1 }
 0x2f9   : > { %10278 = vst [vmem:[#allocation61_spill] sm:$0xff] %v9005_v8  ;;  %v10282_v61 = vld [vmem:[#allocation79_spill] sm:$0xff]  ;;  %v10283_v42 = vld [vmem:[#allocation29_spill] sm:$0xff] }
 0x2fa   : > { %v2107_v21 = vpop.f32.mrf.mxu0  ;;  %v2717_v6 = vpop.f32.mrf.mxu1  ;;  %5994 = vmatmul.mubr.f32.gmra.mxu0 %v10279_v14  ;;  %6227 = vmatmul.mubr.f32.gmra.mxu1 %v10273_v62 }
 0x2fb   : > { %v2108_v40 = vadd.f32 %v2107_v21, %v10280_v36  ;;  %v9014_v41 = vadd.f32 %v2717_v6, %v2094_v7  ;;  %5996 = vmatprep.mubr.msk.f32.mxu0 %vm6499_vm0, %v10002_v24  ;;  %6229 = vmatprep.mubr.msk.f32.mxu1 %vm6499_vm0, %v10002_v24 }
 0x2fc   : > { %v5580_v23 = vpop.f32.mrf.mxu0  ;;  %v5813_v10 = vpop.f32.mrf.mxu1 }
 0x2fd   : > { %10281 = vst [vmem:[#allocation64_spill] sm:$0xff] %v9014_v41  ;;  %v10285_v23 = vld [vmem:[#allocation82_spill] sm:$0xff]  ;;  %v10286_v10 = vld [vmem:[#allocation5_spill] sm:$0xff] }
 0x2fe   : > { %v2114_v18 = vpop.f32.mrf.mxu0  ;;  %v2725_v63 = vpop.f32.mrf.mxu1  ;;  %5997 = vmatmul.mubr.f32.gmra.mxu0 %v10282_v61  ;;  %6230 = vmatmul.mubr.f32.gmra.mxu1 %v10276_v35 }
 0x2ff   : > { %v2115_v62 = vadd.f32 %v2114_v18, %v10283_v42  ;;  %v9023_v8 = vadd.f32 %v2725_v63, %v2101_v60  ;;  %5999 = vmatprep.mubr.msk.f32.mxu0 %vm6499_vm0, %v10002_v24  ;;  %6232 = vmatprep.mubr.msk.f32.mxu1 %vm6499_vm0, %v10002_v24 }
 0x300   : > { %v5583_v7 = vpop.f32.mrf.mxu0  ;;  %v5816_v21 = vpop.f32.mrf.mxu1 }
 0x301   : > { %10284 = vst [vmem:[#allocation65_spill] sm:$0xff] %v9023_v8  ;;  %v10288_v7 = vld [vmem:[#allocation84_spill] sm:$0xff]  ;;  %v10289_v21 = vld [vmem:[#allocation11_spill] sm:$0xff] }
 0x302   : > { %v2121_v6 = vpop.f32.mrf.mxu0  ;;  %v2733_v36 = vpop.f32.mrf.mxu1  ;;  %6000 = vmatmul.mubr.f32.gmra.mxu0 %v10285_v23  ;;  %6233 = vmatmul.mubr.f32.gmra.mxu1 %v10279_v14 }
 0x303   : > { %v2122_v35 = vadd.f32 %v2121_v6, %v10286_v10  ;;  %v9032_v41 = vadd.f32 %v2733_v36, %v2108_v40  ;;  %6002 = vmatprep.mubr.msk.f32.mxu0 %vm6499_vm0, %v10002_v24  ;;  %6235 = vmatprep.mubr.msk.f32.mxu1 %vm6499_vm0, %v10002_v24 }
 0x304   : > { %v5586_v60 = vpop.f32.mrf.mxu0  ;;  %v5819_v18 = vpop.f32.mrf.mxu1 }
 0x305   : > { %10287 = vst [vmem:[#allocation67_spill] sm:$0xff] %v9032_v41  ;;  %v10291_v60 = vld [vmem:[#allocation85_spill] sm:$0xff]  ;;  %v10292_v18 = vld [vmem:[#allocation32_spill] sm:$0xff] }
 0x306   : > { %v2128_v63 = vpop.f32.mrf.mxu0  ;;  %v2741_v42 = vpop.f32.mrf.mxu1  ;;  %6003 = vmatmul.mubr.f32.gmra.mxu0 %v10288_v7  ;;  %6236 = vmatmul.mubr.f32.gmra.mxu1 %v10282_v61 }
 0x307   : > { %v2129_v14 = vadd.f32 %v2128_v63, %v10289_v21  ;;  %v9041_v8 = vadd.f32 %v2741_v42, %v2115_v62  ;;  %6005 = vmatprep.mubr.msk.f32.mxu0 %vm6499_vm0, %v10002_v24  ;;  %6238 = vmatprep.mubr.msk.f32.mxu1 %vm6499_vm0, %v10002_v24 }
 0x308   : > { %v5589_v40 = vpop.f32.mrf.mxu0  ;;  %v5822_v6 = vpop.f32.mrf.mxu1 }
 0x309   : > { %10290 = vst [vmem:[#allocation70_spill] sm:$0xff] %v9041_v8  ;;  %v10294_v40 = vld [vmem:[#allocation88_spill] sm:$0xff]  ;;  %v10295_v6 = vld [vmem:[#allocation7_spill] sm:$0xff] }
 0x30a   : > { %v2135_v36 = vpop.f32.mrf.mxu0  ;;  %v2749_v10 = vpop.f32.mrf.mxu1  ;;  %6006 = vmatmul.mubr.f32.gmra.mxu0 %v10291_v60  ;;  %6239 = vmatmul.mubr.f32.gmra.mxu1 %v10285_v23 }
 0x30b   : > { %v2136_v61 = vadd.f32 %v2135_v36, %v10292_v18  ;;  %v9050_v41 = vadd.f32 %v2749_v10, %v2122_v35  ;;  %6008 = vmatprep.mubr.msk.f32.mxu0 %vm6499_vm0, %v10002_v24  ;;  %6241 = vmatprep.mubr.msk.f32.mxu1 %vm6499_vm0, %v10002_v24 }
 0x30c   : > { %v5592_v62 = vpop.f32.mrf.mxu0  ;;  %v5825_v63 = vpop.f32.mrf.mxu1 }
 0x30d   : > { %10293 = vst [vmem:[#allocation72_spill] sm:$0xff] %v9050_v41  ;;  %v10296_v62 = vld [vmem:[#allocation90_spill] sm:$0xff]  ;;  %v10297_v63 = vld [vmem:[#allocation33_spill] sm:$0xff] }
 0x30e   : > { %v2142_v42 = vpop.f32.mrf.mxu0  ;;  %v2757_v21 = vpop.f32.mrf.mxu1  ;;  %6009 = vmatmul.mubr.f32.gmra.mxu0 %v10294_v40  ;;  %6242 = vmatmul.mubr.f32.gmra.mxu1 %v10288_v7 }
 0x30f   : > { %v2143_v23 = vadd.f32 %v2142_v42, %v10295_v6  ;;  %v9059_v8 = vadd.f32 %v2757_v21, %v2129_v14  ;;  %6011 = vmatprep.mubr.msk.f32.mxu0 %vm6499_vm0, %v10002_v24  ;;  %6244 = vmatprep.mubr.msk.f32.mxu1 %vm6499_vm0, %v10002_v24 }
 0x310   : > { %v5595_v35 = vpop.f32.mrf.mxu0  ;;  %v5828_v36 = vpop.f32.mrf.mxu1 }
 0x311   : > { %v10299_v35 = vld [vmem:[#allocation92_spill] sm:$0xff] }
 0x312   : > { %v2149_v10 = vpop.f32.mrf.mxu0  ;;  %v2765_v18 = vpop.f32.mrf.mxu1  ;;  %6012 = vmatmul.mubr.f32.gmra.mxu0 %v10296_v62  ;;  %6245 = vmatmul.mubr.f32.gmra.mxu1 %v10291_v60  ;;  %v10300_v60 = vld [vmem:[#allocation35_spill] sm:$0xff] }
 0x313   : > { %v2150_v7 = vadd.f32 %v2149_v10, %v10297_v63  ;;  %v9068_v41 = vadd.f32 %v2765_v18, %v2136_v61  ;;  %6014 = vmatprep.mubr.msk.f32.mxu0 %vm6499_vm0, %v10002_v24  ;;  %6247 = vmatprep.mubr.msk.f32.mxu1 %vm6499_vm0, %v10002_v24 }
 0x314   : > { %v5598_v14 = vpop.f32.mrf.mxu0  ;;  %v5831_v42 = vpop.f32.mrf.mxu1 }
 0x315   : > { %10298 = vst [vmem:[#allocation74_spill] sm:$0xff] %v9068_v41  ;;  %v10301_v42 = vld [vmem:[#allocation94_spill] sm:$0xff] }
 0x316   : > { %v2156_v21 = vpop.f32.mrf.mxu0  ;;  %v2773_v6 = vpop.f32.mrf.mxu1  ;;  %6015 = vmatmul.mubr.f32.gmra.mxu0 %v10299_v35  ;;  %6248 = vmatmul.mubr.f32.gmra.mxu1 %v10294_v40 }
 0x317   : > { %v2157_v36 = vadd.f32 %v2156_v21, %v10300_v60  ;;  %v9077_v10 = vadd.f32 %v2773_v6, %v2143_v23  ;;  %6017 = vmatprep.mubr.msk.f32.mxu0 %vm6499_vm0, %v10002_v24  ;;  %6250 = vmatprep.mubr.msk.f32.mxu1 %vm6499_vm0, %v10002_v24  ;;  %v10303_v60 = vld [vmem:[#allocation95_spill] sm:$0xff] }
 0x318   : > { %v5601_v61 = vpop.f32.mrf.mxu0  ;;  %v5834_v18 = vpop.f32.mrf.mxu1 }
 0x319   : > { %v10305_v18 = vld [vmem:[#allocation38_spill] sm:$0xff] }
 0x31a   : > { %v2781_v63 = vpop.f32.mrf.mxu1  ;;  %v2908_v14 = vpop.f32.mrf.mxu0  ;;  %6018 = vmatmul.mubr.f32.gmra.mxu0 %v10301_v42  ;;  %6251 = vmatmul.mubr.f32.gmra.mxu1 %v10296_v62 }
 0x31b   : > { %v9085_v41 = vadd.f32 %v2781_v63, %v2150_v7  ;;  %6020 = vmatprep.mubr.msk.f32.mxu0 %vm6499_vm0, %v10002_v24  ;;  %6253 = vmatprep.mubr.msk.f32.mxu1 %vm6499_vm0, %v10002_v24  ;;  %v2909_v63 = vadd.f32 %v2908_v14, %v10305_v18  ;;  %v10309_v18 = vld [vmem:[#allocation42_spill] sm:$0xff] }
 0x31c   : > { %v5837_v40 = vpop.f32.mrf.mxu1  ;;  %v5875_v23 = vpop.f32.mrf.mxu0 }
 0x31d   : > { %10302 = vst [vmem:[#allocation75_spill] sm:$0xff] %v9085_v41  ;;  %v10306_v23 = vld [vmem:[#allocation98_spill] sm:$0xff] }
 0x31e   : > { %v2789_v21 = vpop.f32.mrf.mxu1  ;;  %v2914_v6 = vpop.f32.mrf.mxu0  ;;  %6021 = vmatmul.mubr.f32.gmra.mxu0 %v10303_v60  ;;  %6254 = vmatmul.mubr.f32.gmra.mxu1 %v10299_v35 }
 0x31f   : > { %v9094_v61 = vadd.f32 %v2789_v21, %v2157_v36  ;;  %6023 = vmatprep.mubr.msk.f32.mxu0 %vm6499_vm0, %v10002_v24  ;;  %6256 = vmatprep.mubr.msk.f32.mxu1 %vm6499_vm0, %v10002_v24 }
 0x320   : > { %v5840_v62 = vpop.f32.mrf.mxu1  ;;  %v5878_v7 = vpop.f32.mrf.mxu0 }
 0x321   : > { %10304 = vst [vmem:[#allocation77_spill] sm:$0xff] %v9094_v61  ;;  %v10307_v61 = vld [vmem:[#allocation40_spill] sm:$0xff] }
 0x322   : > { %v2920_v40 = vpop.f32.mrf.mxu0  ;;  %6024 = vmatmul.mubr.f32.gmra.mxu0 %v10306_v23  ;;  %v3403_v41 = vpop.f32.mrf.mxu1  ;;  %6257 = vmatmul.mubr.f32.gmra.mxu1 %v10301_v42  ;;  %v2915_v62 = vadd.f32 %v2914_v6, %v10307_v61  ;;  %v10308_v7 = vld [vmem:[#allocation100_spill] sm:$0xff] }
 0x323   : > { %v3404_v35 = vadd.f32 %v3403_v41, %v2909_v63  ;;  %6026 = vmatprep.mubr.msk.f32.mxu0 %vm6499_vm0, %v10002_v24  ;;  %6259 = vmatprep.mubr.msk.f32.mxu1 %vm6499_vm0, %v10002_v24  ;;  %v2921_v63 = vadd.f32 %v2920_v40, %v10309_v18 }
 0x324   : > { %v5881_v36 = vpop.f32.mrf.mxu0  ;;  %v6114_v21 = vpop.f32.mrf.mxu1 }
 0x325   : > { %3815 = vst [vmem:[%s9108_s9] sm:$0xff] %v3404_v35  ;;  %v10310_v36 = vld [vmem:[#allocation102_spill] sm:$0xff] }
 0x326   : > { %v2926_v14 = vpop.f32.mrf.mxu0  ;;  %6027 = vmatmul.mubr.f32.gmra.mxu0 %v10308_v7  ;;  %v3409_v42 = vpop.f32.mrf.mxu1  ;;  %6260 = vmatmul.mubr.f32.gmra.mxu1 %v10303_v60 }
 0x327   : > { %v3410_v41 = vadd.f32 %v3409_v42, %v2915_v62  ;;  %6029 = vmatprep.mubr.msk.f32.mxu0 %vm6499_vm0, %v10002_v24  ;;  %6262 = vmatprep.mubr.msk.f32.mxu1 %vm6499_vm0, %v10002_v24 }
 0x328   : > { %v5884_v6 = vpop.f32.mrf.mxu0  ;;  %v6117_v61 = vpop.f32.mrf.mxu1 }
 0x329   : > { %3816 = vst [vmem:[%s9108_s9 + $0x8] sm:$0xff] %v3410_v41  ;;  %v10311_v6 = vld [vmem:[#allocation43_spill] sm:$0xff]  ;;  %v10312_v41 = vld [vmem:[#allocation104_spill] sm:$0xff] }
 0x32a   : > { %v2932_v35 = vpop.f32.mrf.mxu0  ;;  %6030 = vmatmul.mubr.f32.gmra.mxu0 %v10310_v36  ;;  %v3415_v21 = vpop.f32.mrf.mxu1  ;;  %6263 = vmatmul.mubr.f32.gmra.mxu1 %v10306_v23  ;;  %v2927_v61 = vadd.f32 %v2926_v14, %v10311_v6 }
 0x32b   : > { %v3416_v60 = vadd.f32 %v3415_v21, %v2921_v63  ;;  %6032 = vmatprep.mubr.msk.f32.mxu0 %vm6499_vm0, %v10002_v24  ;;  %6265 = vmatprep.mubr.msk.f32.mxu1 %vm6499_vm0, %v10002_v24 }
 0x32c   : > { %v5887_v62 = vpop.f32.mrf.mxu0  ;;  %v6120_v42 = vpop.f32.mrf.mxu1 }
 0x32d   : > { %3817 = vst [vmem:[%s9108_s9 + $0x10] sm:$0xff] %v3416_v60  ;;  %v10313_v62 = vld [vmem:[#allocation45_spill] sm:$0xff] }
 0x32e   : > { %v2938_v40 = vpop.f32.mrf.mxu0  ;;  %6033 = vmatmul.mubr.f32.gmra.mxu0 %v10312_v41  ;;  %v3421_v18 = vpop.f32.mrf.mxu1  ;;  %6266 = vmatmul.mubr.f32.gmra.mxu1 %v10308_v7  ;;  %v2933_v42 = vadd.f32 %v2932_v35, %v10313_v62  ;;  %v10314_v60 = vld [vmem:[#allocation105_spill] sm:$0xff] }
 0x32f   : > { %v3422_v23 = vadd.f32 %v3421_v18, %v2927_v61  ;;  %6035 = vmatprep.mubr.msk.f32.mxu0 %vm6499_vm0, %v10002_v24  ;;  %6268 = vmatprep.mubr.msk.f32.mxu1 %vm6499_vm0, %v10002_v24 }
 0x330   : > { %v5890_v63 = vpop.f32.mrf.mxu0  ;;  %v6123_v21 = vpop.f32.mrf.mxu1 }
 0x331   : > { %3818 = vst [vmem:[%s9108_s9 + $0x18] sm:$0xff] %v3422_v23  ;;  %v10315_v63 = vld [vmem:[#allocation48_spill] sm:$0xff] }
 0x332   : > { %v2944_v14 = vpop.f32.mrf.mxu0  ;;  %6036 = vmatmul.mubr.f32.gmra.mxu0 %v10314_v60  ;;  %v3427_v6 = vpop.f32.mrf.mxu1  ;;  %6269 = vmatmul.mubr.f32.gmra.mxu1 %v10310_v36  ;;  %v2939_v21 = vadd.f32 %v2938_v40, %v10315_v63  ;;  %v10316_v23 = vld [vmem:[#allocation108_spill] sm:$0xff] }
 0x333   : > { %v3428_v7 = vadd.f32 %v3427_v6, %v2933_v42  ;;  %6038 = vmatprep.mubr.msk.f32.mxu0 %vm6499_vm0, %v10002_v24  ;;  %6271 = vmatprep.mubr.msk.f32.mxu1 %vm6499_vm0, %v10002_v24 }
 0x334   : > { %v5893_v61 = vpop.f32.mrf.mxu0  ;;  %v6126_v18 = vpop.f32.mrf.mxu1 }
 0x335   : > { %3819 = vst [vmem:[%s9108_s9 + $0x20] sm:$0xff] %v3428_v7  ;;  %v10317_v61 = vld [vmem:[#allocation49_spill] sm:$0xff]  ;;  %v10318_v7 = vld [vmem:[#allocation111_spill] sm:$0xff] }
 0x336   : > { %v2950_v35 = vpop.f32.mrf.mxu0  ;;  %6039 = vmatmul.mubr.f32.gmra.mxu0 %v10316_v23  ;;  %v3433_v62 = vpop.f32.mrf.mxu1  ;;  %6272 = vmatmul.mubr.f32.gmra.mxu1 %v10312_v41  ;;  %v2945_v18 = vadd.f32 %v2944_v14, %v10317_v61 }
 0x337   : > { %v3434_v36 = vadd.f32 %v3433_v62, %v2939_v21  ;;  %6041 = vmatprep.mubr.msk.f32.mxu0 %vm6499_vm0, %v10002_v24  ;;  %6274 = vmatprep.mubr.msk.f32.mxu1 %vm6499_vm0, %v10002_v24 }
 0x338   : > { %v5896_v42 = vpop.f32.mrf.mxu0  ;;  %v6129_v6 = vpop.f32.mrf.mxu1 }
 0x339   : > { %3820 = vst [vmem:[%s9108_s9 + $0x28] sm:$0xff] %v3434_v36  ;;  %v10319_v42 = vld [vmem:[#allocation51_spill] sm:$0xff]  ;;  %v10320_v36 = vld [vmem:[#allocation114_spill] sm:$0xff] }
 0x33a   : > { %v2956_v40 = vpop.f32.mrf.mxu0  ;;  %6042 = vmatmul.mubr.f32.gmra.mxu0 %v10318_v7  ;;  %v3439_v63 = vpop.f32.mrf.mxu1  ;;  %6275 = vmatmul.mubr.f32.gmra.mxu1 %v10314_v60  ;;  %v2951_v6 = vadd.f32 %v2950_v35, %v10319_v42 }
 0x33b   : > { %v3440_v41 = vadd.f32 %v3439_v63, %v2945_v18  ;;  %6044 = vmatprep.mubr.msk.f32.mxu0 %vm6499_vm0, %v10002_v24  ;;  %6277 = vmatprep.mubr.msk.f32.mxu1 %vm6499_vm0, %v10002_v24 }
 0x33c   : > { %v5899_v21 = vpop.f32.mrf.mxu0  ;;  %v6132_v62 = vpop.f32.mrf.mxu1 }
 0x33d   : > { %3821 = vst [vmem:[%s9108_s9 + $0x30] sm:$0xff] %v3440_v41  ;;  %v10321_v21 = vld [vmem:[#allocation54_spill] sm:$0xff]  ;;  %v10322_v41 = vld [vmem:[#allocation117_spill] sm:$0xff] }
 0x33e   : > { %v2962_v14 = vpop.f32.mrf.mxu0  ;;  %6045 = vmatmul.mubr.f32.gmra.mxu0 %v10320_v36  ;;  %v3445_v61 = vpop.f32.mrf.mxu1  ;;  %6278 = vmatmul.mubr.f32.gmra.mxu1 %v10316_v23  ;;  %v2957_v62 = vadd.f32 %v2956_v40, %v10321_v21 }
 0x33f   : > { %v3446_v60 = vadd.f32 %v3445_v61, %v2951_v6  ;;  %6047 = vmatprep.mubr.msk.f32.mxu0 %vm6499_vm0, %v10002_v24  ;;  %6280 = vmatprep.mubr.msk.f32.mxu1 %vm6499_vm0, %v10002_v24 }
 0x340   : > { %v5902_v18 = vpop.f32.mrf.mxu0  ;;  %v6135_v63 = vpop.f32.mrf.mxu1 }
 0x341   : > { %3822 = vst [vmem:[%s9108_s9 + $0x38] sm:$0xff] %v3446_v60  ;;  %v10323_v18 = vld [vmem:[#allocation56_spill] sm:$0xff]  ;;  %v10324_v60 = vld [vmem:[#allocation119_spill] sm:$0xff] }
 0x342   : > { %v2968_v35 = vpop.f32.mrf.mxu0  ;;  %6048 = vmatmul.mubr.f32.gmra.mxu0 %v10322_v41  ;;  %v3451_v42 = vpop.f32.mrf.mxu1  ;;  %6281 = vmatmul.mubr.f32.gmra.mxu1 %v10318_v7  ;;  %v2963_v63 = vadd.f32 %v2962_v14, %v10323_v18 }
 0x343   : > { %v3452_v23 = vadd.f32 %v3451_v42, %v2957_v62  ;;  %6050 = vmatprep.mubr.msk.f32.mxu0 %vm6499_vm0, %v10002_v24  ;;  %6283 = vmatprep.mubr.msk.f32.mxu1 %vm6499_vm0, %v10002_v24 }
 0x344   : > { %v5905_v6 = vpop.f32.mrf.mxu0  ;;  %v6138_v61 = vpop.f32.mrf.mxu1 }
 0x345   : > { %3823 = vst [vmem:[%s9108_s9 + $0x40] sm:$0xff] %v3452_v23  ;;  %v2969_v6 = vadd.f32 %v2968_v35, %v8563_v46  ;;  %v10325_v23 = vld [vmem:[#allocation123_spill] sm:$0xff]  ;;  %v10326_v35 = vld [vmem:[#allocation126_spill] sm:$0xff] }
 0x346   : > { %v2974_v40 = vpop.f32.mrf.mxu0  ;;  %6051 = vmatmul.mubr.f32.gmra.mxu0 %v10324_v60  ;;  %v3457_v21 = vpop.f32.mrf.mxu1  ;;  %6284 = vmatmul.mubr.f32.gmra.mxu1 %v10320_v36 }
 0x347   : > { %v3458_v7 = vadd.f32 %v3457_v21, %v2963_v63  ;;  %6053 = vmatprep.mubr.msk.f32.mxu0 %vm6499_vm0, %v10002_v24  ;;  %6286 = vmatprep.mubr.msk.f32.mxu1 %vm6499_vm0, %v10002_v24  ;;  %v2975_v21 = vadd.f32 %v2974_v40, %v8573_v30  ;;  %v10327_v40 = vld [vmem:[#allocation129_spill] sm:$0xff] }
 0x348   : > { %v5908_v62 = vpop.f32.mrf.mxu0  ;;  %v6141_v42 = vpop.f32.mrf.mxu1 }
 0x349   : > { %3824 = vst [vmem:[%s9108_s9 + $0x48] sm:$0xff] %v3458_v7 }
 0x34a   : > { %v2980_v14 = vpop.f32.mrf.mxu0  ;;  %6054 = vmatmul.mubr.f32.gmra.mxu0 %v10325_v23  ;;  %v3463_v61 = vpop.f32.mrf.mxu1  ;;  %6287 = vmatmul.mubr.f32.gmra.mxu1 %v10322_v41 }
 0x34b   : > { %v3464_v36 = vadd.f32 %v3463_v61, %v2969_v6  ;;  %6056 = vmatprep.mubr.msk.f32.mxu0 %vm6499_vm0, %v10002_v24  ;;  %6289 = vmatprep.mubr.msk.f32.mxu1 %vm6499_vm0, %v10002_v24  ;;  %v2981_v6 = vadd.f32 %v2980_v14, %v8583_v32  ;;  %v10328_v14 = vld [vmem:[#allocation132_spill] sm:$0xff] }
 0x34c   : > { %v5911_v18 = vpop.f32.mrf.mxu0  ;;  %v6144_v63 = vpop.f32.mrf.mxu1 }
 0x34d   : > { %3825 = vst [vmem:[%s9108_s9 + $0x50] sm:$0xff] %v3464_v36 }
 0x34e   : > { %v2986_v46 = vpop.f32.mrf.mxu0  ;;  %6057 = vmatmul.mubr.f32.gmra.mxu0 %v10326_v35  ;;  %v3469_v7 = vpop.f32.mrf.mxu1  ;;  %6290 = vmatmul.mubr.f32.gmra.mxu1 %v10324_v60 }
 0x34f   : > { %v3470_v41 = vadd.f32 %v3469_v7, %v2975_v21  ;;  %6059 = vmatprep.mubr.msk.f32.mxu0 %vm6499_vm0, %v10002_v24  ;;  %6292 = vmatprep.mubr.msk.f32.mxu1 %vm6499_vm0, %v10002_v24  ;;  %v2987_v63 = vadd.f32 %v2986_v46, %v8593_v22  ;;  %v10329_v46 = vld [vmem:[#allocation134_spill] sm:$0xff] }
 0x350   : > { %v5914_v62 = vpop.f32.mrf.mxu0  ;;  %v6147_v42 = vpop.f32.mrf.mxu1 }
 0x351   : > { %3826 = vst [vmem:[%s9108_s9 + $0x58] sm:$0xff] %v3470_v41 }
 0x352   : > { %v2992_v30 = vpop.f32.mrf.mxu0  ;;  %6060 = vmatmul.mubr.f32.gmra.mxu0 %v10327_v40  ;;  %v3475_v61 = vpop.f32.mrf.mxu1  ;;  %6293 = vmatmul.mubr.f32.gmra.mxu1 %v10325_v23 }
 0x353   : > { %v3476_v60 = vadd.f32 %v3475_v61, %v2981_v6  ;;  %6062 = vmatprep.mubr.msk.f32.mxu0 %vm6499_vm0, %v10002_v24  ;;  %6295 = vmatprep.mubr.msk.f32.mxu1 %vm6499_vm0, %v10002_v24  ;;  %v2993_v62 = vadd.f32 %v2992_v30, %v8603_v44  ;;  %v10330_v30 = vld [vmem:[#allocation138_spill] sm:$0xff] }
 0x354   : > { %v5917_v36 = vpop.f32.mrf.mxu0  ;;  %v6150_v18 = vpop.f32.mrf.mxu1 }
 0x355   : > { %3827 = vst [vmem:[%s9108_s9 + $0x60] sm:$0xff] %v3476_v60 }
 0x356   : > { %v2998_v32 = vpop.f32.mrf.mxu0  ;;  %6063 = vmatmul.mubr.f32.gmra.mxu0 %v10328_v14  ;;  %v3481_v21 = vpop.f32.mrf.mxu1  ;;  %6296 = vmatmul.mubr.f32.gmra.mxu1 %v10326_v35 }
 0x357   : > { %v3482_v23 = vadd.f32 %v3481_v21, %v2987_v63  ;;  %6065 = vmatprep.mubr.msk.f32.mxu0 %vm6499_vm0, %v10002_v24  ;;  %6298 = vmatprep.mubr.msk.f32.mxu1 %vm6499_vm0, %v10002_v24  ;;  %v2999_v60 = vadd.f32 %v2998_v32, %v8613_v56  ;;  %v10331_v32 = vld [vmem:[#allocation140_spill] sm:$0xff] }
 0x358   : > { %v5920_v7 = vpop.f32.mrf.mxu0  ;;  %v6153_v41 = vpop.f32.mrf.mxu1 }
 0x359   : > { %3828 = vst [vmem:[%s9108_s9 + $0x68] sm:$0xff] %v3482_v23 }
 0x35a   : > { %v3004_v22 = vpop.f32.mrf.mxu0  ;;  %6066 = vmatmul.mubr.f32.gmra.mxu0 %v10329_v46  ;;  %v3487_v42 = vpop.f32.mrf.mxu1  ;;  %6299 = vmatmul.mubr.f32.gmra.mxu1 %v10327_v40 }
 0x35b   : > { %v3488_v35 = vadd.f32 %v3487_v42, %v2993_v62  ;;  %6068 = vmatprep.mubr.msk.f32.mxu0 %vm6499_vm0, %v10002_v24  ;;  %6301 = vmatprep.mubr.msk.f32.mxu1 %vm6499_vm0, %v10002_v24  ;;  %v3005_v21 = vadd.f32 %v3004_v22, %v8623_v37  ;;  %v10332_v22 = vld [vmem:[#allocation142_spill] sm:$0xff] }
 0x35c   : > { %v5923_v6 = vpop.f32.mrf.mxu0  ;;  %v6156_v61 = vpop.f32.mrf.mxu1 }
 0x35d   : > { %3829 = vst [vmem:[%s9108_s9 + $0x70] sm:$0xff] %v3488_v35 }
 0x35e   : > { %v3010_v44 = vpop.f32.mrf.mxu0  ;;  %6069 = vmatmul.mubr.f32.gmra.mxu0 %v10330_v30  ;;  %v3493_v36 = vpop.f32.mrf.mxu1  ;;  %6302 = vmatmul.mubr.f32.gmra.mxu1 %v10328_v14 }
 0x35f   : > { %v3494_v40 = vadd.f32 %v3493_v36, %v2999_v60  ;;  %6071 = vmatprep.mubr.msk.f32.mxu0 %vm6499_vm0, %v10002_v24  ;;  %6304 = vmatprep.mubr.msk.f32.mxu1 %vm6499_vm0, %v10002_v24  ;;  %v3011_v62 = vadd.f32 %v3010_v44, %v8633_v57  ;;  %v10333_v60 = vld [vmem:[#allocation144_spill] sm:$0xff] }
 0x360   : > { %v5926_v18 = vpop.f32.mrf.mxu0  ;;  %v6159_v63 = vpop.f32.mrf.mxu1 }
 0x361   : > { %3830 = vst [vmem:[%s9108_s9 + $0x78] sm:$0xff] %v3494_v40 }
 0x362   : > { %v3016_v56 = vpop.f32.mrf.mxu0  ;;  %6072 = vmatmul.mubr.f32.gmra.mxu0 %v10331_v32  ;;  %v3499_v23 = vpop.f32.mrf.mxu1  ;;  %6305 = vmatmul.mubr.f32.gmra.mxu1 %v10329_v46 }
 0x363   : > { %v3500_v14 = vadd.f32 %v3499_v23, %v3005_v21  ;;  %6074 = vmatprep.mubr.msk.f32.mxu0 %vm6499_vm0, %v10002_v24  ;;  %6307 = vmatprep.mubr.msk.f32.mxu1 %vm6499_vm0, %v10002_v24  ;;  %v3017_v61 = vadd.f32 %v3016_v56, %v8643_v29 }
 0x364   : > { %v5929_v7 = vpop.f32.mrf.mxu0  ;;  %v6162_v41 = vpop.f32.mrf.mxu1 }
 0x365   : > { %3831 = vst [vmem:[%s9108_s9 + $0x80] sm:$0xff] %v3500_v14 }
 0x366   : > { %v3022_v37 = vpop.f32.mrf.mxu0  ;;  %6075 = vmatmul.mubr.f32.gmra.mxu0 %v10332_v22  ;;  %v3505_v42 = vpop.f32.mrf.mxu1  ;;  %6308 = vmatmul.mubr.f32.gmra.mxu1 %v10330_v30 }
 0x367   : > { %v3506_v46 = vadd.f32 %v3505_v42, %v3011_v62  ;;  %6077 = vmatprep.mubr.msk.f32.mxu0 %vm6499_vm0, %v10002_v24  ;;  %6310 = vmatprep.mubr.msk.f32.mxu1 %vm6499_vm0, %v10002_v24  ;;  %v3023_v18 = vadd.f32 %v3022_v37, %v8653_v49 }
 0x368   : > { %v5932_v35 = vpop.f32.mrf.mxu0  ;;  %v6165_v6 = vpop.f32.mrf.mxu1 }
 0x369   : > { %3832 = vst [vmem:[%s9108_s9 + $0x88] sm:$0xff] %v3506_v46 }
 0x36a   : > { %v3028_v57 = vpop.f32.mrf.mxu0  ;;  %6078 = vmatmul.mubr.f32.gmra.mxu0 %v10333_v60  ;;  %v3511_v44 = vpop.f32.mrf.mxu1  ;;  %6311 = vmatmul.mubr.f32.gmra.mxu1 %v10331_v32 }
 0x36b   : > { %v3512_v30 = vadd.f32 %v3511_v44, %v3017_v61  ;;  %6313 = vmatprep.mubr.msk.f32.mxu1 %vm6499_vm0, %v10002_v24  ;;  %v3029_v23 = vadd.f32 %v3028_v57, %v8663_v28 }
 0x36c   : > { %v5935_v36 = vpop.f32.mrf.mxu0  ;;  %v6168_v40 = vpop.f32.mrf.mxu1 }
 0x36d   : > { %3833 = vst [vmem:[%s9108_s9 + $0x90] sm:$0xff] %v3512_v30 }
 0x36e   : > { %v3034_v63 = vpop.f32.mrf.mxu0  ;;  %v3517_v29 = vpop.f32.mrf.mxu1  ;;  %6314 = vmatmul.mubr.f32.gmra.mxu1 %v10332_v22 }
 0x36f   : > { %v3518_v21 = vadd.f32 %v3517_v29, %v3023_v18  ;;  %6316 = vmatprep.mubr.msk.f32.mxu1 %vm6499_vm0, %v10002_v24  ;;  %v3035_v37 = vadd.f32 %v3034_v63, %v8672_v43 }
 0x370   : > { %v5938_v56 = vpop.f32.mrf.mxu0  ;;  %v6171_v32 = vpop.f32.mrf.mxu1 }
 0x371   : > { %3834 = vst [vmem:[%s9108_s9 + $0x98] sm:$0xff] %v3518_v21 }
 0x372   : > { %v3040_v14 = vpop.f32.mrf.mxu0  ;;  %v3523_v7 = vpop.f32.mrf.mxu1  ;;  %6317 = vmatmul.mubr.f32.gmra.mxu1 %v10333_v60 }
 0x373   : > { %v3524_v49 = vadd.f32 %v3523_v7, %v3029_v23  ;;  %v3041_v28 = vadd.f32 %v3040_v14, %v8681_v53 }
 0x374   : > { %v5941_v41 = vpop.f32.mrf.mxu0  ;;  %v6174_v62 = vpop.f32.mrf.mxu1 }
 0x375   : > { %3835 = vst [vmem:[%s9108_s9 + $0xa0] sm:$0xff] %v3524_v49 }
 0x376   : > { %v3046_v22 = vpop.f32.mrf.mxu0  ;;  %v3529_v42 = vpop.f32.mrf.mxu1 }
 0x377   : > { %v3530_v24 = vadd.f32 %v3529_v42, %v3035_v37  ;;  %v3047_v30 = vadd.f32 %v3046_v22, %v8690_v51 }
 0x378   : > { %v5944_v46 = vpop.f32.mrf.mxu0  ;;  %v6177_v35 = vpop.f32.mrf.mxu1 }
 0x379   : > { %3836 = vst [vmem:[%s9108_s9 + $0xa8] sm:$0xff] %v3530_v24 }
 0x37a   : > { %v3052_v6 = vpop.f32.mrf.mxu0  ;;  %v3535_v61 = vpop.f32.mrf.mxu1 }
 0x37b   : > { %v3536_v57 = vadd.f32 %v3535_v61, %v3041_v28  ;;  %v3053_v29 = vadd.f32 %v3052_v6, %v8699_v3 }
 0x37c   : > { %v5947_v60 = vpop.f32.mrf.mxu0  ;;  %v6180_v44 = vpop.f32.mrf.mxu1 }
 0x37d   : > { %3837 = vst [vmem:[%s9108_s9 + $0xb0] sm:$0xff] %v3536_v57 }
 0x37e   : > { %v3058_v43 = vpop.f32.mrf.mxu0  ;;  %v3541_v36 = vpop.f32.mrf.mxu1 }
 0x37f   : > { %v3542_v40 = vadd.f32 %v3541_v36, %v3047_v30  ;;  %v3059_v14 = vadd.f32 %v3058_v43, %v8708_v19 }
 0x380   : > { %v5950_v18 = vpop.f32.mrf.mxu0  ;;  %v6183_v63 = vpop.f32.mrf.mxu1 }
 0x381   : > { %3838 = vst [vmem:[%s9108_s9 + $0xb8] sm:$0xff] %v3542_v40 }
 0x382   : > { %v3064_v53 = vpop.f32.mrf.mxu0  ;;  %v3547_v21 = vpop.f32.mrf.mxu1 }
 0x383   : > { %v3548_v56 = vadd.f32 %v3547_v21, %v3053_v29  ;;  %v3065_v37 = vadd.f32 %v3064_v53, %v8717_v16 }
 0x384   : > { %v5953_v32 = vpop.f32.mrf.mxu0  ;;  %v6186_v23 = vpop.f32.mrf.mxu1 }
 0x385   : > { %3839 = vst [vmem:[%s9108_s9 + $0xc0] sm:$0xff] %v3548_v56 }
 0x386   : > { %v3070_v51 = vpop.f32.mrf.mxu0  ;;  %v3553_v7 = vpop.f32.mrf.mxu1 }
 0x387   : > { %v3554_v49 = vadd.f32 %v3553_v7, %v3059_v14  ;;  %v3071_v35 = vadd.f32 %v3070_v51, %v8726_v15 }
 0x388   : > { %v5956_v41 = vpop.f32.mrf.mxu0  ;;  %v6189_v62 = vpop.f32.mrf.mxu1 }
 0x389   : > { %3840 = vst [vmem:[%s9108_s9 + $0xc8] sm:$0xff] %v3554_v49 }
 0x38a   : > { %v3076_v3 = vpop.f32.mrf.mxu0  ;;  %v3559_v22 = vpop.f32.mrf.mxu1 }
 0x38b   : > { %v3560_v42 = vadd.f32 %v3559_v22, %v3065_v37  ;;  %v3077_v60 = vadd.f32 %v3076_v3, %v8735_v38 }
 0x38c   : > { %v5959_v24 = vpop.f32.mrf.mxu0  ;;  %v6192_v46 = vpop.f32.mrf.mxu1 }
 0x38d   : > { %3841 = vst [vmem:[%s9108_s9 + $0xd0] sm:$0xff] %v3560_v42 }
 0x38e   : > { %v3082_v19 = vpop.f32.mrf.mxu0  ;;  %v3565_v28 = vpop.f32.mrf.mxu1 }
 0x38f   : > { %v3566_v6 = vadd.f32 %v3565_v28, %v3071_v35  ;;  %v3083_v40 = vadd.f32 %v3082_v19, %v8744_v20 }
 0x390   : > { %v5962_v61 = vpop.f32.mrf.mxu0  ;;  %v6195_v57 = vpop.f32.mrf.mxu1 }
 0x391   : > { %3842 = vst [vmem:[%s9108_s9 + $0xd8] sm:$0xff] %v3566_v6 }
 0x392   : > { %v3088_v16 = vpop.f32.mrf.mxu0  ;;  %v3571_v44 = vpop.f32.mrf.mxu1 }
 0x393   : > { %v3572_v30 = vadd.f32 %v3571_v44, %v3077_v60  ;;  %v3089_v21 = vadd.f32 %v3088_v16, %v8753_v1 }
 0x394   : > { %v5965_v43 = vpop.f32.mrf.mxu0  ;;  %v6198_v36 = vpop.f32.mrf.mxu1 }
 0x395   : > { %3843 = vst [vmem:[%s9108_s9 + $0xe0] sm:$0xff] %v3572_v30 }
 0x396   : > { %v3094_v15 = vpop.f32.mrf.mxu0  ;;  %v3577_v18 = vpop.f32.mrf.mxu1 }
 0x397   : > { %v3578_v63 = vadd.f32 %v3577_v18, %v3083_v40  ;;  %v3095_v51 = vadd.f32 %v3094_v15, %v8762_v13 }
 0x398   : > { %v5968_v29 = vpop.f32.mrf.mxu0  ;;  %v6201_v53 = vpop.f32.mrf.mxu1 }
 0x399   : > { %3844 = vst [vmem:[%s9108_s9 + $0xe8] sm:$0xff] %v3578_v63 }
 0x39a   : > { %v3100_v38 = vpop.f32.mrf.mxu0  ;;  %v3583_v56 = vpop.f32.mrf.mxu1 }
 0x39b   : > { %v3584_v32 = vadd.f32 %v3583_v56, %v3089_v21  ;;  %v3101_v37 = vadd.f32 %v3100_v38, %v8771_v26 }
 0x39c   : > { %v5971_v23 = vpop.f32.mrf.mxu0  ;;  %v6204_v14 = vpop.f32.mrf.mxu1 }
 0x39d   : > { %3845 = vst [vmem:[%s9108_s9 + $0xf0] sm:$0xff] %v3584_v32 }
 0x39e   : > { %v3106_v20 = vpop.f32.mrf.mxu0  ;;  %v3589_v7 = vpop.f32.mrf.mxu1 }
 0x39f   : > { %v3590_v49 = vadd.f32 %v3589_v7, %v3095_v51  ;;  %v3107_v46 = vadd.f32 %v3106_v20, %v8780_v34 }
 0x3a0   : > { %v5974_v41 = vpop.f32.mrf.mxu0  ;;  %v6207_v62 = vpop.f32.mrf.mxu1 }
 0x3a1   : > { %3846 = vst [vmem:[%s9108_s9 + $0xf8] sm:$0xff] %v3590_v49 }
 0x3a2   : > { %v3112_v1 = vpop.f32.mrf.mxu0  ;;  %v3595_v3 = vpop.f32.mrf.mxu1 }
 0x3a3   : > { %v3596_v22 = vadd.f32 %v3595_v3, %v3101_v37  ;;  %v3113_v61 = vadd.f32 %v3112_v1, %v8789_v17 }
 0x3a4   : > { %v5977_v42 = vpop.f32.mrf.mxu0  ;;  %v6210_v24 = vpop.f32.mrf.mxu1 }
 0x3a5   : > { %3847 = vst [vmem:[%s9108_s9 + $0x100] sm:$0xff] %v3596_v22 }
 0x3a6   : > { %v3118_v13 = vpop.f32.mrf.mxu0  ;;  %v3601_v35 = vpop.f32.mrf.mxu1 }
 0x3a7   : > { %v3602_v19 = vadd.f32 %v3601_v35, %v3107_v46  ;;  %v3119_v30 = vadd.f32 %v3118_v13, %v8798_v47 }
 0x3a8   : > { %v5980_v28 = vpop.f32.mrf.mxu0  ;;  %v6213_v6 = vpop.f32.mrf.mxu1 }
 0x3a9   : > { %3848 = vst [vmem:[%s9108_s9 + $0x108] sm:$0xff] %v3602_v19 }
 0x3aa   : > { %v3124_v26 = vpop.f32.mrf.mxu0  ;;  %v3607_v57 = vpop.f32.mrf.mxu1 }
 0x3ab   : > { %v3608_v60 = vadd.f32 %v3607_v57, %v3113_v61  ;;  %v3125_v18 = vadd.f32 %v3124_v26, %v8807_v11 }
 0x3ac   : > { %v5983_v16 = vpop.f32.mrf.mxu0  ;;  %v6216_v44 = vpop.f32.mrf.mxu1 }
 0x3ad   : > { %3849 = vst [vmem:[%s9108_s9 + $0x110] sm:$0xff] %v3608_v60 }
 0x3ae   : > { %v3130_v34 = vpop.f32.mrf.mxu0  ;;  %v3613_v43 = vpop.f32.mrf.mxu1 }
 0x3af   : > { %v3614_v36 = vadd.f32 %v3613_v43, %v3119_v30  ;;  %v3131_v38 = vadd.f32 %v3130_v34, %v8816_v45 }
 0x3b0   : > { %v5986_v40 = vpop.f32.mrf.mxu0  ;;  %v6219_v15 = vpop.f32.mrf.mxu1 }
 0x3b1   : > { %3850 = vst [vmem:[%s9108_s9 + $0x118] sm:$0xff] %v3614_v36 }
 0x3b2   : > { %v3136_v17 = vpop.f32.mrf.mxu0  ;;  %v3619_v63 = vpop.f32.mrf.mxu1 }
 0x3b3   : > { %v3620_v29 = vadd.f32 %v3619_v63, %v3125_v18  ;;  %v3137_v51 = vadd.f32 %v3136_v17, %v8825_v33 }
 0x3b4   : > { %v5989_v53 = vpop.f32.mrf.mxu0  ;;  %v6222_v21 = vpop.f32.mrf.mxu1 }
 0x3b5   : > { %3851 = vst [vmem:[%s9108_s9 + $0x120] sm:$0xff] %v3620_v29 }
 0x3b6   : > { %v3142_v47 = vpop.f32.mrf.mxu0  ;;  %v3625_v56 = vpop.f32.mrf.mxu1 }
 0x3b7   : > { %v3626_v32 = vadd.f32 %v3625_v56, %v3131_v38  ;;  %v3143_v62 = vadd.f32 %v3142_v47, %v8834_v59 }
 0x3b8   : > { %v5992_v23 = vpop.f32.mrf.mxu0  ;;  %v6225_v14 = vpop.f32.mrf.mxu1 }
 0x3b9   : > { %3852 = vst [vmem:[%s9108_s9 + $0x128] sm:$0xff] %v3626_v32 }
 0x3ba   : > { %v3148_v11 = vpop.f32.mrf.mxu0  ;;  %v3631_v20 = vpop.f32.mrf.mxu1 }
 0x3bb   : > { %v3632_v7 = vadd.f32 %v3631_v20, %v3137_v51  ;;  %v3149_v42 = vadd.f32 %v3148_v11, %v8843_v5 }
 0x3bc   : > { %v5995_v49 = vpop.f32.mrf.mxu0  ;;  %v6228_v41 = vpop.f32.mrf.mxu1 }
 0x3bd   : > { %3853 = vst [vmem:[%s9108_s9 + $0x130] sm:$0xff] %v3632_v7 }
 0x3be   : > { %v3154_v45 = vpop.f32.mrf.mxu0  ;;  %v3637_v37 = vpop.f32.mrf.mxu1 }
 0x3bf   : > { %v3638_v1 = vadd.f32 %v3637_v37, %v3143_v62  ;;  %v3155_v19 = vadd.f32 %v3154_v45, %v8852_v50 }
 0x3c0   : > { %v5998_v3 = vpop.f32.mrf.mxu0  ;;  %v6231_v22 = vpop.f32.mrf.mxu1 }
 0x3c1   : > { %3854 = vst [vmem:[%s9108_s9 + $0x138] sm:$0xff] %v3638_v1 }
 0x3c2   : > { %v3160_v33 = vpop.f32.mrf.mxu0  ;;  %v3643_v24 = vpop.f32.mrf.mxu1 }
 0x3c3   : > { %v3644_v46 = vadd.f32 %v3643_v24, %v3149_v42  ;;  %v3161_v57 = vadd.f32 %v3160_v33, %v8861_v39 }
 0x3c4   : > { %v6001_v13 = vpop.f32.mrf.mxu0  ;;  %v6234_v35 = vpop.f32.mrf.mxu1 }
 0x3c5   : > { %3855 = vst [vmem:[%s9108_s9 + $0x140] sm:$0xff] %v3644_v46 }
 0x3c6   : > { %v3166_v59 = vpop.f32.mrf.mxu0  ;;  %v3649_v28 = vpop.f32.mrf.mxu1 }
 0x3c7   : > { %v3650_v6 = vadd.f32 %v3649_v28, %v3155_v19  ;;  %v3167_v34 = vadd.f32 %v3166_v59, %v8870_v25 }
 0x3c8   : > { %v6004_v61 = vpop.f32.mrf.mxu0  ;;  %v6237_v26 = vpop.f32.mrf.mxu1 }
 0x3c9   : > { %3856 = vst [vmem:[%s9108_s9 + $0x148] sm:$0xff] %v3650_v6 }
 0x3ca   : > { %v3172_v5 = vpop.f32.mrf.mxu0  ;;  %v3655_v60 = vpop.f32.mrf.mxu1 }
 0x3cb   : > { %v3656_v16 = vadd.f32 %v3655_v60, %v3161_v57  ;;  %v3173_v18 = vadd.f32 %v3172_v5, %v8879_v31 }
 0x3cc   : > { %v6007_v44 = vpop.f32.mrf.mxu0  ;;  %v6240_v30 = vpop.f32.mrf.mxu1 }
 0x3cd   : > { %3857 = vst [vmem:[%s9108_s9 + $0x150] sm:$0xff] %v3656_v16 }
 0x3ce   : > { %v3178_v50 = vpop.f32.mrf.mxu0  ;;  %v3661_v43 = vpop.f32.mrf.mxu1 }
 0x3cf   : > { %v3662_v36 = vadd.f32 %v3661_v43, %v3167_v34  ;;  %v3179_v21 = vadd.f32 %v3178_v50, %v8888_v12 }
 0x3d0   : > { %v6010_v40 = vpop.f32.mrf.mxu0  ;;  %v6243_v15 = vpop.f32.mrf.mxu1 }
 0x3d1   : > { %3858 = vst [vmem:[%s9108_s9 + $0x158] sm:$0xff] %v3662_v36 }
 0x3d2   : > { %v3184_v39 = vpop.f32.mrf.mxu0  ;;  %v3667_v17 = vpop.f32.mrf.mxu1 }
 0x3d3   : > { %v3668_v63 = vadd.f32 %v3667_v17, %v3173_v18  ;;  %v3185_v23 = vadd.f32 %v3184_v39, %v8897_v52 }
 0x3d4   : > { %v6013_v29 = vpop.f32.mrf.mxu0  ;;  %v6246_v53 = vpop.f32.mrf.mxu1 }
 0x3d5   : > { %3859 = vst [vmem:[%s9108_s9 + $0x160] sm:$0xff] %v3668_v63 }
 0x3d6   : > { %v3190_v25 = vpop.f32.mrf.mxu0  ;;  %v3673_v38 = vpop.f32.mrf.mxu1 }
 0x3d7   : > { %v3674_v47 = vadd.f32 %v3673_v38, %v3179_v21  ;;  %v3191_v7 = vadd.f32 %v3190_v25, %v8906_v4 }
 0x3d8   : > { %v6016_v56 = vpop.f32.mrf.mxu0  ;;  %v6249_v32 = vpop.f32.mrf.mxu1 }
 0x3d9   : > { %3860 = vst [vmem:[%s9108_s9 + $0x168] sm:$0xff] %v3674_v47 }
 0x3da   : > { %v3196_v31 = vpop.f32.mrf.mxu0  ;;  %v3679_v14 = vpop.f32.mrf.mxu1 }
 0x3db   : > { %v3680_v51 = vadd.f32 %v3679_v14, %v3185_v23  ;;  %v3197_v37 = vadd.f32 %v3196_v31, %v8915_v48  ;;  %v10334_v23 = vld [vmem:[#allocation58_spill] sm:$0xff] }
 0x3dc   : > { %v6019_v11 = vpop.f32.mrf.mxu0  ;;  %v6252_v20 = vpop.f32.mrf.mxu1 }
 0x3dd   : > { %3861 = vst [vmem:[%s9108_s9 + $0x170] sm:$0xff] %v3680_v51 }
 0x3de   : > { %v3202_v12 = vpop.f32.mrf.mxu0  ;;  %v3685_v49 = vpop.f32.mrf.mxu1 }
 0x3df   : > { %v3686_v41 = vadd.f32 %v3685_v49, %v3191_v7  ;;  %v3203_v33 = vadd.f32 %v3202_v12, %v8924_v58  ;;  %v10335_v7 = vld [vmem:[#allocation59_spill] sm:$0xff] }
 0x3e0   : > { %v6022_v62 = vpop.f32.mrf.mxu0  ;;  %v6255_v45 = vpop.f32.mrf.mxu1 }
 0x3e1   : > { %3862 = vst [vmem:[%s9108_s9 + $0x178] sm:$0xff] %v3686_v41 }
 0x3e2   : > { %v3208_v52 = vpop.f32.mrf.mxu0  ;;  %v3691_v1 = vpop.f32.mrf.mxu1 }
 0x3e3   : > { %v3692_v3 = vadd.f32 %v3691_v1, %v3197_v37  ;;  %v3209_v19 = vadd.f32 %v3208_v52, %v8933_v27  ;;  %v10336_v37 = vld [vmem:[#allocation61_spill] sm:$0xff] }
 0x3e4   : > { %v6025_v22 = vpop.f32.mrf.mxu0  ;;  %v6258_v42 = vpop.f32.mrf.mxu1 }
 0x3e5   : > { %3863 = vst [vmem:[%s9108_s9 + $0x180] sm:$0xff] %v3692_v3 }
 0x3e6   : > { %v3214_v4 = vpop.f32.mrf.mxu0  ;;  %v3697_v24 = vpop.f32.mrf.mxu1 }
 0x3e7   : > { %v3698_v46 = vadd.f32 %v3697_v24, %v3203_v33  ;;  %v3215_v26 = vadd.f32 %v3214_v4, %v8942_v9  ;;  %v10337_v4 = vld [vmem:[#allocation64_spill] sm:$0xff] }
 0x3e8   : > { %v6028_v13 = vpop.f32.mrf.mxu0  ;;  %v6261_v35 = vpop.f32.mrf.mxu1 }
 0x3e9   : > { %3864 = vst [vmem:[%s9108_s9 + $0x188] sm:$0xff] %v3698_v46 }
 0x3ea   : > { %v3220_v48 = vpop.f32.mrf.mxu0  ;;  %v3703_v59 = vpop.f32.mrf.mxu1 }
 0x3eb   : > { %v3704_v28 = vadd.f32 %v3703_v59, %v3209_v19  ;;  %v3221_v44 = vadd.f32 %v3220_v48, %v8951_v0  ;;  %v10338_v59 = vld [vmem:[#allocation65_spill] sm:$0xff] }
 0x3ec   : > { %v6031_v6 = vpop.f32.mrf.mxu0  ;;  %v6264_v61 = vpop.f32.mrf.mxu1 }
 0x3ed   : > { %3865 = vst [vmem:[%s9108_s9 + $0x190] sm:$0xff] %v3704_v28 }
 0x3ee   : > { %v3226_v58 = vpop.f32.mrf.mxu0  ;;  %v3709_v57 = vpop.f32.mrf.mxu1 }
 0x3ef   : > { %v3710_v5 = vadd.f32 %v3709_v57, %v3215_v26  ;;  %v3227_v36 = vadd.f32 %v3226_v58, %v8960_v2 }
 0x3f0   : > { %v6034_v60 = vpop.f32.mrf.mxu0  ;;  %v6267_v16 = vpop.f32.mrf.mxu1 }
 0x3f1   : > { %3866 = vst [vmem:[%s9108_s9 + $0x198] sm:$0xff] %v3710_v5  ;;  %v10339_v5 = vld [vmem:[#allocation67_spill] sm:$0xff] }
 0x3f2   : > { %v3232_v27 = vpop.f32.mrf.mxu0  ;;  %v3715_v30 = vpop.f32.mrf.mxu1 }
 0x3f3   : > { %v3716_v34 = vadd.f32 %v3715_v30, %v3221_v44  ;;  %v3233_v17 = vadd.f32 %v3232_v27, %v8969_v54 }
 0x3f4   : > { %v6037_v50 = vpop.f32.mrf.mxu0  ;;  %v6270_v43 = vpop.f32.mrf.mxu1 }
 0x3f5   : > { %3867 = vst [vmem:[%s9108_s9 + $0x1a0] sm:$0xff] %v3716_v34  ;;  %v10340_v50 = vld [vmem:[#allocation70_spill] sm:$0xff] }
 0x3f6   : > { %v3238_v9 = vpop.f32.mrf.mxu0  ;;  %v3721_v40 = vpop.f32.mrf.mxu1 }
 0x3f7   : > { %v3722_v15 = vadd.f32 %v3721_v40, %v3227_v36  ;;  %v3239_v25 = vadd.f32 %v3238_v9, %v8978_v55 }
 0x3f8   : > { %v6040_v18 = vpop.f32.mrf.mxu0  ;;  %v6273_v39 = vpop.f32.mrf.mxu1 }
 0x3f9   : > { %3868 = vst [vmem:[%s9108_s9 + $0x1a8] sm:$0xff] %v3722_v15  ;;  %v10341_v39 = vld [vmem:[#allocation72_spill] sm:$0xff] }
 0x3fa   : > { %v3244_v0 = vpop.f32.mrf.mxu0  ;;  %v3727_v63 = vpop.f32.mrf.mxu1 }
 0x3fb   : > { %v3728_v29 = vadd.f32 %v3727_v63, %v3233_v17  ;;  %v3245_v31 = vadd.f32 %v3244_v0, %v10334_v23  ;;  %v10342_v23 = vld [vmem:[#allocation74_spill] sm:$0xff] }
 0x3fc   : > { %v6043_v53 = vpop.f32.mrf.mxu0  ;;  %v6276_v21 = vpop.f32.mrf.mxu1 }
 0x3fd   : > { %3869 = vst [vmem:[%s9108_s9 + $0x1b0] sm:$0xff] %v3728_v29 }
 0x3fe   : > { %v3250_v2 = vpop.f32.mrf.mxu0  ;;  %v3733_v38 = vpop.f32.mrf.mxu1 }
 0x3ff   : > { %v3734_v47 = vadd.f32 %v3733_v38, %v3239_v25  ;;  %v3251_v12 = vadd.f32 %v3250_v2, %v10335_v7 }
 0x400   : > { %v6046_v56 = vpop.f32.mrf.mxu0  ;;  %v6279_v32 = vpop.f32.mrf.mxu1 }
 0x401   : > { %3870 = vst [vmem:[%s9108_s9 + $0x1b8] sm:$0xff] %v3734_v47 }
 0x402   : > { %v3256_v54 = vpop.f32.mrf.mxu0  ;;  %v3739_v14 = vpop.f32.mrf.mxu1 }
 0x403   : > { %v3740_v51 = vadd.f32 %v3739_v14, %v3245_v31  ;;  %v3257_v52 = vadd.f32 %v3256_v54, %v10336_v37 }
 0x404   : > { %v6049_v11 = vpop.f32.mrf.mxu0  ;;  %v6282_v20 = vpop.f32.mrf.mxu1 }
 0x405   : > { %3871 = vst [vmem:[%s9108_s9 + $0x1c0] sm:$0xff] %v3740_v51 }
 0x406   : > { %v3262_v55 = vpop.f32.mrf.mxu0  ;;  %v3745_v49 = vpop.f32.mrf.mxu1 }
 0x407   : > { %v3746_v41 = vadd.f32 %v3745_v49, %v3251_v12  ;;  %v3263_v24 = vadd.f32 %v3262_v55, %v10337_v4 }
 0x408   : > { %v6052_v62 = vpop.f32.mrf.mxu0  ;;  %v6285_v45 = vpop.f32.mrf.mxu1 }
 0x409   : > { %3872 = vst [vmem:[%s9108_s9 + $0x1c8] sm:$0xff] %v3746_v41  ;;  %v10343_v62 = vld [vmem:[#allocation75_spill] sm:$0xff] }
 0x40a   : > { %v3268_v1 = vpop.f32.mrf.mxu0  ;;  %v3751_v3 = vpop.f32.mrf.mxu1 }
 0x40b   : > { %v3752_v22 = vadd.f32 %v3751_v3, %v3257_v52  ;;  %v3269_v28 = vadd.f32 %v3268_v1, %v10338_v59  ;;  %v10344_v3 = vld [vmem:[#allocation77_spill] sm:$0xff] }
 0x40c   : > { %v6055_v42 = vpop.f32.mrf.mxu0  ;;  %v6288_v33 = vpop.f32.mrf.mxu1 }
 0x40d   : > { %3873 = vst [vmem:[%s9108_s9 + $0x1d0] sm:$0xff] %v3752_v22 }
 0x40e   : > { %v3274_v46 = vpop.f32.mrf.mxu0  ;;  %v3757_v13 = vpop.f32.mrf.mxu1 }
 0x40f   : > { %v3758_v35 = vadd.f32 %v3757_v13, %v3263_v24  ;;  %v3275_v60 = vadd.f32 %v3274_v46, %v10339_v5 }
 0x410   : > { %v6058_v19 = vpop.f32.mrf.mxu0  ;;  %v6291_v48 = vpop.f32.mrf.mxu1 }
 0x411   : > { %3874 = vst [vmem:[%s9108_s9 + $0x1d8] sm:$0xff] %v3758_v35 }
 0x412   : > { %v3280_v6 = vpop.f32.mrf.mxu0  ;;  %v3763_v61 = vpop.f32.mrf.mxu1 }
 0x413   : > { %v3764_v26 = vadd.f32 %v3763_v61, %v3269_v28  ;;  %v3281_v43 = vadd.f32 %v3280_v6, %v10340_v50 }
 0x414   : > { %v6061_v58 = vpop.f32.mrf.mxu0  ;;  %v6294_v57 = vpop.f32.mrf.mxu1 }
 0x415   : > { %3875 = vst [vmem:[%s9108_s9 + $0x1e0] sm:$0xff] %v3764_v26 }
 0x416   : > { %v3286_v16 = vpop.f32.mrf.mxu0  ;;  %v3769_v44 = vpop.f32.mrf.mxu1 }
 0x417   : > { %v3770_v27 = vadd.f32 %v3769_v44, %v3275_v60  ;;  %v3287_v17 = vadd.f32 %v3286_v16, %v10341_v39 }
 0x418   : > { %v6064_v30 = vpop.f32.mrf.mxu0  ;;  %v6297_v34 = vpop.f32.mrf.mxu1 }
 0x419   : > { %3876 = vst [vmem:[%s9108_s9 + $0x1e8] sm:$0xff] %v3770_v27 }
 0x41a   : > { %v3292_v36 = vpop.f32.mrf.mxu0  ;;  %v3775_v9 = vpop.f32.mrf.mxu1 }
 0x41b   : > { %v3776_v40 = vadd.f32 %v3775_v9, %v3281_v43  ;;  %v3293_v25 = vadd.f32 %v3292_v36, %v9059_v8 }
 0x41c   : > { %v6067_v15 = vpop.f32.mrf.mxu0  ;;  %v6300_v18 = vpop.f32.mrf.mxu1 }
 0x41d   : > { %3877 = vst [vmem:[%s9108_s9 + $0x1f0] sm:$0xff] %v3776_v40 }
 0x41e   : > { %v3298_v0 = vpop.f32.mrf.mxu0  ;;  %v3781_v63 = vpop.f32.mrf.mxu1 }
 0x41f   : > { %v3782_v29 = vadd.f32 %v3781_v63, %v3287_v17  ;;  %v3299_v31 = vadd.f32 %v3298_v0, %v10342_v23 }
 0x420   : > { %v6070_v53 = vpop.f32.mrf.mxu0  ;;  %v6303_v21 = vpop.f32.mrf.mxu1 }
 0x421   : > { %3878 = vst [vmem:[%s9108_s9 + $0x1f8] sm:$0xff] %v3782_v29 }
 0x422   : > { %v3304_v2 = vpop.f32.mrf.mxu0  ;;  %v3787_v38 = vpop.f32.mrf.mxu1 }
 0x423   : > { %v3788_v47 = vadd.f32 %v3787_v38, %v3293_v25  ;;  %v3305_v7 = vadd.f32 %v3304_v2, %v9077_v10 }
 0x424   : > { %v6073_v56 = vpop.f32.mrf.mxu0  ;;  %v6306_v32 = vpop.f32.mrf.mxu1 }
 0x425   : > { %3879 = vst [vmem:[%s9108_s9 + $0x200] sm:$0xff] %v3788_v47 }
 0x426   : > { %v3310_v54 = vpop.f32.mrf.mxu0  ;;  %v3793_v14 = vpop.f32.mrf.mxu1 }
 0x427   : > { %v3794_v51 = vadd.f32 %v3793_v14, %v3299_v31  ;;  %v3311_v45 = vadd.f32 %v3310_v54, %v10343_v62 }
 0x428   : > { %v6076_v11 = vpop.f32.mrf.mxu0  ;;  %v6309_v20 = vpop.f32.mrf.mxu1 }
 0x429   : > { %3880 = vst [vmem:[%s9108_s9 + $0x208] sm:$0xff] %v3794_v51 }
 0x42a   : > { %v3316_v8 = vpop.f32.mrf.mxu0  ;;  %v3799_v12 = vpop.f32.mrf.mxu1 }
 0x42b   : > { %v3800_v55 = vadd.f32 %v3799_v12, %v3305_v7  ;;  %v3317_v22 = vadd.f32 %v3316_v8, %v10344_v3 }
 0x42c   : > { %v6312_v49 = vpop.f32.mrf.mxu1  ;;  %v6079_v41 = vpop.f32.mrf.mxu0 }
 0x42d   : > { %3881 = vst [vmem:[%s9108_s9 + $0x210] sm:$0xff] %v3800_v55 }
 0x42e   : > { %v3805_v37 = vpop.f32.mrf.mxu1 }
 0x42f   : > { %v3806_v52 = vadd.f32 %v3805_v37, %v3311_v45 }
 0x430   : > { %v6315_v1 = vpop.f32.mrf.mxu1 }
 0x431   : > { %3882 = vst [vmem:[%s9108_s9 + $0x218] sm:$0xff] %v3806_v52  ;;  %3890 = sbr.rel (!%p6540_p4) target bundleno = 1142 (0x476), region = 32 }
 0x432   : > { %v3811_v42 = vpop.f32.mrf.mxu1 }
 0x433   : > { %v3812_v33 = vadd.f32 %v3811_v42, %v3317_v22 }
 0x434   : > { %v6318_v4 = vpop.f32.mrf.mxu1 }
 0x435   : > { %3883 = vst [vmem:[%s9108_s9 + $0x220] sm:$0xff] %v3812_v33 }
 0x436   : > { %s10354_s11 = smov (!%p3893_p8, %s3892_s11), 69 }
 0x437   : > { %s4357_s20 = sshll.u32 %s10354_s11, 7 }
 0x438   : > { %p4360_p9 = scmp.eq.s32.totalorder %s4357_s20, 0 }
 0x439   : > { %s9369_s21 = sshrl.u32 (!%p4360_p9), %s10354_s11, 6 }
 0x43a   : > { %3901 = sbr.rel (%p4360_p9) target bundleno = 1142 (0x476), region = 36  ;;  %p4361_p10 = scmp.le.s32.totalorder (!%p4360_p9), %s9369_s21, 0 }
 0x43f   : > { %4308 = sbr.rel (%p4361_p10) target bundleno = 1125 (0x465), region = 112  ;;  %s10345_s12 = smov (!%p4361_p10), %s9363_s19 }
 0x440   : > { %s10346_s17 = smov (!%p4361_p10), %s9108_s9  ;;  %s9378_s24 = smov (!%p4361_p10), 0  }
 0x441   : > { %s9380_s22 = smov (!%p4361_p10), 0  }
 0x444 LB: >> { %v4090_v10 = vld [vmem:[%s6472_s17] sm:$0xff]  ;;  %v4092_v24 = vld [vmem:[%s6472_s17 + $0x8] sm:$0xff]  ;;  %v4094_v46 = vld [vmem:[%s6472_s17 + $0x10] sm:$0xff]  ;;  %s4218_s23 = sadd.s32 1, %s6476_s24  ;;  %s4084_s22 = sadd.s32 1, %s6480_s22   ;;  %s6480_s22 = sphi %s9380_s22, %s4084_s22   ;;  %s6476_s24 = sphi %s9378_s24, %s10349_s24   ;;  %s6472_s17 = sphi %s10346_s17, %s10348_s17   ;;  %s6468_s12 = sphi %s10345_s12, %s10347_s12  }
 0x445   : >> { %4091 = vst [vmem:[%s6468_s12] sm:$0xff] %v4090_v10  ;;  %4093 = vst [vmem:[%s6468_s12 + $0x8] sm:$0xff] %v4092_v24  ;;  %v4096_v13 = vld [vmem:[%s6472_s17 + $0x18] sm:$0xff]  ;;  %v4098_v35 = vld [vmem:[%s6472_s17 + $0x20] sm:$0xff]  ;;  %p4219_p11 = scmp.ge.s32.totalorder %s4218_s23, %s9369_s21  ;;  %p4083_p12 = scmp.ge.s32.totalorder %s4084_s22, %s9369_s21 }
 0x446   : >> { %4095 = vst [vmem:[%s6468_s12 + $0x10] sm:$0xff] %v4094_v46  ;;  %v4100_v19 = vld [vmem:[%s6472_s17 + $0x28] sm:$0xff]  ;;  %4097 = vst [vmem:[%s6468_s12 + $0x18] sm:$0xff] %v4096_v13  ;;  %v4102_v48 = vld [vmem:[%s6472_s17 + $0x30] sm:$0xff] }
 0x447   : >> { %4099 = vst [vmem:[%s6468_s12 + $0x20] sm:$0xff] %v4098_v35  ;;  %4101 = vst [vmem:[%s6468_s12 + $0x28] sm:$0xff] %v4100_v19  ;;  %v4104_v59 = vld [vmem:[%s6472_s17 + $0x38] sm:$0xff]  ;;  %v4106_v28 = vld [vmem:[%s6472_s17 + $0x40] sm:$0xff]  ;;  %s10356_s23 = smov (%p4219_p11, %s4218_s23), 0 }
 0x448   : >> { %4103 = vst [vmem:[%s6468_s12 + $0x30] sm:$0xff] %v4102_v48  ;;  %4105 = vst [vmem:[%s6468_s12 + $0x38] sm:$0xff] %v4104_v59  ;;  %v4108_v6 = vld [vmem:[%s6472_s17 + $0x48] sm:$0xff]  ;;  %v4110_v61 = vld [vmem:[%s6472_s17 + $0x50] sm:$0xff]  ;;  %s4362_s25 = sshll.u32 %s10356_s23, 9  ;;  %s10349_s24 = smov %s10356_s23 }
 0x449   : >> { %4107 = vst [vmem:[%s6468_s12 + $0x40] sm:$0xff] %v4106_v28  ;;  %v4112_v26 = vld [vmem:[%s6472_s17 + $0x58] sm:$0xff]  ;;  %4109 = vst [vmem:[%s6468_s12 + $0x48] sm:$0xff] %v4108_v6  ;;  %v4114_v58 = vld [vmem:[%s6472_s17 + $0x60] sm:$0xff]  ;;  %s9436_s26 = scalar_lea.vmem %s9108_s9, %s4362_s25 [#allocation2]   ;;  %s9439_s27 = scalar_lea.vmem %s9363_s19, %s4362_s25  }
 0x44a   : >> { %4111 = vst [vmem:[%s6468_s12 + $0x50] sm:$0xff] %v4110_v61  ;;  %4113 = vst [vmem:[%s6468_s12 + $0x58] sm:$0xff] %v4112_v26  ;;  %v4116_v57 = vld [vmem:[%s6472_s17 + $0x68] sm:$0xff]  ;;  %v4118_v5 = vld [vmem:[%s6472_s17 + $0x70] sm:$0xff] }
 0x44b   : >> { %4115 = vst [vmem:[%s6468_s12 + $0x60] sm:$0xff] %v4114_v58  ;;  %4117 = vst [vmem:[%s6468_s12 + $0x68] sm:$0xff] %v4116_v57  ;;  %v4120_v60 = vld [vmem:[%s6472_s17 + $0x78] sm:$0xff]  ;;  %v4122_v16 = vld [vmem:[%s6472_s17 + $0x80] sm:$0xff] }
 0x44c   : >> { %4119 = vst [vmem:[%s6468_s12 + $0x70] sm:$0xff] %v4118_v5  ;;  %v4124_v44 = vld [vmem:[%s6472_s17 + $0x88] sm:$0xff]  ;;  %4121 = vst [vmem:[%s6468_s12 + $0x78] sm:$0xff] %v4120_v60  ;;  %v4126_v27 = vld [vmem:[%s6472_s17 + $0x90] sm:$0xff] }
 0x44d   : >> { %4123 = vst [vmem:[%s6468_s12 + $0x80] sm:$0xff] %v4122_v16  ;;  %4125 = vst [vmem:[%s6468_s12 + $0x88] sm:$0xff] %v4124_v44  ;;  %v4128_v30 = vld [vmem:[%s6472_s17 + $0x98] sm:$0xff]  ;;  %v4130_v34 = vld [vmem:[%s6472_s17 + $0xa0] sm:$0xff] }
 0x44e   : >> { %4127 = vst [vmem:[%s6468_s12 + $0x90] sm:$0xff] %v4126_v27  ;;  %4129 = vst [vmem:[%s6468_s12 + $0x98] sm:$0xff] %v4128_v30  ;;  %v4132_v50 = vld [vmem:[%s6472_s17 + $0xa8] sm:$0xff]  ;;  %v4134_v43 = vld [vmem:[%s6472_s17 + $0xb0] sm:$0xff] }
 0x44f   : >> { %4131 = vst [vmem:[%s6468_s12 + $0xa0] sm:$0xff] %v4130_v34  ;;  %v4136_v36 = vld [vmem:[%s6472_s17 + $0xb8] sm:$0xff]  ;;  %4133 = vst [vmem:[%s6468_s12 + $0xa8] sm:$0xff] %v4132_v50  ;;  %v4138_v9 = vld [vmem:[%s6472_s17 + $0xc0] sm:$0xff] }
 0x450   : >> { %4135 = vst [vmem:[%s6468_s12 + $0xb0] sm:$0xff] %v4134_v43  ;;  %4137 = vst [vmem:[%s6468_s12 + $0xb8] sm:$0xff] %v4136_v36  ;;  %v4140_v40 = vld [vmem:[%s6472_s17 + $0xc8] sm:$0xff]  ;;  %v4142_v15 = vld [vmem:[%s6472_s17 + $0xd0] sm:$0xff] }
 0x451   : >> { %4139 = vst [vmem:[%s6468_s12 + $0xc0] sm:$0xff] %v4138_v9  ;;  %4141 = vst [vmem:[%s6468_s12 + $0xc8] sm:$0xff] %v4140_v40  ;;  %v4144_v18 = vld [vmem:[%s6472_s17 + $0xd8] sm:$0xff]  ;;  %v4146_v39 = vld [vmem:[%s6472_s17 + $0xe0] sm:$0xff] }
 0x452   : >> { %4143 = vst [vmem:[%s6468_s12 + $0xd0] sm:$0xff] %v4142_v15  ;;  %v4148_v17 = vld [vmem:[%s6472_s17 + $0xe8] sm:$0xff]  ;;  %4145 = vst [vmem:[%s6468_s12 + $0xd8] sm:$0xff] %v4144_v18  ;;  %v4150_v0 = vld [vmem:[%s6472_s17 + $0xf0] sm:$0xff] }
 0x453   : >> { %4147 = vst [vmem:[%s6468_s12 + $0xe0] sm:$0xff] %v4146_v39  ;;  %4149 = vst [vmem:[%s6468_s12 + $0xe8] sm:$0xff] %v4148_v17  ;;  %v4152_v63 = vld [vmem:[%s6472_s17 + $0xf8] sm:$0xff]  ;;  %v4154_v29 = vld [vmem:[%s6472_s17 + $0x100] sm:$0xff] }
 0x454   : >> { %4151 = vst [vmem:[%s6468_s12 + $0xf0] sm:$0xff] %v4150_v0  ;;  %4153 = vst [vmem:[%s6468_s12 + $0xf8] sm:$0xff] %v4152_v63  ;;  %v4156_v53 = vld [vmem:[%s6472_s17 + $0x108] sm:$0xff]  ;;  %v4158_v21 = vld [vmem:[%s6472_s17 + $0x110] sm:$0xff] }
 0x455   : >> { %4155 = vst [vmem:[%s6468_s12 + $0x100] sm:$0xff] %v4154_v29  ;;  %v4160_v25 = vld [vmem:[%s6472_s17 + $0x118] sm:$0xff]  ;;  %4157 = vst [vmem:[%s6468_s12 + $0x108] sm:$0xff] %v4156_v53  ;;  %v4162_v2 = vld [vmem:[%s6472_s17 + $0x120] sm:$0xff] }
 0x456   : >> { %4159 = vst [vmem:[%s6468_s12 + $0x110] sm:$0xff] %v4158_v21  ;;  %4161 = vst [vmem:[%s6468_s12 + $0x118] sm:$0xff] %v4160_v25  ;;  %v4164_v38 = vld [vmem:[%s6472_s17 + $0x128] sm:$0xff]  ;;  %v4166_v47 = vld [vmem:[%s6472_s17 + $0x130] sm:$0xff] }
 0x457   : >> { %4163 = vst [vmem:[%s6468_s12 + $0x120] sm:$0xff] %v4162_v2  ;;  %4165 = vst [vmem:[%s6468_s12 + $0x128] sm:$0xff] %v4164_v38  ;;  %v4168_v56 = vld [vmem:[%s6472_s17 + $0x138] sm:$0xff]  ;;  %v4170_v32 = vld [vmem:[%s6472_s17 + $0x140] sm:$0xff] }
 0x458   : >> { %4167 = vst [vmem:[%s6468_s12 + $0x130] sm:$0xff] %v4166_v47  ;;  %v4172_v23 = vld [vmem:[%s6472_s17 + $0x148] sm:$0xff]  ;;  %4169 = vst [vmem:[%s6468_s12 + $0x138] sm:$0xff] %v4168_v56  ;;  %v4174_v31 = vld [vmem:[%s6472_s17 + $0x150] sm:$0xff] }
 0x459   : >> { %4171 = vst [vmem:[%s6468_s12 + $0x140] sm:$0xff] %v4170_v32  ;;  %4173 = vst [vmem:[%s6468_s12 + $0x148] sm:$0xff] %v4172_v23  ;;  %v4176_v54 = vld [vmem:[%s6472_s17 + $0x158] sm:$0xff]  ;;  %v4178_v14 = vld [vmem:[%s6472_s17 + $0x160] sm:$0xff] }
 0x45a   : >> { %4175 = vst [vmem:[%s6468_s12 + $0x150] sm:$0xff] %v4174_v31  ;;  %4177 = vst [vmem:[%s6468_s12 + $0x158] sm:$0xff] %v4176_v54  ;;  %v4180_v51 = vld [vmem:[%s6472_s17 + $0x168] sm:$0xff]  ;;  %v4182_v11 = vld [vmem:[%s6472_s17 + $0x170] sm:$0xff] }
 0x45b   : >> { %4179 = vst [vmem:[%s6468_s12 + $0x160] sm:$0xff] %v4178_v14  ;;  %v4184_v20 = vld [vmem:[%s6472_s17 + $0x178] sm:$0xff]  ;;  %4181 = vst [vmem:[%s6468_s12 + $0x168] sm:$0xff] %v4180_v51  ;;  %v4186_v7 = vld [vmem:[%s6472_s17 + $0x180] sm:$0xff] }
 0x45c   : >> { %4183 = vst [vmem:[%s6468_s12 + $0x170] sm:$0xff] %v4182_v11  ;;  %4185 = vst [vmem:[%s6468_s12 + $0x178] sm:$0xff] %v4184_v20  ;;  %v4188_v8 = vld [vmem:[%s6472_s17 + $0x188] sm:$0xff]  ;;  %v4190_v12 = vld [vmem:[%s6472_s17 + $0x190] sm:$0xff] }
 0x45d   : >> { %4187 = vst [vmem:[%s6468_s12 + $0x180] sm:$0xff] %v4186_v7  ;;  %4189 = vst [vmem:[%s6468_s12 + $0x188] sm:$0xff] %v4188_v8  ;;  %v4192_v55 = vld [vmem:[%s6472_s17 + $0x198] sm:$0xff]  ;;  %v4194_v49 = vld [vmem:[%s6472_s17 + $0x1a0] sm:$0xff] }
 0x45e   : >> { %4191 = vst [vmem:[%s6468_s12 + $0x190] sm:$0xff] %v4190_v12  ;;  %v4196_v41 = vld [vmem:[%s6472_s17 + $0x1a8] sm:$0xff]  ;;  %4193 = vst [vmem:[%s6468_s12 + $0x198] sm:$0xff] %v4192_v55  ;;  %v4198_v62 = vld [vmem:[%s6472_s17 + $0x1b0] sm:$0xff] }
 0x45f   : >> { %4195 = vst [vmem:[%s6468_s12 + $0x1a0] sm:$0xff] %v4194_v49  ;;  %4197 = vst [vmem:[%s6468_s12 + $0x1a8] sm:$0xff] %v4196_v41  ;;  %v4200_v45 = vld [vmem:[%s6472_s17 + $0x1b8] sm:$0xff]  ;;  %v4202_v37 = vld [vmem:[%s6472_s17 + $0x1c0] sm:$0xff] }
 0x460   : >> { %4199 = vst [vmem:[%s6468_s12 + $0x1b0] sm:$0xff] %v4198_v62  ;;  %4201 = vst [vmem:[%s6468_s12 + $0x1b8] sm:$0xff] %v4200_v45  ;;  %v4204_v52 = vld [vmem:[%s6472_s17 + $0x1c8] sm:$0xff]  ;;  %v4206_v1 = vld [vmem:[%s6472_s17 + $0x1d0] sm:$0xff]  ;;  %4086 = sbr.rel (!%p4083_p12) target bundleno = 1092 (0x444), region = 118 }
 0x461   : >> { %4203 = vst [vmem:[%s6468_s12 + $0x1c0] sm:$0xff] %v4202_v37  ;;  %v4208_v3 = vld [vmem:[%s6472_s17 + $0x1d8] sm:$0xff]  ;;  %4205 = vst [vmem:[%s6468_s12 + $0x1c8] sm:$0xff] %v4204_v52  ;;  %v4210_v22 = vld [vmem:[%s6472_s17 + $0x1e0] sm:$0xff] }
 0x462   : >> { %4207 = vst [vmem:[%s6468_s12 + $0x1d0] sm:$0xff] %v4206_v1  ;;  %4209 = vst [vmem:[%s6468_s12 + $0x1d8] sm:$0xff] %v4208_v3  ;;  %v4212_v42 = vld [vmem:[%s6472_s17 + $0x1e8] sm:$0xff]  ;;  %v4214_v33 = vld [vmem:[%s6472_s17 + $0x1f0] sm:$0xff] }
 0x463   : >> { %4211 = vst [vmem:[%s6468_s12 + $0x1e0] sm:$0xff] %v4210_v22  ;;  %4213 = vst [vmem:[%s6468_s12 + $0x1e8] sm:$0xff] %v4212_v42  ;;  %v4216_v4 = vld [vmem:[%s6472_s17 + $0x1f8] sm:$0xff]  ;;  %s10348_s17 = smov %s9436_s26 }
 0x464   : >> { %4215 = vst [vmem:[%s6468_s12 + $0x1f0] sm:$0xff] %v4214_v33  ;;  %4217 = vst [vmem:[%s6468_s12 + $0x1f8] sm:$0xff] %v4216_v4  ;;  %s10347_s12 = smov %s9439_s27 }
 0x465 PF: > { %s9544_s28 = sand.u32 63, %s10354_s11   ;;  %s4373_s29 = sshll.u32 %s9369_s21, 9 }
 0x466   : > { %s4229_s30 = scalar_lea.vmem %s9108_s9, %s4373_s29 [#allocation2]   ;;  %s4231_s3 = scalar_lea.vmem %s9363_s19, %s4373_s29  }
 0x467   : > { %p4367_p13 = scmp.le.s32.totalorder %s9544_s28, 0 }
 0x468   : > { %s6482_s4 = smov (!%p4367_p13), %s4231_s3   ;;  %s6486_s5 = smov (!%p4367_p13), %s4229_s30  }
 0x469   : > { %4322 = sbr.rel (%p4367_p13) target bundleno = 1142 (0x476), region = 123  ;;  %s6490_s6 = smov (!%p4367_p13), 0  }
 0x46a   : > { %s6494_s7 = smov (!%p4367_p13), 0  }
 0x46e LB: >> { %v4241_v10 = vld [vmem:[%s6488_s5] sm:$0xff]  ;;  %s4243_s8 = sadd.s32 1, %s6492_s6  ;;  %s4235_s7 = sadd.s32 1, %s6496_s7   ;;  %s6496_s7 = sphi %s6494_s7, %s4235_s7   ;;  %s6492_s6 = sphi %s6490_s6, %s6491_s6   ;;  %s6488_s5 = sphi %s6486_s5, %s4248_s5   ;;  %s6484_s4 = sphi %s6482_s4, %s4249_s4  }
 0x46f   : >> { %4242 = vst [vmem:[%s6484_s4] sm:$0xff] %v4241_v10  ;;  %p4244_p0 = scmp.ge.s32.totalorder %s4243_s8, %s9544_s28  ;;  %p4234_p1 = scmp.ge.s32.totalorder %s4235_s7, %s9544_s28 }
 0x471   : >> { %s10358_s8 = smov (%p4244_p0, %s4243_s8), 0  ;;  %4237 = sbr.rel (!%p4234_p1) target bundleno = 1134 (0x46e), region = 129 }
 0x472   : >> { %s4368_s9 = sshll.u32 %s10358_s8, 3  ;;  %s6491_s6 = smov %s10358_s8  }
 0x473   : >> { %s4248_s5 = scalar_lea.vmem %s4229_s30, %s4368_s9 [#allocation2]   ;;  %s4249_s4 = scalar_lea.vmem %s4231_s3, %s4368_s9  }
 0x476 PF: > { %p9_p2 = scmp.ge.s32.totalorder %s6530_s13, 6   ;;  %s10350_s9 = smov %s6460_s10 }
 0x477   : > { %s10351_s10 = smov %s6538_s16  ;;  %s10352_s11 = smov %s6530_s13 }
 0x478   :  { %11 = sbr.rel (!%p9_p2) target bundleno = 2 (0x2), region = 140 }

</bundles_post_ra>
